<compile_context>
chip_gen: v7x
topology: tpu7x:2x2x1
jax: 0.10.0
libtpu: 0.0.40
codegen_flags: <defaults>
</compile_context>

<pallas_src>
import functools

import jax
import jax.numpy as jnp
from jax.experimental import pallas as pl
from jax.experimental.pallas import tpu as pltpu


# ----------------------------------------------------------------------------
# Pallas kernel: full Transolver block (Graph_Physics_Attention_1D + MLP)
# ----------------------------------------------------------------------------
def _transolver_block_kernel(
    batch_ref,            # [N, 1]  int32 graph id per node
    x_ref,                # [N, D]  f32 node features
    win_ref, bin_ref,     # [D, H*Dh + H*S] bf16, [1, H*Dh + H*S] f32  fused in-proj
    wqkv_ref,             # [H*Dh, 3*Dh] bf16 (wq*scale | wk | wv, tiled over heads)
    wo_ref, bo_ref,       # [H*Dh, D] bf16, [1, D] f32      to_out
    ln1g_ref, ln1b_ref,   # [1, D] f32
    ln2g_ref, ln2b_ref,   # [1, D] f32
    w1_ref, b1_ref,       # [D, 4D] bf16, [1, 4D] f32       MLP.linear_pre
    w2_ref, b2_ref,       # [4D, D] bf16, [1, D] f32        MLP.linear_post
    bias_ref,             # [HBS, HBS] f32 additive block-diagonal attention mask
    gmask_ref,            # [HBS, H*Dh] f32 own-head block mask
    out_ref,              # [N, D] f32
    *, heads, dim_head, slice_num, n_batch, in_layernorm,
):
    f32 = jnp.float32
    bf16 = jnp.bfloat16
    H, Dh, S, B = heads, dim_head, slice_num, n_batch
    HD = H * Dh

    x_in = x_ref[...]                                                  # [N, D]

    def layernorm(z, g, b):
        mu = jnp.mean(z, axis=-1, keepdims=True)
        var = jnp.mean((z - mu) ** 2, axis=-1, keepdims=True)
        return (z - mu) * jax.lax.rsqrt(var + 1e-5) * g + b

    # optional input LayerNorm (ln_1); residual is always the raw input
    x_attn = layernorm(x_in, ln1g_ref[...], ln1b_ref[...]) if in_layernorm else x_in
    xb = x_attn.astype(bf16)

    # --- fused input projection: fx_mid and slice logits from ONE matmul ------
    mid = jnp.dot(xb, win_ref[...], preferred_element_type=f32) + bin_ref[...]
    fx_mid = mid[:, :HD]                                               # [N, H*Dh]
    logits = mid[:, HD:]                                               # [N, H*S] (temp folded)

    # --- per-head softmax over slices (f32) -----------------------------------
    sw_parts = []
    for h in range(H):
        lg = logits[:, h * S:(h + 1) * S]
        lg = lg - jnp.max(lg, axis=-1, keepdims=True)
        e = jnp.exp(lg)
        inv = pl.reciprocal(jnp.sum(e, axis=-1, keepdims=True), approx=True)
        sw_parts.append(e * inv)
    sw_all = jnp.concatenate(sw_parts, axis=-1)                        # [N, H*S]

    # --- graph-masked slice weights, lanes ordered (graph, head, slice) -------
    batch_col = batch_ref[...]                                         # [N, 1] i32
    msw_parts = []
    for b in range(B):
        in_b = jnp.where(batch_col == b, 1.0, 0.0)                     # [N, 1] f32
        msw_parts.append(in_b * sw_all)
    msw = jnp.concatenate(msw_parts, axis=-1)                          # [N, B*H*S]

    # slice_norm + eps folded into the scatter weights (pure XLU column reduction)
    denom = jnp.sum(msw, axis=0, keepdims=True) + 1e-5                 # [1, B*H*S]
    msw_n = msw * pl.reciprocal(denom, approx=True)

    # --- scatter_add -> slice tokens: ONE dense contraction over nodes --------
    gmask = gmask_ref[...]
    st_full = jax.lax.dot_general(
        msw_n.astype(bf16), fx_mid.astype(bf16),
        (((0,), (0,)), ((), ())), preferred_element_type=f32)          # [HBS, H*Dh]
    st = st_full * gmask                                               # keep own-head block

    # --- slice-token attention, batched over all (graph, head) pairs ----------
    qkv = jnp.dot(st.astype(bf16), wqkv_ref[...],
                  preferred_element_type=f32)                          # [HBS, 3*Dh]
    q = qkv[:, :Dh]
    k = qkv[:, Dh:2 * Dh]
    v = qkv[:, 2 * Dh:]
    dots = jax.lax.dot_general(q.astype(bf16), k.astype(bf16),
                               (((1,), (1,)), ((), ())),
                               preferred_element_type=f32)             # [HBS, HBS]
    dots = dots + bias_ref[...]                                        # block-diag mask
    dots = dots - jnp.max(dots, axis=-1, keepdims=True)
    p = jnp.exp(dots)
    attn = p * pl.reciprocal(jnp.sum(p, axis=-1, keepdims=True), approx=True)
    osl = jnp.dot(attn.astype(bf16), v.astype(bf16),
                  preferred_element_type=f32)                          # [HBS, Dh]

    # --- to_out folded onto the slice tokens (tiny matmul), then one gather ---
    osl_bd = (jnp.concatenate([osl] * H, axis=-1) * gmask).astype(bf16)  # [HBS, H*Dh]
    osl_proj = jnp.dot(osl_bd, wo_ref[...], preferred_element_type=f32)  # [HBS, D]
    attn_out = jnp.dot(msw.astype(bf16), osl_proj.astype(bf16),
                       preferred_element_type=f32) + bo_ref[...]         # [N, D]
    fx1 = attn_out + x_in

    # --- ln_2 + MLP (Linear -> exact GELU -> Linear) + residual 2 --------------
    xn = layernorm(fx1, ln2g_ref[...], ln2b_ref[...])
    h1 = jnp.dot(xn.astype(bf16), w1_ref[...],
                 preferred_element_type=f32) + b1_ref[...]
    h1 = 0.5 * h1 * (1.0 + jax.lax.erf(h1 * 0.7071067811865475))       # exact GELU
    mlp = jnp.dot(h1.astype(bf16), w2_ref[...],
                  preferred_element_type=f32) + b2_ref[...]
    out_ref[...] = mlp + fx1


# ----------------------------------------------------------------------------
# One-time parameter preparation (outside the per-step path)
# ----------------------------------------------------------------------------
def prepare_kernel_inputs(params, *, heads, dim_head, slice_num, n_batch):
    """Fold static structure into kernel-ready arrays (all folds done in f32):
    1/graph_temperature and the attention scale into weights, the slice projection
    folded through in_project_x into one wide input weight, concatenated head-tiled
    QKV weight, precomputed (graph,head)-block masks, bf16 matmul weights."""
    H, Dh, S, B = heads, dim_head, slice_num, n_batch
    HBS = B * H * S
    bf16 = jnp.bfloat16
    gt = params["gt"].astype(jnp.float32)                              # [H]

    # per-head block-diagonal slice projection with temperature folded in
    wsl_bd = jax.scipy.linalg.block_diag(
        *[params["wsl"] / gt[h] for h in range(H)])                    # [H*Dh, H*S]
    bsl_bd = jnp.concatenate([params["bsl"] / gt[h] for h in range(H)], axis=1)

    # fold slice projection THROUGH in_project_x and fuse with in_project_fx
    win = jnp.concatenate([params["wfx"], params["wx"] @ wsl_bd], axis=1)   # [D, H*Dh+H*S]
    bin_ = jnp.concatenate([params["bfx"],
                            params["bx"] @ wsl_bd + bsl_bd], axis=1)        # [1, H*Dh+H*S]

    scale = dim_head ** -0.5
    wqkv = jnp.concatenate(
        [params["wq"] * scale, params["wk"], params["wv"]], axis=1)    # [Dh, 3*Dh]
    wqkv_rep = jnp.tile(wqkv, (H, 1))                                  # [H*Dh, 3*Dh]

    r = jnp.arange(HBS)
    grp = r // S                                                       # unique per (graph, head)
    attn_bias = jnp.where(grp[:, None] == grp[None, :], 0.0, -1e30).astype(jnp.float32)
    h_of_r = (r // S) % H
    c_head = jnp.arange(H * Dh) // Dh
    gmask = (h_of_r[:, None] == c_head[None, :]).astype(jnp.float32)   # [HBS, H*Dh]

    return {
        "win": win.astype(bf16), "bin": bin_,
        "wqkv": wqkv_rep.astype(bf16),
        "wo": params["wo"].astype(bf16), "bo": params["bo"],
        "ln1_g": params["ln1_g"], "ln1_b": params["ln1_b"],
        "ln2_g": params["ln2_g"], "ln2_b": params["ln2_b"],
        "w1": params["w1"].astype(bf16), "b1": params["b1"],
        "w2": params["w2"].astype(bf16), "b2": params["b2"],
        "attn_bias": attn_bias, "gmask": gmask,
    }


# ----------------------------------------------------------------------------
# Wrapper
# ----------------------------------------------------------------------------
def transolver_block(fx, batch, prep, *, heads, dim_head, slice_num, n_batch,
                     in_layernorm=False):
    """Transolver_block.forward.  n_batch is static (no host sync per call)."""
    n_nodes, dim = fx.shape
    H, Dh, S, B = heads, dim_head, slice_num, n_batch
    HBS = B * H * S
    hidden = prep["w1"].shape[1]

    kernel = functools.partial(
        _transolver_block_kernel,
        heads=H, dim_head=Dh, slice_num=S, n_batch=B, in_layernorm=in_layernorm)

    args = (
        batch.reshape(n_nodes, 1).astype(jnp.int32), fx,
        prep["win"], prep["bin"], prep["wqkv"],
        prep["wo"], prep["bo"],
        prep["ln1_g"], prep["ln1_b"], prep["ln2_g"], prep["ln2_b"],
        prep["w1"], prep["b1"], prep["w2"], prep["b2"],
        prep["attn_bias"], prep["gmask"],
    )
    vmem = pl.BlockSpec(memory_space=pltpu.MemorySpace.VMEM)

    # advisory cost estimate so XLA schedules surrounding ops around the kernel
    flops = 2 * n_nodes * dim * (H * Dh + H * S)           # fused in-proj (+ logits)
    flops += 2 * n_nodes * HBS * (H * Dh)                  # scatter
    flops += 2 * HBS * (H * Dh) * (3 * Dh)                 # QKV
    flops += 2 * HBS * HBS * Dh * 2                        # dots + attn@v
    flops += 2 * HBS * (H * Dh) * dim                      # to_out fold on slice tokens
    flops += 2 * n_nodes * HBS * dim                       # gather (+to_out)
    flops += 2 * n_nodes * dim * hidden * 2                # MLP
    transcendentals = n_nodes * H * S + HBS * HBS + n_nodes * hidden
    bytes_accessed = sum(int(a.size) * a.dtype.itemsize for a in args)
    bytes_accessed += n_nodes * dim * 4

    return pl.pallas_call(
        kernel,
        out_shape=jax.ShapeDtypeStruct((n_nodes, dim), jnp.float32),
        in_specs=[vmem] * len(args),
        out_specs=vmem,
        compiler_params=pltpu.CompilerParams(vmem_limit_bytes=32 * 1024 * 1024),
        cost_estimate=pl.CostEstimate(flops=int(flops),
                                      transcendentals=int(transcendentals),
                                      bytes_accessed=int(bytes_accessed)),
    )(*args)


# ----------------------------------------------------------------------------
# Deterministic parameter init (synthetic; matches module __init__ shapes)
# ----------------------------------------------------------------------------
def init_params(key, dim, heads, dim_head, slice_num, mlp_ratio=4):
    inner = heads * dim_head
    hidden = dim * mlp_ratio
    ks = jax.random.split(key, 14)

    def w(k, shape, s):
        return jax.random.normal(k, shape, jnp.float32) * s

    return {
        "wfx": w(ks[0], (dim, inner), 0.08), "bfx": w(ks[1], (1, inner), 0.02),
        "wx": w(ks[2], (dim, inner), 0.08), "bx": w(ks[3], (1, inner), 0.02),
        # TODO(synk): torch uses orthogonal_ init for in_project_slice; values here are
        # deterministic gaussian instead (shape-identical).
        "wsl": w(ks[4], (dim_head, slice_num), 0.20),
        "bsl": w(ks[5], (1, slice_num), 0.02),
        "gt": jnp.full((heads,), 0.5, jnp.float32),        # graph_temperature
        "wq": w(ks[6], (dim_head, dim_head), 0.20),
        "wk": w(ks[7], (dim_head, dim_head), 0.20),
        "wv": w(ks[8], (dim_head, dim_head), 0.20),
        "wo": w(ks[9], (inner, dim), 0.08), "bo": w(ks[10], (1, dim), 0.02),
        "ln1_g": jnp.ones((1, dim), jnp.float32),
        "ln1_b": jnp.zeros((1, dim), jnp.float32),
        "ln2_g": jnp.ones((1, dim), jnp.float32),
        "ln2_b": jnp.zeros((1, dim), jnp.float32),
        "w1": w(ks[11], (dim, hidden), 0.08), "b1": w(ks[12], (1, hidden), 0.02),
        "w2": w(ks[13], (hidden, dim), 0.05),
        "b2": jnp.zeros((1, dim), jnp.float32),
    }


# ----------------------------------------------------------------------------
# Pure-JAX reference (mirrors PyTorch semantics) for a correctness check
# ----------------------------------------------------------------------------
def ref_transolver_block(fx, batch, p, *, heads, dim_head, slice_num, n_batch,
                         in_layernorm=False):
    def layernorm(z, g, b):
        mu = jnp.mean(z, -1, keepdims=True)
        var = jnp.mean((z - mu) ** 2, -1, keepdims=True)
        return (z - mu) / jnp.sqrt(var + 1e-5) * g + b

    N, D = fx.shape
    H, Dh, S, B = heads, dim_head, slice_num, n_batch

    x = layernorm(fx, p["ln1_g"], p["ln1_b"]) if in_layernorm else fx
    fx_mid = (x @ p["wfx"] + p["bfx"]).reshape(N, H, Dh)
    x_mid = (x @ p["wx"] + p["bx"]).reshape(N, H, Dh)
    logits = (jnp.einsum("nhd,ds->nhs", x_mid, p["wsl"]) + p["bsl"]) \
        / p["gt"][None, :, None]
    sw = jax.nn.softmax(logits, -1)                                    # [N,H,S]
    slice_norm = jax.ops.segment_sum(sw, batch, B)                     # [B,H,S]
    slice_token = jax.ops.segment_sum(fx_mid[:, :, None, :] * sw[..., None],
                                      batch, B)                        # [B,H,S,Dh]
    slice_token = slice_token / (slice_norm[..., None] + 1e-5)
    q = slice_token @ p["wq"]
    k = slice_token @ p["wk"]
    v = slice_token @ p["wv"]
    dots = jnp.einsum("bhsd,bhtd->bhst", q, k) * (Dh ** -0.5)
    attn = jax.nn.softmax(dots, -1)
    osl = jnp.einsum("bhst,bhtd->bhsd", attn, v)
    out_x = jnp.sum(osl[batch] * sw[..., None], axis=2).reshape(N, H * Dh)
    attn_out = out_x @ p["wo"] + p["bo"]
    fx1 = attn_out + fx
    xn = layernorm(fx1, p["ln2_g"], p["ln2_b"])
    h1 = xn @ p["w1"] + p["b1"]
    h1 = 0.5 * h1 * (1.0 + jax.lax.erf(h1 / jnp.sqrt(2.0)))
    return h1 @ p["w2"] + p["b2"] + fx1


# ----------------------------------------------------------------------------
if __name__ == "__main__":
    key = jax.random.PRNGKey(0)
    N, D, H, S, B = 64, 64, 4, 16, 2      # nodes, hidden_dim, heads, slices, graphs
    Dh = D // H

    kp, kf, kb = jax.random.split(key, 3)
    params = init_params(kp, D, H, Dh, S)
    fx = jax.random.normal(kf, (N, D), jnp.float32)
    batch = jnp.sort(jax.random.randint(kb, (N,), 0, B)).astype(jnp.int32)
    batch = batch.at[0].set(0).at[-1].set(B - 1)   # guarantee both graphs present

    prep = prepare_kernel_inputs(params, heads=H, dim_head=Dh, slice_num=S, n_batch=B)

    for in_ln in (False, True):
        out = transolver_block(fx, batch, prep, heads=H, dim_head=Dh, slice_num=S,
                               n_batch=B, in_layernorm=in_ln)
        out = jax.block_until_ready(out)
        with jax.default_matmul_precision("highest"):
            ref = ref_transolver_block(fx, batch, params, heads=H, dim_head=Dh,
                                       slice_num=S, n_batch=B, in_layernorm=in_ln)
            ref = jax.block_until_ready(ref)
        err = float(jnp.max(jnp.abs(out - ref)))
        assert out.shape == (N, D)
        # bf16 matmul inputs / f32 accumulation (+ approx EUP reciprocals) inside the
        # kernel vs f32-highest reference
        assert err < 4e-2, f"kernel/reference mismatch (in_layernorm={in_ln}): {err}"

    print("KERNEL_OK")
</pallas_src>

<mosaic_0001>
module attributes {stable_mosaic.version = 11 : i64} {
  func.func @_transolver_block_kernel(%arg0: memref<64x1xi32, #tpu.memory_space<vmem>>, %arg1: memref<64x64xf32, #tpu.memory_space<vmem>>, %arg2: memref<64x128xbf16, #tpu.memory_space<vmem>>, %arg3: memref<1x128xf32, #tpu.memory_space<vmem>>, %arg4: memref<64x48xbf16, #tpu.memory_space<vmem>>, %arg5: memref<64x64xbf16, #tpu.memory_space<vmem>>, %arg6: memref<1x64xf32, #tpu.memory_space<vmem>>, %arg7: memref<1x64xf32, #tpu.memory_space<vmem>>, %arg8: memref<1x64xf32, #tpu.memory_space<vmem>>, %arg9: memref<1x64xf32, #tpu.memory_space<vmem>>, %arg10: memref<1x64xf32, #tpu.memory_space<vmem>>, %arg11: memref<64x256xbf16, #tpu.memory_space<vmem>>, %arg12: memref<1x256xf32, #tpu.memory_space<vmem>>, %arg13: memref<256x64xbf16, #tpu.memory_space<vmem>>, %arg14: memref<1x64xf32, #tpu.memory_space<vmem>>, %arg15: memref<128x128xf32, #tpu.memory_space<vmem>>, %arg16: memref<128x64xf32, #tpu.memory_space<vmem>>, %arg17: memref<64x64xf32, #tpu.memory_space<vmem>>) attributes {dimension_semantics = [], scalar_prefetch = 0 : i64, scratch_operands = 0 : i64, tpu.core_type = #tpu.core_type<tc>} {
    %c0 = arith.constant 0 : index
    %c0_0 = arith.constant 0 : index
    %0 = vector.load %arg1[%c0, %c0_0] : memref<64x64xf32, #tpu.memory_space<vmem>>, vector<64x64xf32>
    %1 = arith.truncf %0 : vector<64x64xf32> to vector<64x64xbf16>
    %c0_1 = arith.constant 0 : index
    %c0_2 = arith.constant 0 : index
    %2 = vector.load %arg2[%c0_1, %c0_2] : memref<64x128xbf16, #tpu.memory_space<vmem>>, vector<64x128xbf16>
    %cst = arith.constant dense<0.000000e+00> : vector<64x128xf32>
    %3 = tpu.matmul %1, %2, %cst {dimension_numbers = #tpu.dot_dimension_numbers<[1], [0], [0], [1], [0, 0, 1, 1], [], []>} : vector<64x64xbf16>, vector<64x128xbf16>, vector<64x128xf32> -> vector<64x128xf32>
    %c0_3 = arith.constant 0 : index
    %c0_4 = arith.constant 0 : index
    %4 = vector.load %arg3[%c0_3, %c0_4] : memref<1x128xf32, #tpu.memory_space<vmem>>, vector<1x128xf32>
    %5 = vector.broadcast %4 : vector<1x128xf32> to vector<64x128xf32>
    %6 = arith.addf %3, %5 : vector<64x128xf32>
    %7 = vector.extract_strided_slice %6 {offsets = [0, 0], sizes = [64, 64], strides = [1, 1]} : vector<64x128xf32> to vector<64x64xf32>
    %8 = vector.extract_strided_slice %6 {offsets = [0, 64], sizes = [64, 64], strides = [1, 1]} : vector<64x128xf32> to vector<64x64xf32>
    %9 = vector.extract_strided_slice %8 {offsets = [0, 0], sizes = [64, 16], strides = [1, 1]} : vector<64x64xf32> to vector<64x16xf32>
    %cst_5 = arith.constant dense<0xFF800000> : vector<64xf32>
    %10 = vector.multi_reduction <maximumf>, %9, %cst_5 [1] : vector<64x16xf32> to vector<64xf32>
    %11 = vector.shape_cast %10 : vector<64xf32> to vector<64x1xf32>
    %12 = vector.broadcast %11 : vector<64x1xf32> to vector<64x16xf32>
    %13 = arith.subf %9, %12 : vector<64x16xf32>
    %14 = math.exp %13 : vector<64x16xf32>
    %cst_6 = arith.constant dense<0.000000e+00> : vector<64xf32>
    %15 = vector.multi_reduction <add>, %14, %cst_6 [1] : vector<64x16xf32> to vector<64xf32>
    %16 = vector.shape_cast %15 : vector<64xf32> to vector<64x1xf32>
    %17 = tpu.reciprocal %16 {approx = true} : vector<64x1xf32> -> vector<64x1xf32>
    %18 = vector.broadcast %17 : vector<64x1xf32> to vector<64x16xf32>
    %19 = arith.mulf %14, %18 : vector<64x16xf32>
    %20 = vector.extract_strided_slice %8 {offsets = [0, 16], sizes = [64, 16], strides = [1, 1]} : vector<64x64xf32> to vector<64x16xf32>
    %cst_7 = arith.constant dense<0xFF800000> : vector<64xf32>
    %21 = vector.multi_reduction <maximumf>, %20, %cst_7 [1] : vector<64x16xf32> to vector<64xf32>
    %22 = vector.shape_cast %21 : vector<64xf32> to vector<64x1xf32>
    %23 = vector.broadcast %22 : vector<64x1xf32> to vector<64x16xf32>
    %24 = arith.subf %20, %23 : vector<64x16xf32>
    %25 = math.exp %24 : vector<64x16xf32>
    %cst_8 = arith.constant dense<0.000000e+00> : vector<64xf32>
    %26 = vector.multi_reduction <add>, %25, %cst_8 [1] : vector<64x16xf32> to vector<64xf32>
    %27 = vector.shape_cast %26 : vector<64xf32> to vector<64x1xf32>
    %28 = tpu.reciprocal %27 {approx = true} : vector<64x1xf32> -> vector<64x1xf32>
    %29 = vector.broadcast %28 : vector<64x1xf32> to vector<64x16xf32>
    %30 = arith.mulf %25, %29 : vector<64x16xf32>
    %31 = vector.extract_strided_slice %8 {offsets = [0, 32], sizes = [64, 16], strides = [1, 1]} : vector<64x64xf32> to vector<64x16xf32>
    %cst_9 = arith.constant dense<0xFF800000> : vector<64xf32>
    %32 = vector.multi_reduction <maximumf>, %31, %cst_9 [1] : vector<64x16xf32> to vector<64xf32>
    %33 = vector.shape_cast %32 : vector<64xf32> to vector<64x1xf32>
    %34 = vector.broadcast %33 : vector<64x1xf32> to vector<64x16xf32>
    %35 = arith.subf %31, %34 : vector<64x16xf32>
    %36 = math.exp %35 : vector<64x16xf32>
    %cst_10 = arith.constant dense<0.000000e+00> : vector<64xf32>
    %37 = vector.multi_reduction <add>, %36, %cst_10 [1] : vector<64x16xf32> to vector<64xf32>
    %38 = vector.shape_cast %37 : vector<64xf32> to vector<64x1xf32>
    %39 = tpu.reciprocal %38 {approx = true} : vector<64x1xf32> -> vector<64x1xf32>
    %40 = vector.broadcast %39 : vector<64x1xf32> to vector<64x16xf32>
    %41 = arith.mulf %36, %40 : vector<64x16xf32>
    %42 = vector.extract_strided_slice %8 {offsets = [0, 48], sizes = [64, 16], strides = [1, 1]} : vector<64x64xf32> to vector<64x16xf32>
    %cst_11 = arith.constant dense<0xFF800000> : vector<64xf32>
    %43 = vector.multi_reduction <maximumf>, %42, %cst_11 [1] : vector<64x16xf32> to vector<64xf32>
    %44 = vector.shape_cast %43 : vector<64xf32> to vector<64x1xf32>
    %45 = vector.broadcast %44 : vector<64x1xf32> to vector<64x16xf32>
    %46 = arith.subf %42, %45 : vector<64x16xf32>
    %47 = math.exp %46 : vector<64x16xf32>
    %cst_12 = arith.constant dense<0.000000e+00> : vector<64xf32>
    %48 = vector.multi_reduction <add>, %47, %cst_12 [1] : vector<64x16xf32> to vector<64xf32>
    %49 = vector.shape_cast %48 : vector<64xf32> to vector<64x1xf32>
    %50 = tpu.reciprocal %49 {approx = true} : vector<64x1xf32> -> vector<64x1xf32>
    %51 = vector.broadcast %50 : vector<64x1xf32> to vector<64x16xf32>
    %52 = arith.mulf %47, %51 : vector<64x16xf32>
    %53 = tpu.concatenate %19, %30, %41, %52 in 1 : vector<64x16xf32>, vector<64x16xf32>, vector<64x16xf32>, vector<64x16xf32> -> vector<64x64xf32>
    %c0_13 = arith.constant 0 : index
    %c0_14 = arith.constant 0 : index
    %54 = vector.load %arg0[%c0_13, %c0_14] : memref<64x1xi32, #tpu.memory_space<vmem>>, vector<64x1xi32>
    %c0_i32 = arith.constant 0 : i32
    %55 = vector.broadcast %c0_i32 : i32 to vector<64x1xi32>
    %56 = arith.cmpi eq, %54, %55 : vector<64x1xi32>
    %cst_15 = arith.constant 1.000000e+00 : f32
    %cst_16 = arith.constant 0.000000e+00 : f32
    %57 = vector.broadcast %cst_15 : f32 to vector<64x1xf32>
    %58 = vector.broadcast %cst_16 : f32 to vector<64x1xf32>
    %59 = arith.select %56, %57, %58 : vector<64x1xi1>, vector<64x1xf32>
    %60 = vector.broadcast %59 : vector<64x1xf32> to vector<64x64xf32>
    %61 = arith.mulf %60, %53 : vector<64x64xf32>
    %c1_i32 = arith.constant 1 : i32
    %62 = vector.broadcast %c1_i32 : i32 to vector<64x1xi32>
    %63 = arith.cmpi eq, %54, %62 : vector<64x1xi32>
    %cst_17 = arith.constant 1.000000e+00 : f32
    %cst_18 = arith.constant 0.000000e+00 : f32
    %64 = vector.broadcast %cst_17 : f32 to vector<64x1xf32>
    %65 = vector.broadcast %cst_18 : f32 to vector<64x1xf32>
    %66 = arith.select %63, %64, %65 : vector<64x1xi1>, vector<64x1xf32>
    %67 = vector.broadcast %66 : vector<64x1xf32> to vector<64x64xf32>
    %68 = arith.mulf %67, %53 : vector<64x64xf32>
    %69 = tpu.concatenate %61, %68 in 1 : vector<64x64xf32>, vector<64x64xf32> -> vector<64x128xf32>
    %cst_19 = arith.constant dense<0.000000e+00> : vector<128xf32>
    %70 = vector.multi_reduction <add>, %69, %cst_19 [0] : vector<64x128xf32> to vector<128xf32>
    %71 = vector.shape_cast %70 : vector<128xf32> to vector<1x128xf32>
    %cst_20 = arith.constant 9.99999974E-6 : f32
    %72 = vector.broadcast %cst_20 : f32 to vector<1x128xf32>
    %73 = arith.addf %71, %72 : vector<1x128xf32>
    %74 = tpu.reciprocal %73 {approx = true} : vector<1x128xf32> -> vector<1x128xf32>
    %75 = vector.broadcast %74 : vector<1x128xf32> to vector<64x128xf32>
    %76 = arith.mulf %69, %75 : vector<64x128xf32>
    %c0_21 = arith.constant 0 : index
    %c0_22 = arith.constant 0 : index
    %77 = vector.load %arg16[%c0_21, %c0_22] : memref<128x64xf32, #tpu.memory_space<vmem>>, vector<128x64xf32>
    %78 = arith.truncf %76 : vector<64x128xf32> to vector<64x128xbf16>
    %79 = arith.truncf %7 : vector<64x64xf32> to vector<64x64xbf16>
    %cst_23 = arith.constant dense<0.000000e+00> : vector<128x64xf32>
    %80 = tpu.matmul %78, %79, %cst_23 {dimension_numbers = #tpu.dot_dimension_numbers<[0], [0], [1], [1], [0, 1, 1, 1], [], []>} : vector<64x128xbf16>, vector<64x64xbf16>, vector<128x64xf32> -> vector<128x64xf32>
    %81 = arith.mulf %80, %77 : vector<128x64xf32>
    %82 = arith.truncf %81 : vector<128x64xf32> to vector<128x64xbf16>
    %c0_24 = arith.constant 0 : index
    %c0_25 = arith.constant 0 : index
    %83 = vector.load %arg4[%c0_24, %c0_25] : memref<64x48xbf16, #tpu.memory_space<vmem>>, vector<64x48xbf16>
    %cst_26 = arith.constant dense<0.000000e+00> : vector<128x48xf32>
    %84 = tpu.matmul %82, %83, %cst_26 {dimension_numbers = #tpu.dot_dimension_numbers<[1], [0], [0], [1], [0, 0, 1, 1], [], []>} : vector<128x64xbf16>, vector<64x48xbf16>, vector<128x48xf32> -> vector<128x48xf32>
    %85 = vector.extract_strided_slice %84 {offsets = [0, 0], sizes = [128, 16], strides = [1, 1]} : vector<128x48xf32> to vector<128x16xf32>
    %86 = vector.extract_strided_slice %84 {offsets = [0, 16], sizes = [128, 16], strides = [1, 1]} : vector<128x48xf32> to vector<128x16xf32>
    %87 = vector.extract_strided_slice %84 {offsets = [0, 32], sizes = [128, 16], strides = [1, 1]} : vector<128x48xf32> to vector<128x16xf32>
    %88 = arith.truncf %85 : vector<128x16xf32> to vector<128x16xbf16>
    %89 = arith.truncf %86 : vector<128x16xf32> to vector<128x16xbf16>
    %cst_27 = arith.constant dense<0.000000e+00> : vector<128x128xf32>
    %90 = tpu.matmul %88, %89, %cst_27 {dimension_numbers = #tpu.dot_dimension_numbers<[1], [1], [0], [0], [0, 0, 1, 0], [], []>} : vector<128x16xbf16>, vector<128x16xbf16>, vector<128x128xf32> -> vector<128x128xf32>
    %c0_28 = arith.constant 0 : index
    %c0_29 = arith.constant 0 : index
    %91 = vector.load %arg15[%c0_28, %c0_29] : memref<128x128xf32, #tpu.memory_space<vmem>>, vector<128x128xf32>
    %92 = arith.addf %90, %91 : vector<128x128xf32>
    %cst_30 = arith.constant dense<0xFF800000> : vector<128xf32>
    %93 = vector.multi_reduction <maximumf>, %92, %cst_30 [1] : vector<128x128xf32> to vector<128xf32>
    %94 = vector.shape_cast %93 : vector<128xf32> to vector<128x1xf32>
    %95 = vector.broadcast %94 : vector<128x1xf32> to vector<128x128xf32>
    %96 = arith.subf %92, %95 : vector<128x128xf32>
    %97 = math.exp %96 : vector<128x128xf32>
    %cst_31 = arith.constant dense<0.000000e+00> : vector<128xf32>
    %98 = vector.multi_reduction <add>, %97, %cst_31 [1] : vector<128x128xf32> to vector<128xf32>
    %99 = vector.shape_cast %98 : vector<128xf32> to vector<128x1xf32>
    %100 = tpu.reciprocal %99 {approx = true} : vector<128x1xf32> -> vector<128x1xf32>
    %101 = vector.broadcast %100 : vector<128x1xf32> to vector<128x128xf32>
    %102 = arith.mulf %97, %101 : vector<128x128xf32>
    %103 = arith.truncf %102 : vector<128x128xf32> to vector<128x128xbf16>
    %104 = arith.truncf %87 : vector<128x16xf32> to vector<128x16xbf16>
    %cst_32 = arith.constant dense<0.000000e+00> : vector<128x16xf32>
    %105 = tpu.matmul %103, %104, %cst_32 {dimension_numbers = #tpu.dot_dimension_numbers<[1], [0], [0], [1], [0, 0, 1, 1], [], []>} : vector<128x128xbf16>, vector<128x16xbf16>, vector<128x16xf32> -> vector<128x16xf32>
    %106 = tpu.concatenate %105, %105, %105, %105 in 1 : vector<128x16xf32>, vector<128x16xf32>, vector<128x16xf32>, vector<128x16xf32> -> vector<128x64xf32>
    %107 = arith.mulf %106, %77 : vector<128x64xf32>
    %108 = arith.truncf %107 : vector<128x64xf32> to vector<128x64xbf16>
    %c0_33 = arith.constant 0 : index
    %c0_34 = arith.constant 0 : index
    %109 = vector.load %arg5[%c0_33, %c0_34] : memref<64x64xbf16, #tpu.memory_space<vmem>>, vector<64x64xbf16>
    %cst_35 = arith.constant dense<0.000000e+00> : vector<128x64xf32>
    %110 = tpu.matmul %108, %109, %cst_35 {dimension_numbers = #tpu.dot_dimension_numbers<[1], [0], [0], [1], [0, 0, 1, 1], [], []>} : vector<128x64xbf16>, vector<64x64xbf16>, vector<128x64xf32> -> vector<128x64xf32>
    %111 = arith.truncf %69 : vector<64x128xf32> to vector<64x128xbf16>
    %112 = arith.truncf %110 : vector<128x64xf32> to vector<128x64xbf16>
    %cst_36 = arith.constant dense<0.000000e+00> : vector<64x64xf32>
    %113 = tpu.matmul %111, %112, %cst_36 {dimension_numbers = #tpu.dot_dimension_numbers<[1], [0], [0], [1], [0, 0, 1, 1], [], []>} : vector<64x128xbf16>, vector<128x64xbf16>, vector<64x64xf32> -> vector<64x64xf32>
    %c0_37 = arith.constant 0 : index
    %c0_38 = arith.constant 0 : index
    %114 = vector.load %arg6[%c0_37, %c0_38] : memref<1x64xf32, #tpu.memory_space<vmem>>, vector<1x64xf32>
    %115 = vector.broadcast %114 : vector<1x64xf32> to vector<64x64xf32>
    %116 = arith.addf %113, %115 : vector<64x64xf32>
    %117 = arith.addf %116, %0 : vector<64x64xf32>
    %c0_39 = arith.constant 0 : index
    %c0_40 = arith.constant 0 : index
    %118 = vector.load %arg9[%c0_39, %c0_40] : memref<1x64xf32, #tpu.memory_space<vmem>>, vector<1x64xf32>
    %c0_41 = arith.constant 0 : index
    %c0_42 = arith.constant 0 : index
    %119 = vector.load %arg10[%c0_41, %c0_42] : memref<1x64xf32, #tpu.memory_space<vmem>>, vector<1x64xf32>
    %cst_43 = arith.constant dense<0.000000e+00> : vector<64xf32>
    %120 = vector.multi_reduction <add>, %117, %cst_43 [1] : vector<64x64xf32> to vector<64xf32>
    %121 = vector.shape_cast %120 : vector<64xf32> to vector<64x1xf32>
    %cst_44 = arith.constant 6.400000e+01 : f32
    %122 = vector.broadcast %cst_44 : f32 to vector<64x1xf32>
    %123 = arith.divf %121, %122 : vector<64x1xf32>
    %124 = vector.broadcast %123 : vector<64x1xf32> to vector<64x64xf32>
    %125 = arith.subf %117, %124 : vector<64x64xf32>
    %126 = arith.mulf %125, %125 : vector<64x64xf32>
    %cst_45 = arith.constant dense<0.000000e+00> : vector<64xf32>
    %127 = vector.multi_reduction <add>, %126, %cst_45 [1] : vector<64x64xf32> to vector<64xf32>
    %128 = vector.shape_cast %127 : vector<64xf32> to vector<64x1xf32>
    %cst_46 = arith.constant 6.400000e+01 : f32
    %129 = vector.broadcast %cst_46 : f32 to vector<64x1xf32>
    %130 = arith.divf %128, %129 : vector<64x1xf32>
    %131 = vector.broadcast %123 : vector<64x1xf32> to vector<64x64xf32>
    %132 = arith.subf %117, %131 : vector<64x64xf32>
    %cst_47 = arith.constant 9.99999974E-6 : f32
    %133 = vector.broadcast %cst_47 : f32 to vector<64x1xf32>
    %134 = arith.addf %130, %133 : vector<64x1xf32>
    %135 = math.rsqrt %134 : vector<64x1xf32>
    %136 = vector.broadcast %135 : vector<64x1xf32> to vector<64x64xf32>
    %137 = arith.mulf %132, %136 : vector<64x64xf32>
    %138 = vector.broadcast %118 : vector<1x64xf32> to vector<64x64xf32>
    %139 = arith.mulf %137, %138 : vector<64x64xf32>
    %140 = vector.broadcast %119 : vector<1x64xf32> to vector<64x64xf32>
    %141 = arith.addf %139, %140 : vector<64x64xf32>
    %142 = arith.truncf %141 : vector<64x64xf32> to vector<64x64xbf16>
    %c0_48 = arith.constant 0 : index
    %c0_49 = arith.constant 0 : index
    %143 = vector.load %arg11[%c0_48, %c0_49] : memref<64x256xbf16, #tpu.memory_space<vmem>>, vector<64x256xbf16>
    %cst_50 = arith.constant dense<0.000000e+00> : vector<64x256xf32>
    %144 = tpu.matmul %142, %143, %cst_50 {dimension_numbers = #tpu.dot_dimension_numbers<[1], [0], [0], [1], [0, 0, 1, 1], [], []>} : vector<64x64xbf16>, vector<64x256xbf16>, vector<64x256xf32> -> vector<64x256xf32>
    %c0_51 = arith.constant 0 : index
    %c0_52 = arith.constant 0 : index
    %145 = vector.load %arg12[%c0_51, %c0_52] : memref<1x256xf32, #tpu.memory_space<vmem>>, vector<1x256xf32>
    %146 = vector.broadcast %145 : vector<1x256xf32> to vector<64x256xf32>
    %147 = arith.addf %144, %146 : vector<64x256xf32>
    %cst_53 = arith.constant 5.000000e-01 : f32
    %148 = vector.broadcast %cst_53 : f32 to vector<64x256xf32>
    %149 = arith.mulf %148, %147 : vector<64x256xf32>
    %cst_54 = arith.constant 0.707106769 : f32
    %150 = vector.broadcast %cst_54 : f32 to vector<64x256xf32>
    %151 = arith.mulf %147, %150 : vector<64x256xf32>
    %152 = math.erf %151 : vector<64x256xf32>
    %cst_55 = arith.constant 1.000000e+00 : f32
    %153 = vector.broadcast %cst_55 : f32 to vector<64x256xf32>
    %154 = arith.addf %153, %152 : vector<64x256xf32>
    %155 = arith.mulf %149, %154 : vector<64x256xf32>
    %156 = arith.truncf %155 : vector<64x256xf32> to vector<64x256xbf16>
    %c0_56 = arith.constant 0 : index
    %c0_57 = arith.constant 0 : index
    %157 = vector.load %arg13[%c0_56, %c0_57] : memref<256x64xbf16, #tpu.memory_space<vmem>>, vector<256x64xbf16>
    %cst_58 = arith.constant dense<0.000000e+00> : vector<64x64xf32>
    %158 = tpu.matmul %156, %157, %cst_58 {dimension_numbers = #tpu.dot_dimension_numbers<[1], [0], [0], [1], [0, 0, 1, 1], [], []>} : vector<64x256xbf16>, vector<256x64xbf16>, vector<64x64xf32> -> vector<64x64xf32>
    %c0_59 = arith.constant 0 : index
    %c0_60 = arith.constant 0 : index
    %159 = vector.load %arg14[%c0_59, %c0_60] : memref<1x64xf32, #tpu.memory_space<vmem>>, vector<1x64xf32>
    %160 = vector.broadcast %159 : vector<1x64xf32> to vector<64x64xf32>
    %161 = arith.addf %158, %160 : vector<64x64xf32>
    %162 = arith.addf %161, %117 : vector<64x64xf32>
    %c0_61 = arith.constant 0 : index
    %c0_62 = arith.constant 0 : index
    %163 = vector.load %arg17[%c0_61, %c0_62] : memref<64x64xf32, #tpu.memory_space<vmem>>, vector<64x64xf32>
    tpu.vector_store %arg17[%c0_61, %c0_62], %162 {strides = array<i32>} : memref<64x64xf32, #tpu.memory_space<vmem>>, vector<64x64xf32>,
    return
  }
}

</mosaic_0001>

<bundles_post_ra>
// kernel: tpu_custom_call.1
= control target key start
LH: loop header
LB: loop body
LE: loop exit
PB: predicated region body
PF: predicated region fallthrough
CT: control target
= control target key end

     0   :  { %s5224_s0 = inlined_call_operand.vmem [shape: s32[64,1], index: 0, kind: input, shape index: {}]   ;;  %s5225_s1 = inlined_call_operand.vmem [shape: f32[64,64], index: 1, kind: input, shape index: {}]   ;;  %s5226_s2 = inlined_call_operand.vmem [shape: bf16[64,128], index: 2, kind: input, shape index: {}]   ;;  %s5227_s3 = inlined_call_operand.vmem [shape: f32[1,128], index: 3, kind: input, shape index: {}]   ;;  %s5228_s4 = inlined_call_operand.vmem [shape: bf16[64,48], index: 4, kind: input, shape index: {}]   ;;  %s5229_s5 = inlined_call_operand.vmem [shape: bf16[64,64], index: 5, kind: input, shape index: {}]   ;;  %s5230_s6 = inlined_call_operand.vmem [shape: f32[1,64], index: 6, kind: input, shape index: {}]   ;;  %s5231_s7 = inlined_call_operand.vmem [shape: f32[1,64], index: 7, kind: input, shape index: {}]   ;;  %s5232_s8 = inlined_call_operand.vmem [shape: f32[1,64], index: 8, kind: input, shape index: {}]   ;;  %s5233_s9 = inlined_call_operand.vmem [shape: f32[1,64], index: 9, kind: input, shape index: {}]   ;;  %s5234_s10 = inlined_call_operand.vmem [shape: f32[1,64], index: 10, kind: input, shape index: {}]   ;;  %s5235_s11 = inlined_call_operand.vmem [shape: bf16[64,256], index: 11, kind: input, shape index: {}]   ;;  %s5236_s12 = inlined_call_operand.vmem [shape: f32[1,256], index: 12, kind: input, shape index: {}]   ;;  %s5237_s13 = inlined_call_operand.vmem [shape: bf16[256,64], index: 13, kind: input, shape index: {}]   ;;  %s5238_s14 = inlined_call_operand.vmem [shape: f32[1,64], index: 14, kind: input, shape index: {}]   ;;  %s5239_s15 = inlined_call_operand.vmem [shape: f32[128,128], index: 15, kind: input, shape index: {}]   ;;  %s5240_s16 = inlined_call_operand.vmem [shape: f32[128,64], index: 16, kind: input, shape index: {}]   ;;  %s5241_s17 = inlined_call_operand.hbm [shape: f32[64,64], index: 17, kind: output, shape index: {}]  }
   0x1   :  { %5244 = sst [smem:[#allocation5_spill]] %s5224_s0 }
   0x2   :  { %5245 = sst [smem:[#allocation6_spill]] %s5225_s1 }
   0x3   :  { %v3372_v0 = vld [vmem:[%s5226_s2] sm:$0xff]   ;;  %v3373_v1 = vld [vmem:[%s5226_s2 + $0x8] sm:$0xff]   ;;  %v3374_v2 = vld [vmem:[%s5226_s2 + $0x10] sm:$0xff]   ;;  %s5246_s0 = sld [smem:[#allocation6_spill]]  ;;  %vm109_vm0 = vcmask 523264  }
   0x4   :  { %3119 = vmatprep.subr.bf16.mxu0 %v3372_v0  ;;  %v3375_v6 = vld [vmem:[%s5226_s2 + $0x18] sm:$0xff]  }
   0x5   :  { %3120 = vmatpush3.bf16.msra.mxu0 %v3372_v0 }
   0x6   :  { %3121 = vmatprep.subr.bf16.mxu0 %v3373_v1 }
   0x9   :  { %v58_v3 = vld [vmem:[%s5246_s0] sm:$0xff]  ;;  %v59_v4 = vld [vmem:[%s5246_s0 + $0x8] sm:$0xff]  ;;  %3122 = vmatpush3.bf16.msra.mxu0 %v3373_v1  ;;  %v60_v7 = vld [vmem:[%s5246_s0 + $0x10] sm:$0xff] }
   0xa   :  { %v66_v5 = vpack.c.bf16 %v59_v4, %v58_v3  ;;  %3123 = vmatprep.subr.bf16.mxu0 %v3374_v2  ;;  %v61_v8 = vld [vmem:[%s5246_s0 + $0x18] sm:$0xff]  ;;  %v62_v9 = vld [vmem:[%s5246_s0 + $0x20] sm:$0xff]  ;;  %v63_v10 = vld [vmem:[%s5246_s0 + $0x28] sm:$0xff] }
   0xb   :  { %v67_v11 = vpack.c.bf16 %v61_v8, %v60_v7  ;;  %v68_v12 = vpack.c.bf16 %v63_v10, %v62_v9  ;;  %v64_v13 = vld [vmem:[%s5246_s0 + $0x30] sm:$0xff]  ;;  %v65_v14 = vld [vmem:[%s5246_s0 + $0x38] sm:$0xff] }
   0xc   :  { %3127 = vmatprep.mubr.msk.bf16.mxu0 %vm109_vm0, %v66_v5  ;;  %v69_v15 = vpack.c.bf16 %v65_v14, %v64_v13 }
   0xd   :  { %3124 = vmatpush3.bf16.msra.mxu0 %v3374_v2 }
   0xe   :  { %3125 = vmatprep.subr.bf16.mxu0 %v3375_v6 }
  0x11   :  { %3126 = vmatpush3.bf16.msra.mxu0 %v3375_v6 }
  0x14   :  { %3128 = vmatmul.mubr.msk.bf16.vlgmr.msra.gmra.mrb[0].mxu0 %vm109_vm0, %v67_v11 }
  0x15   :  { %3131 = vmatprep.mubr.msk.bf16.mxu0 %vm109_vm0, %v68_v12 }
  0x16   :  { %22 = vsyncpa [#allocation3], 0  ;;  %v2910_v16 = vld [vmem:[%s5227_s3] ss:$0 sm:$0xff]  ;;  %vm309_vm1 = vcmask 786048   ;;  %vm187_vm2 = vcmask 654848  }
  0x17   :  { %vm551_vm3 = vcmask 1048448   ;;  %vm430_vm4 = vcmask 917248   ;;  %s3699_s3 = smov 48   ;;  %s3700_s7 = smov 64   ;;  %vm268_vm5 = vcmask 130048  }
  0x18   :  { %s3701_s18 = smov 16   ;;  %s3702_s1 = smov 32  }
  0x19   :  { %s5247_s20 = sld [smem:[#allocation5_spill]]  ;;  %s3705_s27 = smov 96  }
  0x1a   :  { %s3706_s28 = smov 112  }
  0x1c   :  { %3132 = vmatmul.mubr.msk.bf16.gmra.mrb[4].mxu0 %vm109_vm0, %v69_v15 }
  0xe7   :  { %v3129_v17 = vpop.f32.mrb[0].mxu0 }
  0xe8   :  { %v3843_v18 = vadd.f32 %v3129_v17, %v2910_v16  ;;  %v156_v19 = vpop.f32.mrb[1].mxu0 }
  0xe9   :  { %v3130_v20 = vpop.f32.mrb[2].mxu0  ;;  %v3849_v24 = vadd.f32 %v2910_v16, %v156_v19 }
  0xea   :  { %v159_v21 = vpop.f32.mrb[3].mxu0  ;;  %v316_v22 = vsel %vm309_vm1, %v3843_v18, -inf  ;;  %v194_v23 = vsel %vm187_vm2, %v3843_v18, -inf  ;;  %v3853_v26 = vadd.f32 %v3130_v20, %v2910_v16  ;;  %v558_v28 = vsel %vm551_vm3, %v3843_v18, -inf }
  0xeb   :  { %v3851_v25 = vadd.f32 %v2910_v16, %v159_v21  ;;  %317 = vmax.xlane.f32.xlu1 %v316_v22  ;;  %195 = vmax.xlane.f32.xlu0 %v194_v23  ;;  %v437_v29 = vsel %vm430_vm4, %v3843_v18, -inf  ;;  %v310_v35 = vsel %vm309_vm1, %v3849_v24, -inf  ;;  %v188_v36 = vsel %vm187_vm2, %v3849_v24, -inf }
  0xec   :  { %v1046_v31 = vpack.c.bf16 %v3853_v26, %v3843_v18  ;;  %v197_v42 = vsel %vm187_vm2, %v3853_v26, -inf  ;;  %v431_v43 = vsel %vm430_vm4, %v3849_v24, -inf  ;;  %v561_v45 = vsel %vm551_vm3, %v3853_v26, -inf }
  0xed   :  { %v1045_v27 = vpack.c.bf16 %v3851_v25, %v3849_v24  ;;  %v552_v46 = vsel %vm551_vm3, %v3849_v24, -inf  ;;  %v313_v47 = vsel %vm309_vm1, %v3851_v25, -inf  ;;  %v319_v48 = vsel %vm309_vm1, %v3853_v26, -inf }
  0xee   :  { %v434_v49 = vsel %vm430_vm4, %v3851_v25, -inf  ;;  %v440_v50 = vsel %vm430_vm4, %v3853_v26, -inf  ;;  %v555_v51 = vsel %vm551_vm3, %v3851_v25, -inf  ;;  %v191_v52 = vsel %vm187_vm2, %v3851_v25, -inf }
  0xef   :  { %559 = vmax.xlane.f32.xlu1 %v558_v28  ;;  %438 = vmax.xlane.f32.xlu0 %v437_v29  ;;  %v3133_v30 = vpop.f32.mrb[4].mxu0 }
  0xf0   :  { %3135 = vmatprep.subr.bf16.mxu1 %v1045_v27  ;;  %v172_v32 = vpop.f32.mrb[5].mxu0  ;;  %v3873_v40 = vadd.f32 %v3133_v30, %v2910_v16 }
  0xf1   :  { %3136 = vmatpush3.bf16.msra.mxu1 %v1045_v27  ;;  %v3863_v33 = vadd.f32 %v2910_v16, %v172_v32  ;;  %v3134_v34 = vpop.f32.mrb[6].mxu0 }
  0xf2   :  { %3137 = vmatprep.subr.bf16.mxu1 %v1046_v31  ;;  %v3869_v37 = vadd.f32 %v3134_v34, %v2910_v16  ;;  %v175_v38 = vpop.f32.mrb[7].mxu0  ;;  %v206_v53 = vsel %vm187_vm2, %v3873_v40, -inf  ;;  %v328_v54 = vsel %vm309_vm1, %v3873_v40, -inf  ;;  %v570_v55 = vsel %vm551_vm3, %v3873_v40, -inf }
  0xf3   :  { %311 = vmax.xlane.f32.xlu1 %v310_v35  ;;  %189 = vmax.xlane.f32.xlu0 %v188_v36  ;;  %v3871_v39 = vadd.f32 %v2910_v16, %v175_v38  ;;  %v449_v56 = vsel %vm430_vm4, %v3873_v40, -inf  ;;  %v200_v57 = vsel %vm187_vm2, %v3863_v33, -inf  ;;  %v322_v58 = vsel %vm309_vm1, %v3863_v33, -inf }
  0xf4   :  { %v1048_v44 = vpack.c.bf16 %v3869_v37, %v3873_v40  ;;  %v564_v59 = vsel %vm551_vm3, %v3863_v33, -inf  ;;  %v443_v60 = vsel %vm430_vm4, %v3863_v33, -inf  ;;  %v209_v61 = vsel %vm187_vm2, %v3869_v37, -inf }
  0xf5   :  { %3138 = vmatpush3.bf16.msra.mxu1 %v1046_v31  ;;  %v1047_v41 = vpack.c.bf16 %v3871_v39, %v3863_v33  ;;  %v331_v62 = vsel %vm309_vm1, %v3869_v37, -inf  ;;  %v573_v63 = vsel %vm551_vm3, %v3869_v37, -inf  ;;  %v452_v0 = vsel %vm430_vm4, %v3869_v37, -inf }
  0xf6   :  { %v203_v1 = vsel %vm187_vm2, %v3871_v39, -inf  ;;  %v325_v2 = vsel %vm309_vm1, %v3871_v39, -inf  ;;  %v567_v3 = vsel %vm551_vm3, %v3871_v39, -inf  ;;  %v446_v4 = vsel %vm430_vm4, %v3871_v39, -inf }
  0xf7   :  { %198 = vmax.xlane.f32.xlu1 %v197_v42  ;;  %432 = vmax.xlane.f32.xlu0 %v431_v43 }
  0xf8   :  { %3139 = vmatprep.subr.bf16.mxu1 %v1047_v41 }
  0xf9   :  { %3140 = vmatpush3.bf16.msra.mxu1 %v1047_v41 }
  0xfa   :  { %3141 = vmatprep.subr.bf16.mxu1 %v1048_v44 }
  0xfb   :  { %562 = vmax.xlane.f32.xlu1 %v561_v45  ;;  %553 = vmax.xlane.f32.xlu0 %v552_v46 }
  0xfd   :  { %3142 = vmatpush3.bf16.msra.mxu1 %v1048_v44 }
  0xff   :  { %314 = vmax.xlane.f32.xlu1 %v313_v47  ;;  %320 = vmax.xlane.f32.xlu0 %v319_v48 }
 0x103   :  { %435 = vmax.xlane.f32.xlu1 %v434_v49  ;;  %441 = vmax.xlane.f32.xlu0 %v440_v50 }
 0x107   :  { %556 = vmax.xlane.f32.xlu1 %v555_v51  ;;  %192 = vmax.xlane.f32.xlu0 %v191_v52 }
 0x10b   :  { %207 = vmax.xlane.f32.xlu1 %v206_v53  ;;  %329 = vmax.xlane.f32.xlu0 %v328_v54 }
 0x10f   :  { %571 = vmax.xlane.f32.xlu1 %v570_v55  ;;  %450 = vmax.xlane.f32.xlu0 %v449_v56 }
 0x113   :  { %201 = vmax.xlane.f32.xlu1 %v200_v57  ;;  %323 = vmax.xlane.f32.xlu0 %v322_v58 }
 0x117   :  { %565 = vmax.xlane.f32.xlu1 %v564_v59  ;;  %444 = vmax.xlane.f32.xlu0 %v443_v60 }
 0x11b   :  { %210 = vmax.xlane.f32.xlu1 %v209_v61  ;;  %332 = vmax.xlane.f32.xlu0 %v331_v62 }
 0x11f   :  { %574 = vmax.xlane.f32.xlu1 %v573_v63  ;;  %453 = vmax.xlane.f32.xlu0 %v452_v0 }
 0x123   :  { %204 = vmax.xlane.f32.xlu1 %v203_v1  ;;  %326 = vmax.xlane.f32.xlu0 %v325_v2 }
 0x127   :  { %568 = vmax.xlane.f32.xlu1 %v567_v3  ;;  %447 = vmax.xlane.f32.xlu0 %v446_v4 }
 0x178   :  { %v318_v5 = vpop.xlane.xlu1 %317  ;;  %v196_v6 = vpop.xlane.xlu0 %195 }
 0x179   :  { %v336_v7 = vsub.f32 %v3843_v18, %v318_v5  ;;  %v214_v8 = vsub.f32 %v3843_v18, %v196_v6 }
 0x17b   :  { %v346_v9 = vmul.f32 1.442695, %v336_v7  ;;  %v224_v10 = vmul.f32 1.442695, %v214_v8 }
 0x17c   :  { %v560_v11 = vpop.xlane.xlu1 %559  ;;  %v439_v12 = vpop.xlane.xlu0 %438 }
 0x17d   :  { %3412 = vpow2.f32 %v346_v9  ;;  %v578_v13 = vsub.f32 %v3843_v18, %v560_v11  ;;  %v457_v14 = vsub.f32 %v3843_v18, %v439_v12 }
 0x17e   :  { %3414 = vpow2.f32 %v224_v10 }
 0x17f   :  { %v588_v15 = vmul.f32 1.442695, %v578_v13  ;;  %v467_v16 = vmul.f32 1.442695, %v457_v14 }
 0x180   :  { %v312_v17 = vpop.xlane.xlu1 %311  ;;  %v190_v19 = vpop.xlane.xlu0 %189 }
 0x181   :  { %3416 = vpow2.f32 %v588_v15  ;;  %v334_v20 = vsub.f32 %v3849_v24, %v312_v17  ;;  %v212_v21 = vsub.f32 %v3849_v24, %v190_v19 }
 0x182   :  { %3418 = vpow2.f32 %v467_v16 }
 0x183   :  { %v342_v22 = vmul.f32 1.442695, %v334_v20  ;;  %v220_v23 = vmul.f32 1.442695, %v212_v21 }
 0x184   :  { %v199_v27 = vpop.xlane.xlu1 %198  ;;  %v433_v28 = vpop.xlane.xlu0 %432 }
 0x185   :  { %3420 = vpow2.f32 %v342_v22  ;;  %v215_v29 = vsub.f32 %v3853_v26, %v199_v27  ;;  %v455_v18 = vsub.f32 %v3849_v24, %v433_v28 }
 0x186   :  { %3422 = vpow2.f32 %v220_v23 }
 0x187   :  { %v3939_v30 = vpop.eup %3412  ;;  %v226_v31 = vmul.f32 1.442695, %v215_v29  ;;  %v463_v32 = vmul.f32 1.442695, %v455_v18 }
 0x188   :  { %v3941_v34 = vpop.eup %3414  ;;  %370 = vrot.lane.b32.xlu1 %v3939_v30, %s3699_s3  ;;  %v563_v35 = vpop.xlane.xlu1 %562 }
 0x189   :  { %v554_v36 = vpop.xlane.xlu0 %553  ;;  %3424 = vpow2.f32 %v226_v31  ;;  %v579_v38 = vsub.f32 %v3853_v26, %v563_v35  ;;  %248 = vrot.lane.b32.xlu0 %v3941_v34, %s3700_s7 }
 0x18a   :  { %v576_v41 = vsub.f32 %v3849_v24, %v554_v36  ;;  %3426 = vpow2.f32 %v463_v32 }
 0x18b   :  { %v3949_v42 = vpop.eup %3416  ;;  %v590_v43 = vmul.f32 1.442695, %v579_v38 }
 0x18c   :  { %v584_v44 = vmul.f32 1.442695, %v576_v41  ;;  %v3951_v45 = vpop.eup %3418  ;;  %612 = vrot.lane.b32.xlu1 %v3949_v42, %s3701_s18  ;;  %v315_v46 = vpop.xlane.xlu1 %314 }
 0x18d   :  { %v321_v47 = vpop.xlane.xlu0 %320  ;;  %3428 = vpow2.f32 %v590_v43  ;;  %491 = vrot.lane.b32.xlu0 %v3951_v45, %s3702_s1  ;;  %v335_v59 = vsub.f32 %v3851_v25, %v315_v46 }
 0x18e   :  { %v337_v24 = vsub.f32 %v3853_v26, %v321_v47  ;;  %3430 = vpow2.f32 %v584_v44 }
 0x18f   :  { %v3958_v48 = vpop.eup %3420  ;;  %v344_v1 = vmul.f32 1.442695, %v335_v59 }
 0x190   :  { %v348_v49 = vmul.f32 1.442695, %v337_v24  ;;  %v3960_v50 = vpop.eup %3422  ;;  %366 = vrot.lane.b32.xlu1 %v3958_v48, %s3699_s3  ;;  %v436_v51 = vpop.xlane.xlu1 %435 }
 0x191   :  { %v442_v52 = vpop.xlane.xlu0 %441  ;;  %244 = vrot.lane.b32.xlu0 %v3960_v50, %s3700_s7  ;;  %v456_v2 = vsub.f32 %v3851_v25, %v436_v51 }
 0x192   :  { %v458_v53 = vsub.f32 %v3853_v26, %v442_v52  ;;  %3432 = vpow2.f32 %v348_v49 }
 0x193   :  { %v3967_v54 = vpop.eup %3424  ;;  %v465_v8 = vmul.f32 1.442695, %v456_v2 }
 0x194   :  { %v469_v55 = vmul.f32 1.442695, %v458_v53  ;;  %v3969_v56 = vpop.eup %3426  ;;  %250 = vrot.lane.b32.xlu1 %v3967_v54, %s3700_s7  ;;  %v557_v57 = vpop.xlane.xlu1 %556 }
 0x195   :  { %v193_v58 = vpop.xlane.xlu0 %192  ;;  %487 = vrot.lane.b32.xlu0 %v3969_v56, %s3702_s1  ;;  %v577_v9 = vsub.f32 %v3851_v25, %v557_v57 }
 0x196   :  { %v213_v60 = vsub.f32 %v3851_v25, %v193_v58  ;;  %3434 = vpow2.f32 %v469_v55 }
 0x197   :  { %v3977_v26 = vpop.eup %3428  ;;  %v586_v15 = vmul.f32 1.442695, %v577_v9 }
 0x198   :  { %v222_v61 = vmul.f32 1.442695, %v213_v60  ;;  %v3979_v62 = vpop.eup %3430  ;;  %614 = vrot.lane.b32.xlu1 %v3977_v26, %s3701_s18  ;;  %v208_v63 = vpop.xlane.xlu1 %207 }
 0x199   :  { %v330_v0 = vpop.xlane.xlu0 %329  ;;  %608 = vrot.lane.b32.xlu0 %v3979_v62, %s3701_s18  ;;  %v218_v16 = vsub.f32 %v3873_v40, %v208_v63 }
 0x19a   :  { %v340_v3 = vsub.f32 %v3873_v40, %v330_v0  ;;  %3436 = vpow2.f32 %v222_v61 }
 0x19b   :  { %3438 = vpow2.f32 %v344_v1  ;;  %v232_v22 = vmul.f32 1.442695, %v218_v16 }
 0x19c   :  { %v354_v4 = vmul.f32 1.442695, %v340_v3  ;;  %v3987_v5 = vpop.eup %3432  ;;  %v572_v6 = vpop.xlane.xlu1 %571 }
 0x19d   :  { %v451_v7 = vpop.xlane.xlu0 %450  ;;  %372 = vrot.lane.b32.xlu0 %v3987_v5, %s3699_s3  ;;  %v582_v23 = vsub.f32 %v3873_v40, %v572_v6 }
 0x19e   :  { %v461_v10 = vsub.f32 %v3873_v40, %v451_v7  ;;  %3440 = vpow2.f32 %v354_v4 }
 0x19f   :  { %3442 = vpow2.f32 %v465_v8  ;;  %v596_v32 = vmul.f32 1.442695, %v582_v23 }
 0x1a0   :  { %v475_v11 = vmul.f32 1.442695, %v461_v10  ;;  %v3993_v12 = vpop.eup %3434  ;;  %v202_v13 = vpop.xlane.xlu1 %201 }
 0x1a1   :  { %v324_v14 = vpop.xlane.xlu0 %323  ;;  %493 = vrot.lane.b32.xlu0 %v3993_v12, %s3702_s1  ;;  %v216_v35 = vsub.f32 %v3863_v33, %v202_v13 }
 0x1a2   :  { %v338_v25 = vsub.f32 %v3863_v33, %v324_v14  ;;  %3444 = vpow2.f32 %v475_v11 }
 0x1a3   :  { %3446 = vpow2.f32 %v586_v15  ;;  %v228_v46 = vmul.f32 1.442695, %v216_v35 }
 0x1a4   :  { %v350_v17 = vmul.f32 1.442695, %v338_v25  ;;  %v3999_v19 = vpop.eup %3436  ;;  %v566_v20 = vpop.xlane.xlu1 %565 }
 0x1a5   :  { %v445_v21 = vpop.xlane.xlu0 %444  ;;  %246 = vrot.lane.b32.xlu1 %v3999_v19, %s3700_s7  ;;  %v4005_v28 = vpop.eup %3438  ;;  %v580_v47 = vsub.f32 %v3863_v33, %v566_v20 }
 0x1a6   :  { %v459_v27 = vsub.f32 %v3863_v33, %v445_v21  ;;  %3448 = vpow2.f32 %v350_v17 }
 0x1a7   :  { %3450 = vpow2.f32 %v232_v22  ;;  %v592_v57 = vmul.f32 1.442695, %v580_v47 }
 0x1a8   :  { %v471_v29 = vmul.f32 1.442695, %v459_v27  ;;  %v4007_v18 = vpop.eup %3440  ;;  %v211_v36 = vpop.xlane.xlu1 %210 }
 0x1a9   :  { %v333_v31 = vpop.xlane.xlu0 %332  ;;  %368 = vrot.lane.b32.xlu1 %v4005_v28, %s3699_s3  ;;  %378 = vrot.lane.b32.xlu0 %v4007_v18, %s3699_s3  ;;  %v4015_v38 = vpop.eup %3442  ;;  %v219_v33 = vsub.f32 %v3869_v37, %v211_v36 }
 0x1aa   :  { %v341_v40 = vsub.f32 %v3869_v37, %v333_v31  ;;  %3452 = vpow2.f32 %v471_v29 }
 0x1ab   :  { %3454 = vpow2.f32 %v596_v32  ;;  %v234_v0 = vmul.f32 1.442695, %v219_v33 }
 0x1ac   :  { %v356_v41 = vmul.f32 1.442695, %v341_v40  ;;  %v4017_v43 = vpop.eup %3444  ;;  %v575_v51 = vpop.xlane.xlu1 %574 }
 0x1ad   :  { %v454_v44 = vpop.xlane.xlu0 %453  ;;  %489 = vrot.lane.b32.xlu1 %v4015_v38, %s3702_s1  ;;  %499 = vrot.lane.b32.xlu0 %v4017_v43, %s3702_s1  ;;  %v4025_v49 = vpop.eup %3446  ;;  %v583_v3 = vsub.f32 %v3869_v37, %v575_v51 }
 0x1ae   :  { %v462_v24 = vsub.f32 %v3869_v37, %v454_v44  ;;  %3456 = vpow2.f32 %v356_v41 }
 0x1af   :  { %3458 = vpow2.f32 %v228_v46  ;;  %v598_v8 = vmul.f32 1.442695, %v583_v3 }
 0x1b0   :  { %v477_v52 = vmul.f32 1.442695, %v462_v24  ;;  %v4027_v53 = vpop.eup %3448  ;;  %v205_v1 = vpop.xlane.xlu1 %204 }
 0x1b1   :  { %v327_v55 = vpop.xlane.xlu0 %326  ;;  %610 = vrot.lane.b32.xlu1 %v4025_v49, %s3701_s18  ;;  %374 = vrot.lane.b32.xlu0 %v4027_v53, %s3699_s3  ;;  %v4035_v59 = vpop.eup %3450  ;;  %v217_v9 = vsub.f32 %v3871_v39, %v205_v1 }
 0x1b2   :  { %v339_v58 = vsub.f32 %v3871_v39, %v327_v55  ;;  %3460 = vpow2.f32 %v477_v52 }
 0x1b3   :  { %3462 = vpow2.f32 %v592_v57  ;;  %v230_v13 = vmul.f32 1.442695, %v217_v9 }
 0x1b4   :  { %v352_v60 = vmul.f32 1.442695, %v339_v58  ;;  %v4037_v61 = vpop.eup %3452  ;;  %v569_v37 = vpop.xlane.xlu1 %568 }
 0x1b5   :  { %v448_v63 = vpop.xlane.xlu0 %447  ;;  %256 = vrot.lane.b32.xlu1 %v4035_v59, %s3700_s7  ;;  %495 = vrot.lane.b32.xlu0 %v4037_v61, %s3702_s1  ;;  %v4045_v4 = vpop.eup %3454  ;;  %v581_v14 = vsub.f32 %v3871_v39, %v569_v37 }
 0x1b6   :  { %v460_v2 = vsub.f32 %v3871_v39, %v448_v63  ;;  %3464 = vpow2.f32 %v352_v60  ;;  %v3703_v39 = vmov 0  }
 0x1b7   :  { %3466 = vpow2.f32 %v234_v0  ;;  %v594_v25 = vmul.f32 1.442695, %v581_v14  ;;  %3336 = vset.pattern.permute.xlu1 %v3703_v39  ;;  %3330 = vset.pattern.permute.xlu0 %v3703_v39 }
 0x1b8   :  { %v473_v6 = vmul.f32 1.442695, %v460_v2  ;;  %v4047_v7 = vpop.eup %3456 }
 0x1b9   :  { %620 = vrot.lane.b32.xlu1 %v4045_v4, %s3701_s18  ;;  %380 = vrot.lane.b32.xlu0 %v4047_v7, %s3699_s3  ;;  %v4054_v10 = vpop.eup %3458 }
 0x1ba   :  { %3468 = vpow2.f32 %v473_v6 }
 0x1bb   :  { %3470 = vpow2.f32 %v598_v8 }
 0x1bc   :  { %v4056_v11 = vpop.eup %3460  ;;  %3472 = vpow2.f32 %v230_v13 }
 0x1bd   :  { %252 = vrot.lane.b32.xlu1 %v4054_v10, %s3700_s7  ;;  %501 = vrot.lane.b32.xlu0 %v4056_v11, %s3702_s1  ;;  %v4063_v15 = vpop.eup %3462  ;;  %3474 = vpow2.f32 %v594_v25 }
 0x1c0   :  { %v4065_v16 = vpop.eup %3464 }
 0x1c1   :  { %616 = vrot.lane.b32.xlu1 %v4063_v15, %s3701_s18  ;;  %376 = vrot.lane.b32.xlu0 %v4065_v16, %s3699_s3  ;;  %v4071_v17 = vpop.eup %3466 }
 0x1c4   :  { %v4073_v20 = vpop.eup %3468 }
 0x1c5   :  { %258 = vrot.lane.b32.xlu1 %v4071_v17, %s3700_s7  ;;  %497 = vrot.lane.b32.xlu0 %v4073_v20, %s3702_s1  ;;  %v4081_v21 = vpop.eup %3470 }
 0x1c6   :  { %v4085_v22 = vpop.eup %3472 }
 0x1c7   :  { %v4089_v23 = vpop.eup %3474 }
 0x1c9   :  { %622 = vrot.lane.b32.xlu1 %v4081_v21, %s3701_s18 }
 0x1cd   :  { %254 = vrot.lane.b32.xlu1 %v4085_v22, %s3700_s7 }
 0x1d1   :  { %618 = vrot.lane.b32.xlu1 %v4089_v23, %s3701_s18 }
 0x1fa   :  { %v371_v27 = vpop.permute.xlu1 %370 }
 0x1fb   :  { %v249_v29 = vpop.permute.xlu0 %248  ;;  %v396_v31 = vsel %vm268_vm5, %v371_v27, 0.0 }
 0x1fc   :  { %397 = vadd.xlane.f32.xlu1 %v396_v31  ;;  %v275_v32 = vsel %vm268_vm5, %v249_v29, 0.0 }
 0x1fd   :  { %276 = vadd.xlane.f32.xlu0 %v275_v32 }
 0x1fe   :  { %v613_v35 = vpop.permute.xlu1 %612 }
 0x1ff   :  { %v492_v36 = vpop.permute.xlu0 %491  ;;  %v638_v40 = vsel %vm268_vm5, %v613_v35, 0.0 }
 0x200   :  { %639 = vadd.xlane.f32.xlu1 %v638_v40  ;;  %v517_v41 = vsel %vm268_vm5, %v492_v36, 0.0 }
 0x201   :  { %518 = vadd.xlane.f32.xlu0 %v517_v41 }
 0x202   :  { %v367_v44 = vpop.permute.xlu1 %366 }
 0x203   :  { %v245_v46 = vpop.permute.xlu0 %244  ;;  %v390_v55 = vsel %vm268_vm5, %v367_v44, 0.0 }
 0x204   :  { %v269_v47 = vsel %vm268_vm5, %v245_v46, 0.0 }
 0x205   :  { %270 = vadd.xlane.f32.xlu0 %v269_v47 }
 0x206   :  { %v251_v24 = vpop.permute.xlu1 %250 }
 0x207   :  { %v488_v51 = vpop.permute.xlu0 %487  ;;  %v278_v52 = vsel %vm268_vm5, %v251_v24, 0.0 }
 0x208   :  { %279 = vadd.xlane.f32.xlu1 %v278_v52  ;;  %v511_v60 = vsel %vm268_vm5, %v488_v51, 0.0 }
 0x209   :  { %391 = vadd.xlane.f32.xlu0 %v390_v55 }
 0x20a   :  { %v615_v57 = vpop.permute.xlu1 %614 }
 0x20b   :  { %v609_v33 = vpop.permute.xlu0 %608  ;;  %v641_v58 = vsel %vm268_vm5, %v615_v57, 0.0 }
 0x20c   :  { %642 = vadd.xlane.f32.xlu1 %v641_v58  ;;  %v632_v0 = vsel %vm268_vm5, %v609_v33, 0.0 }
 0x20d   :  { %512 = vadd.xlane.f32.xlu0 %v511_v60 }
 0x20f   :  { %v373_v63 = vpop.permute.xlu0 %372 }
 0x210   :  { %v399_v1 = vsel %vm268_vm5, %v373_v63, 0.0 }
 0x211   :  { %633 = vadd.xlane.f32.xlu0 %v632_v0 }
 0x213   :  { %v494_v2 = vpop.permute.xlu0 %493 }
 0x214   :  { %v520_v8 = vsel %vm268_vm5, %v494_v2, 0.0 }
 0x215   :  { %400 = vadd.xlane.f32.xlu0 %v399_v1 }
 0x217   :  { %v247_v3 = vpop.permute.xlu1 %246 }
 0x218   :  { %v272_v6 = vsel %vm268_vm5, %v247_v3, 0.0 }
 0x219   :  { %273 = vadd.xlane.f32.xlu1 %v272_v6  ;;  %521 = vadd.xlane.f32.xlu0 %v520_v8 }
 0x21b   :  { %v369_v9 = vpop.permute.xlu1 %368  ;;  %v379_v37 = vpop.permute.xlu0 %378 }
 0x21c   :  { %v393_v13 = vsel %vm268_vm5, %v369_v9, 0.0  ;;  %v408_v29 = vsel %vm268_vm5, %v379_v37, 0.0 }
 0x21d   :  { %394 = vadd.xlane.f32.xlu0 %v393_v13 }
 0x21f   :  { %v490_v14 = vpop.permute.xlu1 %489  ;;  %v500_v25 = vpop.permute.xlu0 %499 }
 0x220   :  { %v514_v27 = vsel %vm268_vm5, %v490_v14, 0.0  ;;  %v529_v36 = vsel %vm268_vm5, %v500_v25, 0.0 }
 0x221   :  { %515 = vadd.xlane.f32.xlu1 %v514_v27  ;;  %409 = vadd.xlane.f32.xlu0 %v408_v29  ;;  %v826_v27 = vld [vmem:[%s5247_s20] sm:$0xff]  ;;  %v827_v29 = vld [vmem:[%s5247_s20 + $0x8] sm:$0xff] }
 0x222   :  { %vm898_vm6 = vcmp.eq.s32.totalorder %v826_v27, 1  ;;  %vm899_vm7 = vcmp.eq.s32.totalorder %v827_v29, 1  ;;  %vm835_vm14 = vcmp.eq.s32.totalorder %v827_v29, 0  ;;  %vm834_vm15 = vcmp.eq.s32.totalorder %v826_v27, 0 }
 0x223   :  { %v611_v31 = vpop.permute.xlu1 %610  ;;  %v375_v32 = vpop.permute.xlu0 %374 }
 0x224   :  { %v635_v35 = vsel %vm268_vm5, %v611_v31, 0.0  ;;  %v402_v46 = vsel %vm268_vm5, %v375_v32, 0.0  ;;  %v4133_v31 = vld [vmem:[%s5247_s20 + $0x10] sm:$0xff]  ;;  %v4138_v32 = vld [vmem:[%s5247_s20 + $0x18] sm:$0xff] }
 0x225   :  { %636 = vadd.xlane.f32.xlu1 %v635_v35  ;;  %530 = vadd.xlane.f32.xlu0 %v529_v36  ;;  %v4143_v35 = vld [vmem:[%s5247_s20 + $0x30] sm:$0xff]  ;;  %v4148_v36 = vld [vmem:[%s5247_s20 + $0x38] sm:$0xff]  ;;  %vm900_vm8 = vcmp.eq.s32.totalorder %v4133_v31, 1  ;;  %vm901_vm9 = vcmp.eq.s32.totalorder %v4138_v32, 1  ;;  %vm837_vm3 = vcmp.eq.s32.totalorder %v4138_v32, 0  ;;  %vm836_vm4 = vcmp.eq.s32.totalorder %v4133_v31, 0 }
 0x226   :  { %vm904_vm10 = vcmp.eq.s32.totalorder %v4143_v35, 1  ;;  %vm905_vm11 = vcmp.eq.s32.totalorder %v4148_v36, 1 }
 0x227   :  { %v257_v40 = vpop.permute.xlu1 %256  ;;  %v496_v41 = vpop.permute.xlu0 %495 }
 0x228   :  { %v287_v44 = vsel %vm268_vm5, %v257_v40, 0.0  ;;  %v523_v52 = vsel %vm268_vm5, %v496_v41, 0.0  ;;  %v3704_v40 = vmov 0.0  }
 0x229   :  { %288 = vadd.xlane.f32.xlu1 %v287_v44  ;;  %403 = vadd.xlane.f32.xlu0 %v402_v46  ;;  %v906_v41 = vsel %vm898_vm6, 1.0, %v3704_v40  ;;  %v907_v44 = vsel %vm899_vm7, 1.0, %v3704_v40  ;;  %v830_v46 = vld [vmem:[%s5247_s20 + $0x20] sm:$0xff]  ;;  %vm840_vm6 = vcmp.eq.s32.totalorder %v4143_v35, 0  ;;  %vm841_vm7 = vcmp.eq.s32.totalorder %v4148_v36, 0 }
 0x22a   :  { %vm902_vm12 = vcmp.eq.s32.totalorder %v830_v46, 1  ;;  %vm838_vm2 = vcmp.eq.s32.totalorder %v830_v46, 0 }
 0x22b   :  { %v621_v47 = vpop.permute.xlu1 %620  ;;  %v381_v24 = vpop.permute.xlu0 %380 }
 0x22c   :  { %v650_v51 = vsel %vm268_vm5, %v621_v47, 0.0  ;;  %v411_v58 = vsel %vm268_vm5, %v381_v24, 0.0  ;;  %v831_v47 = vld [vmem:[%s5247_s20 + $0x28] sm:$0xff]  ;;  %v908_v24 = vsel %vm900_vm8, 1.0, %v3704_v40  ;;  %vm808_vm8 = vcmask 261120  }
 0x22d   :  { %651 = vadd.xlane.f32.xlu1 %v650_v51  ;;  %524 = vadd.xlane.f32.xlu0 %v523_v52  ;;  %v909_v51 = vsel %vm901_vm9, 1.0, %v3704_v40  ;;  %v3331_v52 = vpack.i.bf16 %v907_v44, %v906_v41  ;;  %vm903_vm13 = vcmp.eq.s32.totalorder %v831_v47, 1  ;;  %vm839_vm1 = vcmp.eq.s32.totalorder %v831_v47, 0 }
 0x22e   :  { %vm817_vm9 = vcmask 392192  }
 0x22f   :  { %v253_v55 = vpop.permute.xlu1 %252  ;;  %v502_v57 = vpop.permute.xlu0 %501 }
 0x230   :  { %v281_v33 = vsel %vm268_vm5, %v253_v55, 0.0  ;;  %v532_v37 = vsel %vm268_vm5, %v502_v57, 0.0  ;;  %v912_v55 = vsel %vm904_vm10, 1.0, %v3704_v40  ;;  %v913_v57 = vsel %vm905_vm11, 1.0, %v3704_v40 }
 0x231   :  { %282 = vadd.xlane.f32.xlu1 %v281_v33  ;;  %412 = vadd.xlane.f32.xlu0 %v411_v58  ;;  %v3337_v33 = vpack.i.bf16 %v909_v51, %v908_v24  ;;  %v910_v58 = vsel %vm902_vm12, 1.0, %v3704_v40 }
 0x233   :  { %v617_v60 = vpop.permute.xlu1 %616  ;;  %v377_v63 = vpop.permute.xlu0 %376 }
 0x234   :  { %v644_v0 = vsel %vm268_vm5, %v617_v60, 0.0  ;;  %v405_v1 = vsel %vm268_vm5, %v377_v63, 0.0  ;;  %v911_v60 = vsel %vm903_vm13, 1.0, %v3704_v40  ;;  %v3347_v63 = vpack.i.bf16 %v913_v57, %v912_v55 }
 0x235   :  { %645 = vadd.xlane.f32.xlu1 %v644_v0  ;;  %406 = vadd.xlane.f32.xlu0 %v405_v1  ;;  %v3342_v0 = vpack.i.bf16 %v911_v60, %v910_v58  ;;  %v4169_v1 = vsel %vm834_vm15, 1.0, %v3704_v40 }
 0x237   :  { %v259_v2 = vpop.permute.xlu1 %258  ;;  %v498_v3 = vpop.permute.xlu0 %497 }
 0x238   :  { %v290_v6 = vsel %vm268_vm5, %v259_v2, 0.0  ;;  %v526_v8 = vsel %vm268_vm5, %v498_v3, 0.0  ;;  %v4172_v2 = vsel %vm835_vm14, 1.0, %v3704_v40 }
 0x239   :  { %291 = vadd.xlane.f32.xlu1 %v290_v6  ;;  %527 = vadd.xlane.f32.xlu0 %v526_v8  ;;  %v3352_v3 = vpack.i.bf16 %v4172_v2, %v4169_v1  ;;  %v4177_v6 = vsel %vm838_vm2, 1.0, %v3704_v40  ;;  %v4180_v8 = vsel %vm839_vm1, 1.0, %v3704_v40 }
 0x23b   :  { %v623_v9 = vpop.permute.xlu1 %622 }
 0x23c   :  { %v653_v25 = vsel %vm268_vm5, %v623_v9, 0.0  ;;  %v3362_v9 = vpack.i.bf16 %v4180_v8, %v4177_v6 }
 0x23d   :  { %533 = vadd.xlane.f32.xlu0 %v532_v37 }
 0x23f   :  { %v255_v13 = vpop.permute.xlu1 %254 }
 0x240   :  { %v284_v14 = vsel %vm268_vm5, %v255_v13, 0.0 }
 0x241   :  { %285 = vadd.xlane.f32.xlu1 %v284_v14 }
 0x243   :  { %v619_v37 = vpop.permute.xlu1 %618 }
 0x244   :  { %v647_v13 = vsel %vm268_vm5, %v619_v37, 0.0 }
 0x245   :  { %654 = vadd.xlane.f32.xlu1 %v653_v25 }
 0x253   :  { %3332 = vperm.xlu0 %3330, %v3331_v52  }
 0x256   :  { %3338 = vperm.xlu1 %3336, %v3337_v33  }
 0x257   :  { %3348 = vperm.xlu0 %3330, %v3347_v63  }
 0x25a   :  { %3343 = vperm.xlu1 %3336, %v3342_v0  }
 0x27e   :  { %648 = vadd.xlane.f32.xlu1 %v647_v13 }
 0x289   :  { %v398_v14 = vpop.xlane.xlu1 %397 }
 0x28a   :  { %3476 = vrcp.f32 %v398_v14  ;;  %v277_v25 = vpop.xlane.xlu0 %276 }
 0x28b   :  { %3478 = vrcp.f32 %v277_v25 }
 0x28d   :  { %v640_v27 = vpop.xlane.xlu1 %639 }
 0x28e   :  { %3480 = vrcp.f32 %v640_v27  ;;  %v519_v29 = vpop.xlane.xlu0 %518 }
 0x28f   :  { %3482 = vrcp.f32 %v519_v29 }
 0x292   :  { %v271_v41 = vpop.xlane.xlu0 %270 }
 0x293   :  { %3484 = vrcp.f32 %v271_v41 }
 0x294   :  { %v3477_v44 = vpop.eup %3476 }
 0x295   :  { %v3479_v46 = vpop.eup %3478  ;;  %v424_v47 = vmul.f32 %v3477_v44, %v3939_v30  ;;  %v280_v30 = vpop.xlane.xlu1 %279 }
 0x296   :  { %v392_v24 = vpop.xlane.xlu0 %391  ;;  %v303_v51 = vmul.f32 %v3479_v46, %v3941_v34 }
 0x297   :  { %3486 = vrcp.f32 %v392_v24  ;;  %716 = vrot.lane.b32.xlu0 %v424_v47, %s3700_s7 }
 0x298   :  { %v3481_v52 = vpop.eup %3480  ;;  %684 = vrot.lane.b32.xlu1 %v303_v51, %s3700_s7 }
 0x299   :  { %v3483_v55 = vpop.eup %3482  ;;  %v666_v57 = vmul.f32 %v3481_v52, %v3949_v42  ;;  %v4197_v42 = vsel %vm836_vm4, 1.0, %v3704_v40  ;;  %v643_v0 = vpop.xlane.xlu1 %642 }
 0x29a   :  { %v513_v33 = vpop.xlane.xlu0 %512  ;;  %v545_v58 = vmul.f32 %v3483_v55, %v3951_v45  ;;  %v4200_v45 = vsel %vm837_vm3, 1.0, %v3704_v40 }
 0x29b   :  { %3488 = vrcp.f32 %v513_v33  ;;  %v3357_v31 = vpack.i.bf16 %v4200_v45, %v4197_v42 }
 0x29c   :  { %780 = vrot.lane.b32.xlu1 %v666_v57, %s3700_s7  ;;  %748 = vrot.lane.b32.xlu0 %v545_v58, %s3700_s7 }
 0x29d   :  { %v3485_v34 = vpop.eup %3484 }
 0x29e   :  { %v634_v60 = vpop.xlane.xlu0 %633  ;;  %v301_v63 = vmul.f32 %v3485_v34, %v3960_v50 }
 0x29f   :  { %3490 = vrcp.f32 %v634_v60 }
 0x2a0   :  { %680 = vrot.lane.b32.xlu1 %v301_v63, %s3700_s7  ;;  %3492 = vrcp.f32 %v280_v30 }
 0x2a1   :  { %v3487_v32 = vpop.eup %3486 }
 0x2a2   :  { %v401_v37 = vpop.xlane.xlu0 %400  ;;  %v422_v13 = vmul.f32 %v3487_v32, %v3958_v48 }
 0x2a3   :  { %3494 = vrcp.f32 %v401_v37 }
 0x2a4   :  { %712 = vrot.lane.b32.xlu1 %v422_v13, %s3700_s7  ;;  %3496 = vrcp.f32 %v643_v0 }
 0x2a5   :  { %v3489_v50 = vpop.eup %3488 }
 0x2a6   :  { %v274_v14 = vpop.xlane.xlu1 %273  ;;  %v522_v25 = vpop.xlane.xlu0 %521  ;;  %v543_v27 = vmul.f32 %v3489_v50, %v3969_v56 }
 0x2a7   :  { %3498 = vrcp.f32 %v522_v25 }
 0x2a8   :  { %744 = vrot.lane.b32.xlu1 %v543_v27, %s3700_s7  ;;  %3500 = vrcp.f32 %v274_v14 }
 0x2a9   :  { %v3491_v29 = vpop.eup %3490 }
 0x2aa   :  { %v395_v41 = vpop.xlane.xlu0 %394  ;;  %v664_v44 = vmul.f32 %v3491_v29, %v3979_v62  ;;  %v3493_v46 = vpop.eup %3492 }
 0x2ab   :  { %3502 = vrcp.f32 %v395_v41  ;;  %v304_v51 = vmul.f32 %v3493_v46, %v3967_v54 }
 0x2ac   :  { %776 = vrot.lane.b32.xlu1 %v664_v44, %s3700_s7 }
 0x2ad   :  { %v3495_v48 = vpop.eup %3494 }
 0x2ae   :  { %v516_v47 = vpop.xlane.xlu1 %515  ;;  %v410_v24 = vpop.xlane.xlu0 %409  ;;  %v425_v52 = vmul.f32 %v3495_v48, %v3987_v5 }
 0x2af   :  { %v3497_v56 = vpop.eup %3496  ;;  %3504 = vrcp.f32 %v516_v47 }
 0x2b0   :  { %686 = vrot.lane.b32.xlu1 %v304_v51, %s3700_s7  ;;  %718 = vrot.lane.b32.xlu0 %v425_v52, %s3700_s7  ;;  %v667_v33 = vmul.f32 %v3497_v56, %v3977_v26 }
 0x2b1   :  { %v3499_v55 = vpop.eup %3498 }
 0x2b2   :  { %v637_v57 = vpop.xlane.xlu1 %636  ;;  %v531_v62 = vpop.xlane.xlu0 %530  ;;  %v546_v30 = vmul.f32 %v3499_v55, %v3993_v12 }
 0x2b3   :  { %v3501_v58 = vpop.eup %3500  ;;  %3506 = vrcp.f32 %v637_v57 }
 0x2b4   :  { %782 = vrot.lane.b32.xlu1 %v667_v33, %s3700_s7  ;;  %3508 = vrcp.f32 %v410_v24  ;;  %750 = vrot.lane.b32.xlu0 %v546_v30, %s3700_s7  ;;  %v302_v34 = vmul.f32 %v3501_v58, %v3999_v19 }
 0x2b5   :  { %v3503_v60 = vpop.eup %3502 }
 0x2b6   :  { %v289_v54 = vpop.xlane.xlu1 %288  ;;  %v404_v5 = vpop.xlane.xlu0 %403  ;;  %v423_v32 = vmul.f32 %v3503_v60, %v4005_v28 }
 0x2b7   :  { %3510 = vrcp.f32 %v289_v54 }
 0x2b8   :  { %682 = vrot.lane.b32.xlu1 %v302_v34, %s3700_s7  ;;  %3512 = vrcp.f32 %v531_v62 }
 0x2b9   :  { %v3505_v0 = vpop.eup %3504 }
 0x2ba   :  { %v652_v63 = vpop.xlane.xlu1 %651  ;;  %v525_v26 = vpop.xlane.xlu0 %524  ;;  %v544_v19 = vmul.f32 %v3505_v0, %v4015_v38  ;;  %v848_v0 = vsel %vm840_vm6, 1.0, %v3704_v40 }
 0x2bb   :  { %3514 = vrcp.f32 %v652_v63 }
 0x2bc   :  { %714 = vrot.lane.b32.xlu1 %v423_v32, %s3700_s7  ;;  %3516 = vrcp.f32 %v404_v5 }
 0x2bd   :  { %v3507_v12 = vpop.eup %3506 }
 0x2be   :  { %v283_v37 = vpop.xlane.xlu1 %282  ;;  %v413_v13 = vpop.xlane.xlu0 %412  ;;  %v665_v50 = vmul.f32 %v3507_v12, %v4025_v49  ;;  %v849_v12 = vsel %vm841_vm7, 1.0, %v3704_v40 }
 0x2bf   :  { %v3509_v14 = vpop.eup %3508  ;;  %3518 = vrcp.f32 %v283_v37 }
 0x2c0   :  { %778 = vrot.lane.b32.xlu0 %v665_v50, %s3700_s7  ;;  %746 = vrot.lane.b32.xlu1 %v544_v19, %s3700_s7  ;;  %3520 = vrcp.f32 %v525_v26  ;;  %v428_v41 = vmul.f32 %v3509_v14, %v4007_v18 }
 0x2c1   :  { %v3511_v25 = vpop.eup %3510 }
 0x2c2   :  { %v646_v28 = vpop.xlane.xlu1 %645  ;;  %v407_v27 = vpop.xlane.xlu0 %406  ;;  %v307_v29 = vmul.f32 %v3511_v25, %v4035_v59 }
 0x2c3   :  { %v3513_v44 = vpop.eup %3512  ;;  %3522 = vrcp.f32 %v646_v28 }
 0x2c4   :  { %692 = vrot.lane.b32.xlu0 %v307_v29, %s3700_s7  ;;  %724 = vrot.lane.b32.xlu1 %v428_v41, %s3700_s7  ;;  %3524 = vrcp.f32 %v413_v13  ;;  %v549_v48 = vmul.f32 %v3513_v44, %v4017_v43 }
 0x2c5   :  { %v3515_v38 = vpop.eup %3514 }
 0x2c6   :  { %v292_v49 = vpop.xlane.xlu1 %291  ;;  %v670_v46 = vmul.f32 %v3515_v38, %v4045_v4  ;;  %v3517_v47 = vpop.eup %3516 }
 0x2c7   :  { %3526 = vrcp.f32 %v292_v49  ;;  %v528_v24 = vpop.xlane.xlu0 %527  ;;  %v426_v51 = vmul.f32 %v3517_v47, %v4027_v53 }
 0x2c8   :  { %788 = vrot.lane.b32.xlu0 %v670_v46, %s3700_s7  ;;  %756 = vrot.lane.b32.xlu1 %v549_v48, %s3700_s7  ;;  %3528 = vrcp.f32 %v407_v27 }
 0x2c9   :  { %v3519_v18 = vpop.eup %3518  ;;  %3530 = vrcp.f32 %v528_v24 }
 0x2ca   :  { %v305_v59 = vmul.f32 %v3519_v18, %v4054_v10  ;;  %v3521_v52 = vpop.eup %3520 }
 0x2cb   :  { %v534_v43 = vpop.xlane.xlu0 %533  ;;  %v547_v57 = vmul.f32 %v3521_v52, %v4037_v61 }
 0x2cc   :  { %688 = vrot.lane.b32.xlu1 %v305_v59, %s3700_s7  ;;  %720 = vrot.lane.b32.xlu0 %v426_v51, %s3700_s7 }
 0x2cd   :  { %v3523_v4 = vpop.eup %3522 }
 0x2ce   :  { %v286_v56 = vpop.xlane.xlu1 %285  ;;  %v668_v55 = vmul.f32 %v3523_v4, %v4063_v15  ;;  %v3525_v62 = vpop.eup %3524 }
 0x2cf   :  { %3532 = vrcp.f32 %v286_v56  ;;  %v429_v33 = vmul.f32 %v3525_v62, %v4047_v7 }
 0x2d0   :  { %784 = vrot.lane.b32.xlu0 %v668_v55, %s3700_s7  ;;  %752 = vrot.lane.b32.xlu1 %v547_v57, %s3700_s7  ;;  %3534 = vrcp.f32 %v534_v43 }
 0x2d1   :  { %v3527_v53 = vpop.eup %3526 }
 0x2d2   :  { %v308_v10 = vmul.f32 %v3527_v53, %v4071_v17  ;;  %v3529_v58 = vpop.eup %3528  ;;  %v3333_v60 = vpop.permute.xlu0 %3332 }
 0x2d3   :  { %v427_v15 = vmul.f32 %v3529_v58, %v4065_v16  ;;  %v3531_v61 = vpop.eup %3530  ;;  %v655_v16 = vpop.xlane.xlu1 %654  ;;  %v3334_v50 = vunpack.i.l.bf16 %v3333_v60  ;;  %v3335_v46 = vunpack.i.h.bf16 %v3333_v60 }
 0x2d4   :  { %694 = vrot.lane.b32.xlu0 %v308_v10, %s3700_s7  ;;  %726 = vrot.lane.b32.xlu1 %v429_v33, %s3700_s7  ;;  %v548_v5 = vmul.f32 %v3531_v61, %v4073_v20 }
 0x2d6   :  { %v4265_v26 = vpop.permute.xlu0 %3348 }
 0x2d7   :  { %v4261_v17 = vpop.permute.xlu1 %3338 }
 0x2d8   :  { %722 = vrot.lane.b32.xlu1 %v427_v15, %s3700_s7  ;;  %v3340_v55 = vunpack.i.l.bf16 %v4261_v17 }
 0x2d9   :  { %v3533_v30 = vpop.eup %3532 }
 0x2da   :  { %v306_v54 = vmul.f32 %v3533_v30, %v4085_v22  ;;  %v3535_v34 = vpop.eup %3534 }
 0x2db   :  { %v550_v7 = vmul.f32 %v3535_v34, %v4056_v11  ;;  %v4263_v20 = vpop.permute.xlu1 %3343 }
 0x2dc   :  { %690 = vrot.lane.b32.xlu0 %v306_v54, %s3700_s7  ;;  %754 = vrot.lane.b32.xlu1 %v548_v5, %s3700_s7  ;;  %v3345_v30 = vunpack.i.l.bf16 %v4263_v20 }
 0x2e0   :  { %758 = vrot.lane.b32.xlu1 %v550_v7, %s3700_s7 }
 0x2e4   :  { %3353 = vperm.xlu1 %3336, %v3352_v3  }
 0x2e8   :  { %3363 = vperm.xlu1 %3336, %v3362_v9  }
 0x309   :  { %v717_v6 = vpop.permute.xlu0 %716 }
 0x30b   :  { %v649_v22 = vpop.xlane.xlu1 %648 }
 0x30c   :  { %3536 = vrcp.f32 %v649_v22 }
 0x30d   :  { %3538 = vrcp.f32 %v655_v16  ;;  %v3350_v16 = vunpack.i.l.bf16 %v4265_v26 }
 0x30e   :  { %v749_v13 = vpop.permute.xlu0 %748 }
 0x30f   :  { %v685_v11 = vpop.permute.xlu1 %684 }
 0x310   :  { %v802_v47 = vsel %vm268_vm5, %v685_v11, %v717_v6  ;;  %v3346_v6 = vunpack.i.h.bf16 %v4263_v20 }
 0x311   :  { %v811_v52 = vsel %vm808_vm8, %v802_v47, %v749_v13 }
 0x313   :  { %v781_v63 = vpop.permute.xlu1 %780 }
 0x314   :  { %v820_v43 = vsel %vm817_vm9, %v811_v52, %v781_v63 }
 0x315   :  { %v956_v62 = vmul.f32 %v3340_v55, %v820_v43 }
 0x316   :  { %v3537_v32 = vpop.eup %3536 }
 0x317   :  { %v681_v1 = vpop.permute.xlu1 %680  ;;  %v669_v2 = vmul.f32 %v3537_v32, %v4089_v23  ;;  %v3539_v3 = vpop.eup %3538  ;;  %v3367_v23 = vpack.i.bf16 %v849_v12, %v848_v0 }
 0x318   :  { %v671_v9 = vmul.f32 %v3539_v3, %v4081_v21 }
 0x319   :  { %786 = vrot.lane.b32.xlu0 %v669_v2, %s3700_s7 }
 0x31b   :  { %v713_v8 = vpop.permute.xlu1 %712 }
 0x31c   :  { %v800_v21 = vsel %vm268_vm5, %v681_v1, %v713_v8 }
 0x31d   :  { %790 = vrot.lane.b32.xlu0 %v671_v9, %s3700_s7 }
 0x31f   :  { %v745_v37 = vpop.permute.xlu1 %744 }
 0x320   :  { %v809_v35 = vsel %vm808_vm8, %v800_v21, %v745_v37 }
 0x321   :  { %3358 = vperm.xlu0 %3330, %v3357_v31   ;;  %v3341_v31 = vunpack.i.h.bf16 %v4261_v17 }
 0x322   :  { %v719_v19 = vpop.permute.xlu0 %718 }
 0x323   :  { %v777_v36 = vpop.permute.xlu1 %776 }
 0x324   :  { %v4281_v14 = vsel %vm817_vm9, %v809_v35, %v777_v36 }
 0x325   :  { %3368 = vperm.xlu0 %3330, %v3367_v23   ;;  %v954_v40 = vmul.f32 %v3334_v50, %v4281_v14  ;;  %v3351_v23 = vunpack.i.h.bf16 %v4265_v26 }
 0x326   :  { %v751_v45 = vpop.permute.xlu0 %750 }
 0x327   :  { %v687_v25 = vpop.permute.xlu1 %686 }
 0x328   :  { %v803_v42 = vsel %vm268_vm5, %v687_v25, %v719_v19 }
 0x329   :  { %970 = vrot.lane.b32.xlu0 %v954_v40, %s3700_s7  ;;  %v812_v27 = vsel %vm808_vm8, %v803_v42, %v751_v45 }
 0x32b   :  { %v783_v28 = vpop.permute.xlu1 %782 }
 0x32c   :  { %v4289_v29 = vsel %vm817_vm9, %v812_v27, %v783_v28 }
 0x32d   :  { %v957_v41 = vmul.f32 %v3341_v31, %v4289_v29 }
 0x32f   :  { %v683_v44 = vpop.permute.xlu1 %682  ;;  %976 = vrot.lane.b32.xlu0 %v957_v41, %s3700_s7 }
 0x332   :  { %v779_v38 = vpop.permute.xlu0 %778 }
 0x333   :  { %v715_v49 = vpop.permute.xlu1 %714 }
 0x334   :  { %v801_v24 = vsel %vm268_vm5, %v683_v44, %v715_v49 }
 0x336   :  { %v693_v48 = vpop.permute.xlu0 %692 }
 0x337   :  { %v747_v18 = vpop.permute.xlu1 %746 }
 0x338   :  { %v810_v59 = vsel %vm808_vm8, %v801_v24, %v747_v18 }
 0x339   :  { %v819_v51 = vsel %vm817_vm9, %v810_v59, %v779_v38 }
 0x33a   :  { %v955_v4 = vmul.f32 %v3335_v46, %v819_v51  ;;  %v789_v57 = vpop.permute.xlu0 %788 }
 0x33b   :  { %v725_v56 = vpop.permute.xlu1 %724 }
 0x33c   :  { %972 = vrot.lane.b32.xlu1 %v955_v4, %s3700_s7  ;;  %v806_v58 = vsel %vm268_vm5, %v693_v48, %v725_v56 }
 0x33e   :  { %v721_v10 = vpop.permute.xlu0 %720 }
 0x33f   :  { %v757_v53 = vpop.permute.xlu1 %756 }
 0x340   :  { %974 = vrot.lane.b32.xlu1 %v956_v62, %s3700_s7  ;;  %v815_v54 = vsel %vm808_vm8, %v806_v58, %v757_v53 }
 0x341   :  { %v824_v22 = vsel %vm817_vm9, %v815_v54, %v789_v57 }
 0x342   :  { %v785_v5 = vpop.permute.xlu0 %784  ;;  %v960_v60 = vmul.f32 %v3350_v16, %v824_v22 }
 0x343   :  { %v689_v33 = vpop.permute.xlu1 %688 }
 0x344   :  { %v804_v15 = vsel %vm268_vm5, %v689_v33, %v721_v10 }
 0x346   :  { %v695_v32 = vpop.permute.xlu0 %694 }
 0x347   :  { %v753_v61 = vpop.permute.xlu1 %752 }
 0x348   :  { %v813_v34 = vsel %vm808_vm8, %v804_v15, %v753_v61 }
 0x349   :  { %v822_v7 = vsel %vm817_vm9, %v813_v34, %v785_v5 }
 0x34a   :  { %v958_v17 = vmul.f32 %v3345_v30, %v822_v7 }
 0x34b   :  { %v727_v11 = vpop.permute.xlu1 %726 }
 0x34c   :  { %978 = vrot.lane.b32.xlu1 %v958_v17, %s3700_s7  ;;  %v807_v13 = vsel %vm268_vm5, %v695_v32, %v727_v11 }
 0x34e   :  { %v691_v2 = vpop.permute.xlu0 %690 }
 0x34f   :  { %v723_v63 = vpop.permute.xlu1 %722 }
 0x350   :  { %982 = vrot.lane.b32.xlu1 %v960_v60, %s3700_s7  ;;  %v805_v3 = vsel %vm268_vm5, %v691_v2, %v723_v63 }
 0x353   :  { %v755_v1 = vpop.permute.xlu1 %754 }
 0x354   :  { %v814_v8 = vsel %vm808_vm8, %v805_v3, %v755_v1 }
 0x357   :  { %v759_v0 = vpop.permute.xlu1 %758 }
 0x358   :  { %v816_v21 = vsel %vm808_vm8, %v807_v13, %v759_v0 }
 0x363   :  { %v3354_v20 = vpop.permute.xlu1 %3353 }
 0x364   :  { %v3356_v45 = vunpack.i.h.bf16 %v3354_v20  ;;  %v3355_v31 = vunpack.i.l.bf16 %v3354_v20 }
 0x366   :  { %v891_v27 = vmul.f32 %v3356_v45, %v819_v51  ;;  %v890_v44 = vmul.f32 %v3355_v31, %v4281_v14 }
 0x367   :  { %v3364_v40 = vpop.permute.xlu1 %3363 }
 0x368   :  { %v3365_v46 = vunpack.i.l.bf16 %v3364_v40 }
 0x36a   :  { %v894_v14 = vmul.f32 %v3365_v46, %v822_v7  ;;  %v4389_v46 = vld [vmem:[%s5240_s16 + $0x10] sm:$0xff] }
 0x38b   :  { %v787_v9 = vpop.permute.xlu0 %786 }
 0x38c   :  { %v823_v12 = vsel %vm817_vm9, %v814_v8, %v787_v9 }
 0x38d   :  { %v959_v37 = vmul.f32 %v3346_v6, %v823_v12 }
 0x38f   :  { %v791_v50 = vpop.permute.xlu0 %790  ;;  %980 = vrot.lane.b32.xlu0 %v959_v37, %s3700_s7 }
 0x390   :  { %v825_v35 = vsel %vm817_vm9, %v816_v21, %v791_v50 }
 0x391   :  { %v961_v36 = vmul.f32 %v3351_v23, %v825_v35 }
 0x393   :  { %984 = vrot.lane.b32.xlu0 %v961_v36, %s3700_s7 }
 0x3a0   :  { %v3359_v19 = vpop.permute.xlu0 %3358 }
 0x3a1   :  { %v3360_v28 = vunpack.i.l.bf16 %v3359_v19  ;;  %v3361_v48 = vunpack.i.h.bf16 %v3359_v19  ;;  %v3376_v19 = vld [vmem:[%s5228_s4] sm:$0xff]  }
 0x3a2   :  { %3159 = vmatprep.subr.bf16.mxu0 %v3376_v19 }
 0x3a3   :  { %v892_v38 = vmul.f32 %v3360_v28, %v820_v43  ;;  %v893_v4 = vmul.f32 %v3361_v48, %v4289_v29  ;;  %v3366_v43 = vunpack.i.h.bf16 %v3364_v40  ;;  %v3377_v40 = vld [vmem:[%s5228_s4 + $0x8] sm:$0xff]   ;;  %3160 = vmatpush3.bf16.msra.mxu0 %v3376_v19  ;;  %v1039_v19 = vld [vmem:[%s5240_s16 + $0x70] sm:$0xff] }
 0x3a4   :  { %v3369_v25 = vpop.permute.xlu0 %3368  ;;  %3161 = vmatprep.subr.bf16.mxu0 %v3377_v40 }
 0x3a5   :  { %v3370_v56 = vunpack.i.l.bf16 %v3369_v25  ;;  %v895_v53 = vmul.f32 %v3366_v43, %v823_v12  ;;  %v3371_v10 = vunpack.i.h.bf16 %v3369_v25 }
 0x3a7   :  { %v896_v61 = vmul.f32 %v3370_v56, %v824_v22  ;;  %v897_v54 = vmul.f32 %v3371_v10, %v825_v35  ;;  %3162 = vmatpush3.bf16.msra.mxu0 %v3377_v40  ;;  %v1037_v40 = vld [vmem:[%s5240_s16 + $0x60] sm:$0xff] }
 0x3a8   :  { %v971_v26 = vpop.permute.xlu0 %970 }
 0x3a9   :  { %v4327_v47 = vsel %vm109_vm0, %v890_v44, %v971_v26  ;;  %v3378_v44 = vld [vmem:[%s5228_s4 + $0x10] sm:$0xff]  }
 0x3aa   :  { %3163 = vmatprep.subr.bf16.mxu0 %v3378_v44 }
 0x3ab   :  { %3164 = vmatpush3.bf16.msra.mxu0 %v3378_v44 }
 0x3ac   :  { %v977_v59 = vpop.permute.xlu0 %976 }
 0x3ad   :  { %v4337_v55 = vsel %vm109_vm0, %v893_v4, %v977_v59  ;;  %v1025_v59 = vld [vmem:[%s5240_s16] sm:$0xff] }
 0x3ae   :  { %v973_v42 = vpop.permute.xlu1 %972 }
 0x3af   :  { %v4324_v49 = vsel %vm109_vm0, %v891_v27, %v973_v42 }
 0x3b0   :  { %v1002_v18 = vadd.f32 %v4324_v49, %v4327_v47 }
 0x3b2   :  { %v975_v41 = vpop.permute.xlu1 %974 }
 0x3b3   :  { %v4330_v24 = vsel %vm109_vm0, %v892_v38, %v975_v41  ;;  %v3379_v38 = vld [vmem:[%s5228_s4 + $0x18] sm:$0xff]  }
 0x3b4   :  { %v1003_v51 = vadd.f32 %v1002_v18, %v4330_v24  ;;  %3165 = vmatprep.subr.bf16.mxu0 %v3379_v38  ;;  %v4394_v18 = vld [vmem:[%s5240_s16 + $0x18] sm:$0xff] }
 0x3b5   :  { %3166 = vmatpush3.bf16.msra.mxu0 %v3379_v38 }
 0x3b6   :  { %v1004_v62 = vadd.f32 %v1003_v51, %v4337_v55 }
 0x3be   :  { %v979_v52 = vpop.permute.xlu1 %978 }
 0x3bf   :  { %v4340_v57 = vsel %vm109_vm0, %v894_v14, %v979_v52  ;;  %v4402_v52 = vld [vmem:[%s5240_s16 + $0x8] sm:$0xff] }
 0x3c0   :  { %v1005_v33 = vadd.f32 %v1004_v62, %v4340_v57 }
 0x3c2   :  { %v983_v58 = vpop.permute.xlu1 %982 }
 0x3c3   :  { %v4349_v5 = vsel %vm109_vm0, %v896_v61, %v983_v58  ;;  %v1031_v58 = vld [vmem:[%s5240_s16 + $0x30] sm:$0xff] }
 0x401   :  { %v981_v15 = vpop.permute.xlu0 %980 }
 0x402   :  { %v4345_v30 = vsel %vm109_vm0, %v895_v53, %v981_v15  ;;  %v1029_v15 = vld [vmem:[%s5240_s16 + $0x20] sm:$0xff] }
 0x403   :  { %v1006_v29 = vadd.f32 %v1005_v33, %v4345_v30 }
 0x405   :  { %v1007_v34 = vadd.f32 %v1006_v29, %v4349_v5  ;;  %v985_v7 = vpop.permute.xlu0 %984  ;;  %v1032_v29 = vld [vmem:[%s5240_s16 + $0x38] sm:$0xff] }
 0x406   :  { %v4353_v16 = vsel %vm109_vm0, %v897_v54, %v985_v7  ;;  %v1030_v7 = vld [vmem:[%s5240_s16 + $0x28] sm:$0xff] }
 0x407   :  { %v1008_v17 = vadd.f32 %v1007_v34, %v4353_v16  ;;  %v2217_v22 = vpack.c.bf16 %v4353_v16, %v4349_v5 }
 0x409   :  { %v1009_v60 = vrot.slane %v1008_v17, 4 }
 0x40b   :  { %v1010_v11 = vadd.f32 %v1009_v60, %v1008_v17 }
 0x40d   :  { %v1011_v63 = vrot.slane %v1010_v11, 2 }
 0x40f   :  { %v1012_v32 = vadd.f32 %v1011_v63, %v1010_v11 }
 0x411   :  { %v1013_v1 = vrot.slane %v1012_v32, 1 }
 0x413   :  { %v1014_v2 = vadd.f32 %v1013_v1, %v1012_v32 }
 0x415   :  { %v1015_v3 = vadd.f32 1e-05, %v1014_v2 }
 0x417   :  { %3540 = vrcp.f32 %v1015_v3  ;;  %v1035_v3 = vld [vmem:[%s5240_s16 + $0x50] sm:$0xff] }
 0x421   :  { %v3541_v6 = vpop.eup %3540 }
 0x422   :  { %v1023_v8 = vmul.f32 %v3541_v6, %v4349_v5  ;;  %v1024_v9 = vmul.f32 %v3541_v6, %v4353_v16  ;;  %v1017_v0 = vmul.f32 %v3541_v6, %v4327_v47  ;;  %v1018_v12 = vmul.f32 %v3541_v6, %v4324_v49  ;;  %v3668_v5 = vld [vmem:[%s5246_s0 + $0x18] sm:$0xff] }
 0x423   :  { %v1021_v37 = vmul.f32 %v3541_v6, %v4340_v57  ;;  %v1022_v13 = vmul.f32 %v3541_v6, %v4345_v30  ;;  %v1019_v50 = vmul.f32 %v3541_v6, %v4330_v24  ;;  %v1020_v35 = vmul.f32 %v3541_v6, %v4337_v55  ;;  %v1033_v6 = vld [vmem:[%s5240_s16 + $0x40] sm:$0xff] }
 0x424   :  { %v1044_v23 = vpack.c.bf16 %v1024_v9, %v1023_v8  ;;  %v1041_v21 = vpack.c.bf16 %v1018_v12, %v1017_v0  ;;  %v1036_v9 = vld [vmem:[%s5240_s16 + $0x58] sm:$0xff] }
 0x425   :  { %v1043_v36 = vpack.c.bf16 %v1022_v13, %v1021_v37  ;;  %v1042_v20 = vpack.c.bf16 %v1020_v35, %v1019_v50  ;;  %v1034_v37 = vld [vmem:[%s5240_s16 + $0x48] sm:$0xff] }
 0x426   :  { %1049 = vxpose.xlu1.c.b16.start [1/4] (short) %v1041_v21, 128 }
 0x42a   :  { %1050 = vxpose.xlu1.c.b16.cont [2/4] (short) %v1042_v20, 128 }
 0x42e   :  { %1051 = vxpose.xlu1.c.b16.cont [3/4] (short) %v1043_v36, 128 }
 0x432   :  { %1052 = vxpose.xlu1.c.b16.end [4/4] (short) %v1044_v23, 128 }
 0x48c   :  { %v1057_v25 = vpop.trf.xlu1 }
 0x48d   :  { %3143 = vmatprep.mubr.msk.bf16.mxu1 %vm109_vm0, %v1057_v25 }
 0x490   :  { %v1058_v42 = vpop.trf.xlu1 }
 0x491   :  { %3144 = vmatmul.mubr.msk.bf16.vlgmr.msra.gmra.mrb[0].mxu1 %vm109_vm0, %v1058_v42  ;;  %v1040_v42 = vld [vmem:[%s5240_s16 + $0x78] sm:$0xff] }
 0x494   :  { %v1059_v45 = vpop.trf.xlu1 }
 0x495   :  { %3147 = vmatprep.mubr.msk.bf16.mxu1 %vm109_vm0, %v1059_v45 }
 0x498   :  { %v1060_v31 = vpop.trf.xlu1 }
 0x499   :  { %3148 = vmatmul.mubr.msk.bf16.gmra.mrb[4].mxu1 %vm109_vm0, %v1060_v31 }
 0x49c   :  { %v1061_v28 = vpop.trf.xlu1 }
 0x49d   :  { %3151 = vmatprep.mubr.msk.bf16.mxu1 %vm109_vm0, %v1061_v28  ;;  %v1038_v28 = vld [vmem:[%s5240_s16 + $0x68] sm:$0xff] }
 0x4a0   :  { %v1062_v27 = vpop.trf.xlu1 }
 0x4a1   :  { %3152 = vmatmul.mubr.msk.bf16.gmra.mrb[8].mxu1 %vm109_vm0, %v1062_v27 }
 0x4a4   :  { %v1063_v26 = vpop.trf.xlu1 }
 0x4a5   :  { %3155 = vmatprep.mubr.msk.bf16.mxu1 %vm109_vm0, %v1063_v26 }
 0x4a8   :  { %v1064_v41 = vpop.trf.xlu1 }
 0x4a9   :  { %3156 = vmatmul.mubr.msk.bf16.gmra.mrb[12].mxu1 %vm109_vm0, %v1064_v41 }
 0x564   :  { %v3145_v48 = vpop.f32.mrb[0].mxu1 }
 0x565   :  { %v1123_v51 = vpop.f32.mrb[1].mxu1  ;;  %v1188_v4 = vmul.f32 %v3145_v48, %v4389_v46 }
 0x566   :  { %v3146_v14 = vpop.f32.mrb[2].mxu1  ;;  %v1186_v62 = vmul.f32 %v1123_v51, %v1025_v59 }
 0x567   :  { %v1189_v43 = vmul.f32 %v3146_v14, %v4394_v18  ;;  %v1126_v56 = vpop.f32.mrb[3].mxu1 }
 0x568   :  { %v1187_v53 = vmul.f32 %v1126_v56, %v4402_v52 }
 0x569   :  { %v1203_v10 = vpack.c.bf16 %v1189_v43, %v1188_v4 }
 0x56a   :  { %v1202_v33 = vpack.c.bf16 %v1187_v53, %v1186_v62 }
 0x56c   :  { %v3149_v61 = vpop.f32.mrb[4].mxu1  ;;  %3167 = vmatprep.mubr.msk.bf16.mxu0 %vm109_vm0, %v1202_v33 }
 0x56d   :  { %v1192_v54 = vmul.f32 %v3149_v61, %v1031_v58  ;;  %v1139_v34 = vpop.f32.mrb[5].mxu1  ;;  %3168 = vmatmul.mubr.msk.bf16.vlgmr.msra.gmra.mrb[8].mxu0 %vm109_vm0, %v1203_v10 }
 0x56e   :  { %v1190_v17 = vmul.f32 %v1139_v34, %v1029_v15  ;;  %v3150_v60 = vpop.f32.mrb[6].mxu1 }
 0x56f   :  { %v1193_v11 = vmul.f32 %v3150_v60, %v1032_v29  ;;  %v1142_v63 = vpop.f32.mrb[7].mxu1 }
 0x570   :  { %v1191_v32 = vmul.f32 %v1142_v63, %v1030_v7 }
 0x571   :  { %v1205_v1 = vpack.c.bf16 %v1193_v11, %v1192_v54 }
 0x572   :  { %v1204_v2 = vpack.c.bf16 %v1191_v32, %v1190_v17 }
 0x574   :  { %v3153_v8 = vpop.f32.mrb[8].mxu1  ;;  %3171 = vmatprep.mubr.msk.bf16.mxu0 %vm109_vm0, %v1204_v2 }
 0x575   :  { %v1196_v0 = vmul.f32 %v3153_v8, %v1035_v3  ;;  %v1155_v12 = vpop.f32.mrb[9].mxu1  ;;  %3172 = vmatmul.mubr.msk.bf16.gmra.mrb[12].mxu0 %vm109_vm0, %v1205_v1 }
 0x576   :  { %v1194_v13 = vmul.f32 %v1155_v12, %v1033_v6  ;;  %v3154_v23 = vpop.f32.mrb[10].mxu1 }
 0x577   :  { %v1197_v21 = vmul.f32 %v3154_v23, %v1036_v9  ;;  %v1158_v50 = vpop.f32.mrb[11].mxu1 }
 0x578   :  { %v1195_v35 = vmul.f32 %v1158_v50, %v1034_v37 }
 0x579   :  { %v1207_v36 = vpack.c.bf16 %v1197_v21, %v1196_v0 }
 0x57a   :  { %v1206_v20 = vpack.c.bf16 %v1195_v35, %v1194_v13 }
 0x57c   :  { %v3157_v25 = vpop.f32.mrb[12].mxu1  ;;  %3175 = vmatprep.mubr.msk.bf16.mxu0 %vm109_vm0, %v1206_v20 }
 0x57d   :  { %v1200_v45 = vmul.f32 %v3157_v25, %v1039_v19  ;;  %v1171_v31 = vpop.f32.mrb[13].mxu1  ;;  %3176 = vmatmul.mubr.msk.bf16.gmra.mrb[16].mxu0 %vm109_vm0, %v1207_v36 }
 0x57e   :  { %v1198_v27 = vmul.f32 %v1171_v31, %v1037_v40  ;;  %v3158_v26 = vpop.f32.mrb[14].mxu1  ;;  %v2214_v31 = vpack.c.bf16 %v4324_v49, %v4327_v47  ;;  %v1371_v49 = vld [vmem:[%s5239_s15] sm:$0xff] }
 0x57f   :  { %v1201_v41 = vmul.f32 %v3158_v26, %v1040_v42  ;;  %v1174_v44 = vpop.f32.mrb[15].mxu1 }
 0x580   :  { %v1199_v38 = vmul.f32 %v1174_v44, %v1038_v28  ;;  %v1373_v28 = vld [vmem:[%s5239_s15 + $0x10] sm:$0xff]  ;;  %v1372_v44 = vld [vmem:[%s5239_s15 + $0x8] sm:$0xff] }
 0x581   :  { %v1209_v48 = vpack.c.bf16 %v1201_v41, %v1200_v45 }
 0x582   :  { %v1208_v59 = vpack.c.bf16 %v1199_v38, %v1198_v27 }
 0x584   :  { %3179 = vmatprep.mubr.msk.bf16.mxu0 %vm109_vm0, %v1208_v59 }
 0x585   :  { %3180 = vmatmul.mubr.msk.bf16.gmra.mrb[20].mxu0 %vm109_vm0, %v1209_v48 }
 0x640   :  { %v3169_v51 = vpop.f32.mrb[8].mxu0 }
 0x641   :  { %v1300_v14 = vpop.f32.mrb[9].mxu0 }
 0x642   :  { %v3170_v4 = vpop.f32.mrb[10].mxu0 }
 0x643   :  { %v4451_v43 = vpack.c.bf16 %v3170_v4, %v3169_v51  ;;  %v1303_v56 = vpop.f32.mrb[11].mxu0  ;;  %v1374_v51 = vld [vmem:[%s5239_s15 + $0x18] sm:$0xff] }
 0x644   :  { %v1363_v62 = vpack.c.bf16 %v1303_v56, %v1300_v14  ;;  %v1378_v4 = vld [vmem:[%s5239_s15 + $0x38] sm:$0xff] }
 0x645   :  { %1710 = vrot.lane.b32.xlu1 %v4451_v43, %s3705_s27 }
 0x646   :  { %1395 = vrot.lane.b32.xlu0 %v1363_v62, %s3706_s28  ;;  %3199 = vmatprep.mubr.msk.bf16.mxu1 %vm268_vm5, %v1363_v62 }
 0x648   :  { %v3173_v53 = vpop.f32.mrb[12].mxu0 }
 0x649   :  { %v1316_v10 = vpop.f32.mrb[13].mxu0 }
 0x64a   :  { %1397 = vrot.lane.b32.xlu0 %v4451_v43, %s3706_s28  ;;  %v3174_v33 = vpop.f32.mrb[14].mxu0 }
 0x64b   :  { %v4457_v58 = vpack.c.bf16 %v3174_v33, %v3173_v53  ;;  %v1319_v15 = vpop.f32.mrb[15].mxu0 }
 0x64c   :  { %v4459_v61 = vpack.c.bf16 %v1319_v15, %v1316_v10  ;;  %v1376_v15 = vld [vmem:[%s5239_s15 + $0x28] sm:$0xff] }
 0x64e   :  { %1399 = vrot.lane.b32.xlu0 %v4459_v61, %s3706_s28 }
 0x650   :  { %v3177_v29 = vpop.f32.mrb[16].mxu0 }
 0x651   :  { %v1332_v54 = vpop.f32.mrb[17].mxu0 }
 0x652   :  { %1401 = vrot.lane.b32.xlu0 %v4457_v58, %s3706_s28  ;;  %v3178_v34 = vpop.f32.mrb[18].mxu0 }
 0x653   :  { %v4463_v7 = vpack.c.bf16 %v3178_v34, %v3177_v29  ;;  %v1335_v17 = vpop.f32.mrb[19].mxu0 }
 0x654   :  { %v4465_v60 = vpack.c.bf16 %v1335_v17, %v1332_v54  ;;  %v1375_v54 = vld [vmem:[%s5239_s15 + $0x20] sm:$0xff] }
 0x656   :  { %1403 = vrot.lane.b32.xlu0 %v4465_v60, %s3706_s28 }
 0x658   :  { %v3181_v11 = vpop.f32.mrb[20].mxu0 }
 0x659   :  { %v1348_v63 = vpop.f32.mrb[21].mxu0 }
 0x65a   :  { %1405 = vrot.lane.b32.xlu0 %v4463_v7, %s3706_s28  ;;  %v3182_v32 = vpop.f32.mrb[22].mxu0 }
 0x65b   :  { %v4469_v1 = vpack.c.bf16 %v3182_v32, %v3181_v11  ;;  %v1351_v2 = vpop.f32.mrb[23].mxu0  ;;  %v1382_v11 = vld [vmem:[%s5239_s15 + $0x58] sm:$0xff] }
 0x65c   :  { %v4471_v3 = vpack.c.bf16 %v1351_v2, %v1348_v63  ;;  %v1381_v2 = vld [vmem:[%s5239_s15 + $0x50] sm:$0xff] }
 0x65e   :  { %1407 = vrot.lane.b32.xlu0 %v4471_v3, %s3706_s28 }
 0x662   :  { %1409 = vrot.lane.b32.xlu0 %v4469_v1, %s3706_s28 }
 0x666   :  { %1708 = vrot.lane.b32.xlu0 %v1363_v62, %s3705_s27  ;;  %v1377_v62 = vld [vmem:[%s5239_s15 + $0x30] sm:$0xff] }
 0x6b7   :  { %v1711_v40 = vpop.permute.xlu1 %1710 }
 0x6b8   :  { %v1396_v6 = vpop.permute.xlu0 %1395 }
 0x6b9   :  { %3311 = vmatprep.subr.msk.bf16.mxu1 %vm268_vm5, %v1396_v6  ;;  %v1436_v8 = vsel %vm268_vm5, %v1396_v6, 0 }
 0x6ba   :  { %3184 = vmatpush3.bf16.xpose.msra.mxu1 %v1436_v8 }
 0x6bc   :  { %v1398_v9 = vpop.permute.xlu0 %1397 }
 0x6bd   :  { %3312 = vmatprep.subr.msk.bf16.mxu1 %vm268_vm5, %v1398_v9  ;;  %v1439_v12 = vsel %vm268_vm5, %v1398_v9, 0 }
 0x6c0   :  { %v1400_v0 = vpop.permute.xlu0 %1399 }
 0x6c1   :  { %v1442_v23 = vsel %vm268_vm5, %v1400_v0, 0 }
 0x6c2   :  { %3186 = vmatpush3.bf16.xpose.msra.mxu1 %v1439_v12 }
 0x6c3   :  { %3313 = vmatprep.subr.msk.bf16.mxu1 %vm268_vm5, %v1400_v0  ;;  %v1380_v0 = vld [vmem:[%s5239_s15 + $0x48] sm:$0xff] }
 0x6c4   :  { %v1402_v37 = vpop.permute.xlu0 %1401 }
 0x6c5   :  { %v1445_v35 = vsel %vm268_vm5, %v1402_v37, 0 }
 0x6c8   :  { %v1404_v13 = vpop.permute.xlu0 %1403 }
 0x6c9   :  { %v1448_v19 = vsel %vm268_vm5, %v1404_v13, 0 }
 0x6ca   :  { %3188 = vmatpush3.bf16.xpose.msra.mxu1 %v1442_v23 }
 0x6cb   :  { %3314 = vmatprep.subr.msk.bf16.mxu1 %vm268_vm5, %v1402_v37  ;;  %v1379_v37 = vld [vmem:[%s5239_s15 + $0x40] sm:$0xff] }
 0x6cc   :  { %v1406_v21 = vpop.permute.xlu0 %1405 }
 0x6cd   :  { %v1451_v25 = vsel %vm268_vm5, %v1406_v21, 0 }
 0x6d0   :  { %v1408_v50 = vpop.permute.xlu0 %1407 }
 0x6d1   :  { %v1454_v42 = vsel %vm268_vm5, %v1408_v50, 0 }
 0x6d2   :  { %3190 = vmatpush3.bf16.xpose.msra.mxu1 %v1445_v35  ;;  %v1385_v35 = vld [vmem:[%s5239_s15 + $0x70] sm:$0xff] }
 0x6d3   :  { %3315 = vmatprep.subr.msk.bf16.mxu1 %vm268_vm5, %v1404_v13 }
 0x6d4   :  { %v1410_v36 = vpop.permute.xlu0 %1409 }
 0x6d5   :  { %v1457_v45 = vsel %vm268_vm5, %v1410_v36, 0 }
 0x6d8   :  { %v1709_v20 = vpop.permute.xlu0 %1708 }
 0x6d9   :  { %3215 = vmatprep.subr.bf16.mxu0 %v1709_v20 }
 0x6da   :  { %3192 = vmatpush3.bf16.xpose.msra.mxu1 %v1448_v19  ;;  %3216 = vmatpush3.bf16.msra.mxu0 %v1709_v20 }
 0x6db   :  { %3316 = vmatprep.subr.msk.bf16.mxu1 %vm268_vm5, %v1406_v21  ;;  %3217 = vmatprep.subr.bf16.mxu0 %v1711_v40 }
 0x6de   :  { %3218 = vmatpush3.bf16.msra.mxu0 %v1711_v40  ;;  %v1383_v40 = vld [vmem:[%s5239_s15 + $0x60] sm:$0xff] }
 0x6e2   :  { %3194 = vmatpush3.bf16.xpose.msra.mxu1 %v1451_v25 }
 0x6e3   :  { %3317 = vmatprep.subr.msk.bf16.mxu1 %vm268_vm5, %v1408_v50 }
 0x6ea   :  { %3196 = vmatpush3.bf16.xpose.msra.mxu1 %v1454_v42  ;;  %v1386_v42 = vld [vmem:[%s5239_s15 + $0x78] sm:$0xff] }
 0x6eb   :  { %3318 = vmatprep.subr.msk.bf16.mxu1 %vm268_vm5, %v1410_v36 }
 0x6f2   :  { %3198 = vmatpush3.bf16.xpose.msra.mxu1 %v1457_v45 }
 0x6f9   :  { %3200 = vmatmul.mubr.msk.bf16.vlgmr.msra.gmra.mrb[16].mxu1 %vm268_vm5, %v4451_v43 }
 0x6fa   :  { %3203 = vmatprep.mubr.msk.bf16.mxu1 %vm268_vm5, %v4459_v61 }
 0x701   :  { %3204 = vmatmul.mubr.msk.bf16.gmra.mrb[20].mxu1 %vm268_vm5, %v4457_v58 }
 0x702   :  { %3207 = vmatprep.mubr.msk.bf16.mxu1 %vm268_vm5, %v4465_v60 }
 0x709   :  { %3208 = vmatmul.mubr.msk.bf16.gmra.mrb[24].mxu1 %vm268_vm5, %v4463_v7 }
 0x70a   :  { %3211 = vmatprep.mubr.msk.bf16.mxu1 %vm268_vm5, %v4471_v3 }
 0x711   :  { %3212 = vmatmul.mubr.msk.bf16.gmra.mrb[28].mxu1 %vm268_vm5, %v4469_v1 }
 0x712   :  { %3287 = vmatprep.mubr.bf16.mxu1 %v2214_v31  ;;  %v1384_v31 = vld [vmem:[%s5239_s15 + $0x68] sm:$0xff] }
 0x7cc   :  { %v3201_v27 = vpop.f32.mrb[16].mxu1 }
 0x7cd   :  { %v4511_v26 = vadd.f32 %v3201_v27, %v1373_v28  ;;  %v1493_v41 = vpop.f32.mrb[17].mxu1 }
 0x7ce   :  { %v3202_v47 = vpop.f32.mrb[18].mxu1  ;;  %v4522_v59 = vadd.f32 %v1493_v41, %v1371_v49 }
 0x7cf   :  { %1560 = vmax.xlane.f32.xlu0 %v4511_v26  ;;  %v1496_v38 = vpop.f32.mrb[19].mxu1  ;;  %v4532_v43 = vadd.f32 %v3202_v47, %v1374_v51 }
 0x7d0   :  { %v4520_v48 = vadd.f32 %v1496_v38, %v1372_v44 }
 0x7d2   :  { %1558 = vmax.xlane.f32.xlu1 %v4520_v48 }
 0x7d3   :  { %1556 = vmax.xlane.f32.xlu0 %v4522_v59 }
 0x7d4   :  { %v3205_v14 = vpop.f32.mrb[20].mxu1 }
 0x7d5   :  { %v1509_v56 = vpop.f32.mrb[21].mxu1  ;;  %v4543_v29 = vadd.f32 %v3205_v14, %v1377_v62 }
 0x7d6   :  { %v3206_v53 = vpop.f32.mrb[22].mxu1  ;;  %v4555_v63 = vadd.f32 %v1509_v56, %v1375_v54 }
 0x7d7   :  { %v4537_v10 = vadd.f32 %v3206_v53, %v1378_v4  ;;  %v1512_v33 = vpop.f32.mrb[23].mxu1  ;;  %1562 = vmax.xlane.f32.xlu0 %v4532_v43 }
 0x7d8   :  { %v4549_v34 = vadd.f32 %v1512_v33, %v1376_v15 }
 0x7d9   :  { %1570 = vmax.xlane.f32.xlu1 %v4537_v10 }
 0x7db   :  { %1568 = vmax.xlane.f32.xlu0 %v4543_v29 }
 0x7dc   :  { %v3209_v17 = vpop.f32.mrb[24].mxu1 }
 0x7dd   :  { %v1525_v32 = vpop.f32.mrb[25].mxu1  ;;  %1566 = vmax.xlane.f32.xlu1 %v4549_v34  ;;  %v4567_v12 = vadd.f32 %v3209_v17, %v1381_v2 }
 0x7de   :  { %v3210_v6 = vpop.f32.mrb[26].mxu1  ;;  %v4576_v21 = vadd.f32 %v1525_v32, %v1379_v37 }
 0x7df   :  { %v4561_v8 = vadd.f32 %v3210_v6, %v1382_v11  ;;  %v1528_v9 = vpop.f32.mrb[27].mxu1  ;;  %1564 = vmax.xlane.f32.xlu0 %v4555_v63 }
 0x7e0   :  { %v4573_v13 = vadd.f32 %v1528_v9, %v1380_v0 }
 0x7e1   :  { %1578 = vmax.xlane.f32.xlu1 %v4561_v8 }
 0x7e3   :  { %1576 = vmax.xlane.f32.xlu0 %v4567_v12 }
 0x7e4   :  { %v3213_v23 = vpop.f32.mrb[28].mxu1 }
 0x7e5   :  { %v1541_v50 = vpop.f32.mrb[29].mxu1  ;;  %1574 = vmax.xlane.f32.xlu1 %v4573_v13  ;;  %v4583_v19 = vadd.f32 %v3213_v23, %v1385_v35 }
 0x7e6   :  { %v3214_v36 = vpop.f32.mrb[30].mxu1  ;;  %v4589_v25 = vadd.f32 %v1541_v50, %v1383_v40 }
 0x7e7   :  { %v1544_v20 = vpop.f32.mrb[31].mxu1  ;;  %1572 = vmax.xlane.f32.xlu0 %v4576_v21  ;;  %v4603_v45 = vadd.f32 %v3214_v36, %v1386_v42 }
 0x7eb   :  { %1584 = vmax.xlane.f32.xlu0 %v4583_v19 }
 0x7ef   :  { %1580 = vmax.xlane.f32.xlu0 %v4589_v25 }
 0x7f6   :  { %1716 = vrot.lane.b32.xlu1 %v4465_v60, %s3705_s27  ;;  %v4609_v60 = vadd.f32 %v1544_v20, %v1384_v31 }
 0x805   :  { %1712 = vrot.lane.b32.xlu0 %v4459_v61, %s3705_s27 }
 0x809   :  { %1714 = vrot.lane.b32.xlu0 %v4457_v58, %s3705_s27 }
 0x80d   :  { %1720 = vrot.lane.b32.xlu0 %v4471_v3, %s3705_s27 }
 0x81a   :  { %1586 = vmax.xlane.f32.xlu1 %v4603_v45 }
 0x81e   :  { %1582 = vmax.xlane.f32.xlu1 %v4609_v60 }
 0x82f   :  { %1718 = vrot.lane.b32.xlu1 %v4463_v7, %s3705_s27 }
 0x85c   :  { %v1561_v58 = vpop.xlane.xlu0 %1560 }
 0x85d   :  { %v1590_v61 = vsub.f32 %v4511_v26, %v1561_v58 }
 0x85f   :  { %v1608_v3 = vmul.f32 1.442695, %v1590_v61  ;;  %v1559_v27 = vpop.xlane.xlu1 %1558 }
 0x860   :  { %v1557_v28 = vpop.xlane.xlu0 %1556  ;;  %v1589_v49 = vsub.f32 %v4520_v48, %v1559_v27 }
 0x861   :  { %3542 = vpow2.f32 %v1608_v3  ;;  %v1588_v41 = vsub.f32 %v4522_v59, %v1557_v28 }
 0x862   :  { %v1606_v4 = vmul.f32 1.442695, %v1589_v49 }
 0x863   :  { %v1604_v44 = vmul.f32 1.442695, %v1588_v41 }
 0x864   :  { %v1563_v47 = vpop.xlane.xlu0 %1562 }
 0x865   :  { %3544 = vpow2.f32 %v1604_v44  ;;  %v1591_v38 = vsub.f32 %v4532_v43, %v1563_v47 }
 0x866   :  { %v1571_v51 = vpop.xlane.xlu1 %1570 }
 0x867   :  { %v1610_v14 = vmul.f32 1.442695, %v1591_v38  ;;  %v1595_v33 = vsub.f32 %v4537_v10, %v1571_v51 }
 0x868   :  { %v1569_v7 = vpop.xlane.xlu0 %1568 }
 0x869   :  { %3546 = vpow2.f32 %v1610_v14  ;;  %v1594_v26 = vsub.f32 %v4543_v29, %v1569_v7  ;;  %v1618_v32 = vmul.f32 1.442695, %v1595_v33 }
 0x86a   :  { %v1567_v56 = vpop.xlane.xlu1 %1566  ;;  %3548 = vpow2.f32 %v1606_v4 }
 0x86b   :  { %v4619_v62 = vpop.eup %3542  ;;  %v1616_v53 = vmul.f32 1.442695, %v1594_v26  ;;  %v1593_v59 = vsub.f32 %v4549_v34, %v1567_v56 }
 0x86c   :  { %1640 = vadd.xlane.f32.xlu1 %v4619_v62  ;;  %v1565_v48 = vpop.xlane.xlu0 %1564 }
 0x86d   :  { %3550 = vpow2.f32 %v1616_v53  ;;  %v1614_v43 = vmul.f32 1.442695, %v1593_v59  ;;  %v1592_v15 = vsub.f32 %v4555_v63, %v1565_v48 }
 0x86e   :  { %v1579_v54 = vpop.xlane.xlu1 %1578 }
 0x86f   :  { %v4625_v17 = vpop.eup %3544  ;;  %v1612_v29 = vmul.f32 1.442695, %v1592_v15  ;;  %3552 = vpow2.f32 %v1614_v43 }
 0x870   :  { %1636 = vadd.xlane.f32.xlu1 %v4625_v17  ;;  %v1577_v11 = vpop.xlane.xlu0 %1576 }
 0x871   :  { %3554 = vpow2.f32 %v1612_v29  ;;  %v1598_v34 = vsub.f32 %v4567_v12, %v1577_v11  ;;  %v1599_v12 = vsub.f32 %v4561_v8, %v1579_v54 }
 0x872   :  { %v1575_v2 = vpop.xlane.xlu1 %1574  ;;  %3556 = vpow2.f32 %v1618_v32 }
 0x873   :  { %v4629_v6 = vpop.eup %3546  ;;  %v1597_v10 = vsub.f32 %v4573_v13, %v1575_v2  ;;  %v1624_v9 = vmul.f32 1.442695, %v1598_v34  ;;  %v1626_v42 = vmul.f32 1.442695, %v1599_v12 }
 0x874   :  { %1642 = vadd.xlane.f32.xlu1 %v4629_v6  ;;  %v1573_v63 = vpop.xlane.xlu0 %1572  ;;  %v4634_v23 = vpop.eup %3548 }
 0x875   :  { %v1622_v0 = vmul.f32 1.442695, %v1597_v10  ;;  %v1596_v37 = vsub.f32 %v4576_v21, %v1573_v63 }
 0x876   :  { %v1717_v41 = vpop.permute.xlu1 %1716 }
 0x877   :  { %v4636_v50 = vpop.eup %3550  ;;  %3558 = vpow2.f32 %v1622_v0  ;;  %v1620_v35 = vmul.f32 1.442695, %v1596_v37 }
 0x878   :  { %1648 = vadd.xlane.f32.xlu0 %v4636_v50  ;;  %v1585_v36 = vpop.xlane.xlu0 %1584  ;;  %1638 = vadd.xlane.f32.xlu1 %v4634_v23  ;;  %3560 = vpow2.f32 %v1624_v9 }
 0x879   :  { %v1602_v13 = vsub.f32 %v4583_v19, %v1585_v36  ;;  %v4642_v20 = vpop.eup %3552  ;;  %3562 = vpow2.f32 %v1620_v35 }
 0x87b   :  { %v4644_v40 = vpop.eup %3554  ;;  %v1632_v21 = vmul.f32 1.442695, %v1602_v13 }
 0x87c   :  { %1644 = vadd.xlane.f32.xlu0 %v4644_v40  ;;  %v1581_v31 = vpop.xlane.xlu0 %1580  ;;  %1646 = vadd.xlane.f32.xlu1 %v4642_v20  ;;  %v4649_v58 = vpop.eup %3556 }
 0x87d   :  { %3564 = vpow2.f32 %v1632_v21  ;;  %v1600_v8 = vsub.f32 %v4589_v25, %v1581_v31 }
 0x87e   :  { %3566 = vpow2.f32 %v1626_v42 }
 0x87f   :  { %v1628_v61 = vmul.f32 1.442695, %v1600_v8 }
 0x880   :  { %v1713_v19 = vpop.permute.xlu0 %1712  ;;  %1650 = vadd.xlane.f32.xlu0 %v4649_v58 }
 0x881   :  { %v4652_v3 = vpop.eup %3558  ;;  %3568 = vpow2.f32 %v1628_v61  ;;  %3219 = vmatprep.subr.bf16.mxu0 %v1713_v19 }
 0x882   :  { %3220 = vmatpush3.bf16.msra.mxu0 %v1713_v19  ;;  %1654 = vadd.xlane.f32.xlu1 %v4652_v3  ;;  %v4655_v28 = vpop.eup %3560 }
 0x883   :  { %v4658_v25 = vpop.eup %3562 }
 0x884   :  { %v1715_v27 = vpop.permute.xlu0 %1714  ;;  %1656 = vadd.xlane.f32.xlu0 %v4655_v28 }
 0x885   :  { %3221 = vmatprep.subr.bf16.mxu0 %v1715_v27 }
 0x886   :  { %3222 = vmatpush3.bf16.msra.mxu0 %v1715_v27 }
 0x887   :  { %v4660_v44 = vpop.eup %3564  ;;  %3223 = vmatprep.subr.bf16.mxu0 %v1717_v41 }
 0x888   :  { %1652 = vadd.xlane.f32.xlu0 %v4658_v25  ;;  %1664 = vadd.xlane.f32.xlu1 %v4660_v44  ;;  %v4664_v49 = vpop.eup %3566  ;;  %v1721_v53 = vpop.permute.xlu0 %1720 }
 0x88a   :  { %3224 = vmatpush3.bf16.msra.mxu0 %v1717_v41 }
 0x88b   :  { %v4666_v47 = vpop.eup %3568 }
 0x88c   :  { %1658 = vadd.xlane.f32.xlu0 %v4664_v49  ;;  %1660 = vadd.xlane.f32.xlu1 %v4666_v47 }
 0x89d   :  { %1722 = vrot.lane.b32.xlu1 %v4469_v1, %s3705_s27 }
 0x8a7   :  { %v1587_v38 = vpop.xlane.xlu1 %1586 }
 0x8a8   :  { %v1603_v14 = vsub.f32 %v4603_v45, %v1587_v38 }
 0x8aa   :  { %v1634_v56 = vmul.f32 1.442695, %v1603_v14 }
 0x8ab   :  { %v1583_v51 = vpop.xlane.xlu1 %1582 }
 0x8ac   :  { %v1601_v4 = vsub.f32 %v4609_v60, %v1583_v51 }
 0x8ae   :  { %v1630_v7 = vmul.f32 1.442695, %v1601_v4 }
 0x8af   :  { %v1719_v26 = vpop.permute.xlu1 %1718 }
 0x8b0   :  { %3570 = vpow2.f32 %v1630_v7  ;;  %3225 = vmatprep.subr.bf16.mxu0 %v1719_v26 }
 0x8b1   :  { %3226 = vmatpush3.bf16.msra.mxu0 %v1719_v26  ;;  %3572 = vpow2.f32 %v1634_v56 }
 0x8b2   :  { %3227 = vmatprep.subr.bf16.mxu0 %v1721_v53 }
 0x8b5   :  { %3228 = vmatpush3.bf16.msra.mxu0 %v1721_v53 }
 0x8ba   :  { %v4674_v59 = vpop.eup %3570 }
 0x8bb   :  { %1662 = vadd.xlane.f32.xlu0 %v4674_v59  ;;  %v4677_v1 = vpop.eup %3572 }
 0x8bf   :  { %1666 = vadd.xlane.f32.xlu0 %v4677_v1 }
 0x8f9   :  { %v1641_v45 = vpop.xlane.xlu1 %1640 }
 0x8fd   :  { %v1637_v60 = vpop.xlane.xlu1 %1636 }
 0x8fe   :  { %3574 = vrcp.f32 %v1637_v60 }
 0x901   :  { %v1643_v48 = vpop.xlane.xlu1 %1642 }
 0x905   :  { %v1649_v33 = vpop.xlane.xlu0 %1648  ;;  %v1639_v43 = vpop.xlane.xlu1 %1638 }
 0x906   :  { %3576 = vrcp.f32 %v1639_v43 }
 0x907   :  { %3578 = vrcp.f32 %v1643_v48 }
 0x908   :  { %v3575_v11 = vpop.eup %3574 }
 0x909   :  { %v1645_v15 = vpop.xlane.xlu0 %1644  ;;  %v1647_v54 = vpop.xlane.xlu1 %1646  ;;  %v1684_v10 = vmul.f32 %v3575_v11, %v4625_v17  ;;  %v3380_v11 = vld [vmem:[%s5229_s5] sm:$0xff]  }
 0x90a   :  { %3580 = vrcp.f32 %v1645_v15 }
 0x90b   :  { %3582 = vrcp.f32 %v1647_v54 }
 0x90c   :  { %3584 = vrcp.f32 %v1641_v45 }
 0x90d   :  { %v1651_v29 = vpop.xlane.xlu0 %1650 }
 0x90e   :  { %3586 = vrcp.f32 %v1651_v29 }
 0x90f   :  { %v1655_v34 = vpop.xlane.xlu1 %1654 }
 0x910   :  { %v3577_v32 = vpop.eup %3576 }
 0x911   :  { %v1657_v2 = vpop.xlane.xlu0 %1656  ;;  %v1685_v63 = vmul.f32 %v3577_v32, %v4634_v23  ;;  %v3579_v12 = vpop.eup %3578 }
 0x912   :  { %v1687_v42 = vmul.f32 %v3579_v12, %v4629_v6 }
 0x913   :  { %v1700_v9 = vpack.c.bf16 %v1685_v63, %v1684_v10 }
 0x914   :  { %v3581_v35 = vpop.eup %3580 }
 0x915   :  { %v1653_v0 = vpop.xlane.xlu0 %1652  ;;  %v1665_v37 = vpop.xlane.xlu1 %1664  ;;  %3231 = vmatprep.mubr.bf16.mxu0 %v1700_v9  ;;  %v1688_v17 = vmul.f32 %v3581_v35, %v4644_v40 }
 0x916   :  { %3588 = vrcp.f32 %v1653_v0  ;;  %v3583_v13 = vpop.eup %3582  ;;  %v3383_v0 = vld [vmem:[%s5229_s5 + $0x18] sm:$0xff]  }
 0x917   :  { %3590 = vrcp.f32 %v1649_v33  ;;  %v3585_v21 = vpop.eup %3584  ;;  %v1689_v23 = vmul.f32 %v3583_v13, %v4642_v20 }
 0x918   :  { %3592 = vrcp.f32 %v1655_v34  ;;  %v1686_v61 = vmul.f32 %v3585_v21, %v4619_v62  ;;  %v3587_v27 = vpop.eup %3586  ;;  %v3382_v34 = vld [vmem:[%s5229_s5 + $0x10] sm:$0xff]  }
 0x919   :  { %v1661_v36 = vpop.xlane.xlu1 %1660  ;;  %v1659_v31 = vpop.xlane.xlu0 %1658  ;;  %v1702_v41 = vpack.c.bf16 %v1689_v23, %v1688_v17  ;;  %v1691_v14 = vmul.f32 %v3587_v27, %v4649_v58 }
 0x91a   :  { %3594 = vrcp.f32 %v1659_v31  ;;  %v1701_v19 = vpack.c.bf16 %v1687_v42, %v1686_v61 }
 0x91b   :  { %3596 = vrcp.f32 %v1657_v2 }
 0x91c   :  { %3598 = vrcp.f32 %v1661_v36 }
 0x91d   :  { %v1723_v8 = vpop.permute.xlu1 %1722 }
 0x91e   :  { %3229 = vmatprep.subr.bf16.mxu0 %v1723_v8 }
 0x91f   :  { %3230 = vmatpush3.bf16.msra.mxu0 %v1723_v8 }
 0x920   :  { %v3589_v38 = vpop.eup %3588  ;;  %3247 = vmatprep.subr.bf16.mxu0 %v3380_v11 }
 0x921   :  { %v3591_v51 = vpop.eup %3590  ;;  %v1692_v40 = vmul.f32 %v3589_v38, %v4658_v25 }
 0x922   :  { %3232 = vmatmul.mubr.bf16.vlgmr.msra.gmra.mrb[24].mxu0 %v1701_v19  ;;  %v3593_v6 = vpop.eup %3592  ;;  %v1690_v20 = vmul.f32 %v3591_v51, %v4636_v50 }
 0x923   :  { %3235 = vmatprep.mubr.bf16.mxu0 %v1702_v41  ;;  %v1693_v62 = vmul.f32 %v3593_v6, %v4652_v3  ;;  %3248 = vmatpush3.bf16.msra.mxu0 %v3380_v11 }
 0x924   :  { %v1703_v4 = vpack.c.bf16 %v1691_v14, %v1690_v20  ;;  %v3595_v7 = vpop.eup %3594 }
 0x925   :  { %v1704_v26 = vpack.c.bf16 %v1693_v62, %v1692_v40  ;;  %v3597_v56 = vpop.eup %3596  ;;  %v1695_v53 = vmul.f32 %v3595_v7, %v4664_v49 }
 0x926   :  { %v1694_v45 = vmul.f32 %v3597_v56, %v4655_v28  ;;  %v3599_v50 = vpop.eup %3598 }
 0x927   :  { %v1696_v48 = vmul.f32 %v3599_v50, %v4666_v47 }
 0x928   :  { %v1705_v60 = vpack.c.bf16 %v1695_v53, %v1694_v45 }
 0x92a   :  { %3236 = vmatmul.mubr.bf16.gmra.mrb[28].mxu0 %v1703_v4 }
 0x92b   :  { %3239 = vmatprep.mubr.bf16.mxu0 %v1704_v26 }
 0x932   :  { %3240 = vmatmul.mubr.bf16.gmra.mrb[32].mxu0 %v1705_v60 }
 0x948   :  { %v1663_v58 = vpop.xlane.xlu0 %1662 }
 0x949   :  { %3600 = vrcp.f32 %v1663_v58 }
 0x94a   :  { %3602 = vrcp.f32 %v1665_v37 }
 0x94c   :  { %v1667_v25 = vpop.xlane.xlu0 %1666 }
 0x94d   :  { %3604 = vrcp.f32 %v1667_v25 }
 0x953   :  { %v3601_v3 = vpop.eup %3600 }
 0x954   :  { %v1697_v33 = vmul.f32 %v3601_v3, %v4674_v59  ;;  %v3603_v43 = vpop.eup %3602 }
 0x955   :  { %v1698_v28 = vmul.f32 %v3603_v43, %v4660_v44 }
 0x956   :  { %v1706_v15 = vpack.c.bf16 %v1697_v33, %v1696_v48 }
 0x957   :  { %v3605_v54 = vpop.eup %3604 }
 0x958   :  { %3243 = vmatprep.mubr.bf16.mxu0 %v1706_v15  ;;  %v1699_v49 = vmul.f32 %v3605_v54, %v4677_v1  ;;  %v3381_v1 = vld [vmem:[%s5229_s5 + $0x8] sm:$0xff]  }
 0x959   :  { %3249 = vmatprep.subr.bf16.mxu0 %v3381_v1 }
 0x95a   :  { %v1707_v29 = vpack.c.bf16 %v1699_v49, %v1698_v28  ;;  %3250 = vmatpush3.bf16.msra.mxu0 %v3381_v1 }
 0x95b   :  { %3251 = vmatprep.subr.bf16.mxu0 %v3382_v34 }
 0x95c   :  { %3244 = vmatmul.mubr.bf16.gmra.mrb[36].mxu0 %v1707_v29 }
 0x95e   :  { %3252 = vmatpush3.bf16.msra.mxu0 %v3382_v34  ;;  %v3655_v34 = vld [vmem:[%s5240_s16 + $0x30] sm:$0xff] }
 0x95f   :  { %3253 = vmatprep.subr.bf16.mxu0 %v3383_v0 }
 0x962   :  { %3254 = vmatpush3.bf16.msra.mxu0 %v3383_v0 }
 0x9f5   :  { %v4699_v32 = vpop.f32.mrb[24].mxu0 }
 0x9f6   :  { %1849 = vrot.lane.b32.xlu1 %v4699_v32, %s3701_s18  ;;  %v4703_v47 = vpop.f32.mrb[25].mxu0 }
 0x9f7   :  { %1845 = vrot.lane.b32.xlu0 %v4703_v47, %s3701_s18  ;;  %v4707_v44 = vpop.f32.mrb[26].mxu0 }
 0x9f8   :  { %v4709_v59 = vpop.f32.mrb[27].mxu0 }
 0x9fa   :  { %1897 = vrot.lane.b32.xlu1 %v4699_v32, %s3702_s1 }
 0x9fb   :  { %1851 = vrot.lane.b32.xlu0 %v4707_v44, %s3701_s18 }
 0x9fd   :  { %v4721_v2 = vpop.f32.mrb[28].mxu0 }
 0x9fe   :  { %1945 = vrot.lane.b32.xlu1 %v4699_v32, %s3699_s3  ;;  %v4725_v10 = vpop.f32.mrb[29].mxu0 }
 0x9ff   :  { %1899 = vrot.lane.b32.xlu0 %v4707_v44, %s3702_s1  ;;  %v4729_v63 = vpop.f32.mrb[30].mxu0 }
 0xa00   :  { %v4731_v9 = vpop.f32.mrb[31].mxu0 }
 0xa02   :  { %1893 = vrot.lane.b32.xlu1 %v4703_v47, %s3702_s1 }
 0xa03   :  { %1947 = vrot.lane.b32.xlu0 %v4707_v44, %s3699_s3 }
 0xa05   :  { %v4740_v37 = vpop.f32.mrb[32].mxu0 }
 0xa06   :  { %1941 = vrot.lane.b32.xlu1 %v4703_v47, %s3699_s3  ;;  %v4744_v12 = vpop.f32.mrb[33].mxu0 }
 0xa07   :  { %1895 = vrot.lane.b32.xlu0 %v4709_v59, %s3702_s1  ;;  %v4748_v35 = vpop.f32.mrb[34].mxu0 }
 0xa08   :  { %v4750_v36 = vpop.f32.mrb[35].mxu0 }
 0xa0a   :  { %1847 = vrot.lane.b32.xlu1 %v4709_v59, %s3701_s18 }
 0xa0b   :  { %1943 = vrot.lane.b32.xlu0 %v4709_v59, %s3699_s3 }
 0xa0e   :  { %1857 = vrot.lane.b32.xlu1 %v4721_v2, %s3701_s18 }
 0xa0f   :  { %1859 = vrot.lane.b32.xlu0 %v4729_v63, %s3701_s18 }
 0xa12   :  { %1905 = vrot.lane.b32.xlu1 %v4721_v2, %s3702_s1 }
 0xa13   :  { %1907 = vrot.lane.b32.xlu0 %v4729_v63, %s3702_s1 }
 0xa16   :  { %1953 = vrot.lane.b32.xlu1 %v4721_v2, %s3699_s3 }
 0xa17   :  { %1955 = vrot.lane.b32.xlu0 %v4729_v63, %s3699_s3 }
 0xa1a   :  { %1853 = vrot.lane.b32.xlu1 %v4725_v10, %s3701_s18 }
 0xa1b   :  { %1855 = vrot.lane.b32.xlu0 %v4731_v9, %s3701_s18 }
 0xa1e   :  { %1901 = vrot.lane.b32.xlu1 %v4725_v10, %s3702_s1 }
 0xa1f   :  { %1903 = vrot.lane.b32.xlu0 %v4731_v9, %s3702_s1 }
 0xa22   :  { %1949 = vrot.lane.b32.xlu1 %v4725_v10, %s3699_s3 }
 0xa23   :  { %1951 = vrot.lane.b32.xlu0 %v4731_v9, %s3699_s3 }
 0xa26   :  { %1865 = vrot.lane.b32.xlu1 %v4740_v37, %s3701_s18 }
 0xa27   :  { %1867 = vrot.lane.b32.xlu0 %v4748_v35, %s3701_s18 }
 0xa2a   :  { %1913 = vrot.lane.b32.xlu1 %v4740_v37, %s3702_s1 }
 0xa2b   :  { %1915 = vrot.lane.b32.xlu0 %v4748_v35, %s3702_s1 }
 0xa2e   :  { %1961 = vrot.lane.b32.xlu1 %v4740_v37, %s3699_s3 }
 0xa2f   :  { %1963 = vrot.lane.b32.xlu0 %v4748_v35, %s3699_s3  ;;  %v4792_v13 = vpop.f32.mrb[36].mxu0 }
 0xa30   :  { %v4794_v21 = vpop.f32.mrb[37].mxu0 }
 0xa31   :  { %v4796_v42 = vpop.f32.mrb[38].mxu0 }
 0xa32   :  { %1861 = vrot.lane.b32.xlu1 %v4744_v12, %s3701_s18  ;;  %v4800_v31 = vpop.f32.mrb[39].mxu0 }
 0xa33   :  { %1863 = vrot.lane.b32.xlu0 %v4750_v36, %s3701_s18 }
 0xa36   :  { %1909 = vrot.lane.b32.xlu1 %v4744_v12, %s3702_s1 }
 0xa37   :  { %1911 = vrot.lane.b32.xlu0 %v4750_v36, %s3702_s1 }
 0xa3a   :  { %1957 = vrot.lane.b32.xlu1 %v4744_v12, %s3699_s3 }
 0xa3b   :  { %1959 = vrot.lane.b32.xlu0 %v4750_v36, %s3699_s3 }
 0xa3e   :  { %1873 = vrot.lane.b32.xlu1 %v4792_v13, %s3701_s18 }
 0xa3f   :  { %1875 = vrot.lane.b32.xlu0 %v4796_v42, %s3701_s18 }
 0xa42   :  { %1921 = vrot.lane.b32.xlu1 %v4792_v13, %s3702_s1 }
 0xa43   :  { %1923 = vrot.lane.b32.xlu0 %v4796_v42, %s3702_s1 }
 0xa46   :  { %1869 = vrot.lane.b32.xlu1 %v4794_v21, %s3701_s18 }
 0xa47   :  { %1871 = vrot.lane.b32.xlu0 %v4800_v31, %s3701_s18 }
 0xa4a   :  { %1917 = vrot.lane.b32.xlu1 %v4794_v21, %s3702_s1 }
 0xa4b   :  { %1919 = vrot.lane.b32.xlu0 %v4800_v31, %s3702_s1 }
 0xa4e   :  { %1965 = vrot.lane.b32.xlu1 %v4794_v21, %s3699_s3 }
 0xa4f   :  { %1967 = vrot.lane.b32.xlu0 %v4800_v31, %s3699_s3 }
 0xa52   :  { %1969 = vrot.lane.b32.xlu1 %v4792_v13, %s3699_s3 }
 0xa53   :  { %1971 = vrot.lane.b32.xlu0 %v4796_v42, %s3699_s3 }
 0xa68   :  { %v1850_v8 = vpop.permute.xlu1 %1849 }
 0xa69   :  { %v1846_v17 = vpop.permute.xlu0 %1845  ;;  %v1991_v41 = vsel %vm268_vm5, %v4699_v32, %v1850_v8 }
 0xa6a   :  { %v1989_v45 = vsel %vm268_vm5, %v4703_v47, %v1846_v17 }
 0xa6c   :  { %v1898_v23 = vpop.permute.xlu1 %1897 }
 0xa6d   :  { %v1852_v61 = vpop.permute.xlu0 %1851  ;;  %v2007_v38 = vsel %vm808_vm8, %v1991_v41, %v1898_v23 }
 0xa6e   :  { %v1992_v51 = vsel %vm268_vm5, %v4707_v44, %v1852_v61 }
 0xa70   :  { %v1946_v19 = vpop.permute.xlu1 %1945 }
 0xa71   :  { %v1900_v27 = vpop.permute.xlu0 %1899  ;;  %v2023_v6 = vsel %vm817_vm9, %v2007_v38, %v1946_v19 }
 0xa72   :  { %v2008_v40 = vsel %vm808_vm8, %v1992_v51, %v1900_v27  ;;  %v2039_v4 = vmul.f32 %v2023_v6, %v4389_v46 }
 0xa74   :  { %v1894_v14 = vpop.permute.xlu1 %1893 }
 0xa75   :  { %v1948_v20 = vpop.permute.xlu0 %1947  ;;  %v2005_v60 = vsel %vm808_vm8, %v1989_v45, %v1894_v14 }
 0xa76   :  { %v2024_v62 = vsel %vm817_vm9, %v2008_v40, %v1948_v20 }
 0xa77   :  { %v2040_v7 = vmul.f32 %v2024_v62, %v4394_v18  ;;  %v3654_v18 = vld [vmem:[%s5240_s16] sm:$0xff] }
 0xa78   :  { %v1942_v26 = vpop.permute.xlu1 %1941  ;;  %v3657_v62 = vld [vmem:[%s5240_s16 + $0x20] sm:$0xff] }
 0xa79   :  { %v2054_v56 = vpack.c.bf16 %v2040_v7, %v2039_v4  ;;  %v1896_v53 = vpop.permute.xlu0 %1895  ;;  %v2021_v25 = vsel %vm817_vm9, %v2005_v60, %v1942_v26 }
 0xa7a   :  { %v2037_v33 = vmul.f32 %v3654_v18, %v2021_v25 }
 0xa7c   :  { %v1848_v58 = vpop.permute.xlu1 %1847 }
 0xa7d   :  { %v1990_v50 = vsel %vm268_vm5, %v4709_v59, %v1848_v58  ;;  %v1944_v3 = vpop.permute.xlu0 %1943 }
 0xa7e   :  { %v2006_v48 = vsel %vm808_vm8, %v1990_v50, %v1896_v53 }
 0xa7f   :  { %v2022_v46 = vsel %vm817_vm9, %v2006_v48, %v1944_v3 }
 0xa80   :  { %v2038_v43 = vmul.f32 %v2022_v46, %v4402_v52  ;;  %v1858_v15 = vpop.permute.xlu1 %1857 }
 0xa81   :  { %v1860_v54 = vpop.permute.xlu0 %1859  ;;  %v1995_v11 = vsel %vm268_vm5, %v4721_v2, %v1858_v15  ;;  %v3656_v2 = vld [vmem:[%s5240_s16 + $0x38] sm:$0xff] }
 0xa82   :  { %v2053_v28 = vpack.c.bf16 %v2038_v43, %v2037_v33  ;;  %v1996_v32 = vsel %vm268_vm5, %v4729_v63, %v1860_v54  ;;  %v3659_v33 = vld [vmem:[%s5240_s16 + $0x50] sm:$0xff] }
 0xa84   :  { %3255 = vmatprep.mubr.msk.bf16.mxu0 %vm109_vm0, %v2053_v28  ;;  %v1906_v49 = vpop.permute.xlu1 %1905 }
 0xa85   :  { %3256 = vmatmul.mubr.msk.bf16.vlgmr.msra.gmra.mrb[40].mxu0 %vm109_vm0, %v2054_v56  ;;  %v1908_v29 = vpop.permute.xlu0 %1907  ;;  %v2011_v47 = vsel %vm808_vm8, %v1995_v11, %v1906_v49 }
 0xa86   :  { %v2012_v52 = vsel %vm808_vm8, %v1996_v32, %v1908_v29 }
 0xa88   :  { %v1954_v44 = vpop.permute.xlu1 %1953 }
 0xa89   :  { %v2027_v59 = vsel %vm817_vm9, %v2011_v47, %v1954_v44  ;;  %v1956_v1 = vpop.permute.xlu0 %1955 }
 0xa8a   :  { %v2043_v0 = vmul.f32 %v3655_v34, %v2027_v59  ;;  %v2028_v8 = vsel %vm817_vm9, %v2012_v52, %v1956_v1 }
 0xa8b   :  { %v2044_v63 = vmul.f32 %v3656_v2, %v2028_v8 }
 0xa8c   :  { %v1854_v17 = vpop.permute.xlu1 %1853 }
 0xa8d   :  { %v2056_v23 = vpack.c.bf16 %v2044_v63, %v2043_v0  ;;  %v1856_v61 = vpop.permute.xlu0 %1855  ;;  %v1993_v41 = vsel %vm268_vm5, %v4725_v10, %v1854_v17  ;;  %v3658_v10 = vld [vmem:[%s5240_s16 + $0x28] sm:$0xff]  ;;  %v3661_v0 = vld [vmem:[%s5240_s16 + $0x40] sm:$0xff] }
 0xa8e   :  { %v1994_v38 = vsel %vm268_vm5, %v4731_v9, %v1856_v61 }
 0xa90   :  { %v1902_v19 = vpop.permute.xlu1 %1901 }
 0xa91   :  { %v1904_v27 = vpop.permute.xlu0 %1903  ;;  %v2009_v51 = vsel %vm808_vm8, %v1993_v41, %v1902_v19 }
 0xa92   :  { %v2010_v14 = vsel %vm808_vm8, %v1994_v38, %v1904_v27 }
 0xa94   :  { %v1950_v6 = vpop.permute.xlu1 %1949 }
 0xa95   :  { %v2025_v40 = vsel %vm817_vm9, %v2009_v51, %v1950_v6  ;;  %v1952_v20 = vpop.permute.xlu0 %1951 }
 0xa96   :  { %v2041_v4 = vmul.f32 %v3657_v62, %v2025_v40  ;;  %v2026_v7 = vsel %vm817_vm9, %v2010_v14, %v1952_v20 }
 0xa97   :  { %v2042_v9 = vmul.f32 %v3658_v10, %v2026_v7  ;;  %v3663_v10 = vld [vmem:[%s5240_s16 + $0x60] sm:$0xff] }
 0xa98   :  { %v1866_v26 = vpop.permute.xlu1 %1865 }
 0xa99   :  { %v2055_v56 = vpack.c.bf16 %v2042_v9, %v2041_v4  ;;  %v1868_v53 = vpop.permute.xlu0 %1867  ;;  %v1999_v58 = vsel %vm268_vm5, %v4740_v37, %v1866_v26  ;;  %v3660_v37 = vld [vmem:[%s5240_s16 + $0x58] sm:$0xff] }
 0xa9a   :  { %v2000_v25 = vsel %vm268_vm5, %v4748_v35, %v1868_v53 }
 0xa9b   :  { %3259 = vmatprep.mubr.msk.bf16.mxu0 %vm109_vm0, %v2055_v56 }
 0xa9c   :  { %3260 = vmatmul.mubr.msk.bf16.gmra.mrb[44].mxu0 %vm109_vm0, %v2056_v23  ;;  %v1914_v45 = vpop.permute.xlu1 %1913 }
 0xa9d   :  { %v1916_v60 = vpop.permute.xlu0 %1915  ;;  %v2015_v50 = vsel %vm808_vm8, %v1999_v58, %v1914_v45 }
 0xa9e   :  { %v2016_v48 = vsel %vm808_vm8, %v2000_v25, %v1916_v60 }
 0xaa0   :  { %v1962_v3 = vpop.permute.xlu1 %1961 }
 0xaa1   :  { %v2031_v46 = vsel %vm817_vm9, %v2015_v50, %v1962_v3  ;;  %v1964_v18 = vpop.permute.xlu0 %1963 }
 0xaa2   :  { %v2047_v43 = vmul.f32 %v3659_v33, %v2031_v46  ;;  %v2032_v15 = vsel %vm817_vm9, %v2016_v48, %v1964_v18 }
 0xaa3   :  { %v2048_v35 = vmul.f32 %v3660_v37, %v2032_v15 }
 0xaa4   :  { %v1862_v54 = vpop.permute.xlu1 %1861 }
 0xaa5   :  { %v2058_v28 = vpack.c.bf16 %v2048_v35, %v2047_v43  ;;  %v1864_v49 = vpop.permute.xlu0 %1863  ;;  %v1997_v32 = vsel %vm268_vm5, %v4744_v12, %v1862_v54  ;;  %v3662_v12 = vld [vmem:[%s5240_s16 + $0x48] sm:$0xff] }
 0xaa6   :  { %v1998_v47 = vsel %vm268_vm5, %v4750_v36, %v1864_v49 }
 0xaa8   :  { %v1910_v29 = vpop.permute.xlu1 %1909 }
 0xaa9   :  { %v1912_v11 = vpop.permute.xlu0 %1911  ;;  %v2013_v44 = vsel %vm808_vm8, %v1997_v32, %v1910_v29 }
 0xaaa   :  { %v2014_v59 = vsel %vm808_vm8, %v1998_v47, %v1912_v11 }
 0xaac   :  { %v1958_v52 = vpop.permute.xlu1 %1957 }
 0xaad   :  { %v2029_v1 = vsel %vm817_vm9, %v2013_v44, %v1958_v52  ;;  %v1960_v34 = vpop.permute.xlu0 %1959 }
 0xaae   :  { %v2045_v8 = vmul.f32 %v3661_v0, %v2029_v1  ;;  %v2030_v2 = vsel %vm817_vm9, %v2014_v59, %v1960_v34 }
 0xaaf   :  { %v2046_v36 = vmul.f32 %v3662_v12, %v2030_v2 }
 0xab0   :  { %v1874_v63 = vpop.permute.xlu1 %1873 }
 0xab1   :  { %v2057_v17 = vpack.c.bf16 %v2046_v36, %v2045_v8  ;;  %v1876_v23 = vpop.permute.xlu0 %1875 }
 0xab2   :  { %v2004_v53 = vsel %vm268_vm5, %v4796_v42, %v1876_v23  ;;  %v3666_v42 = vld [vmem:[%s5240_s16 + $0x78] sm:$0xff] }
 0xab3   :  { %3263 = vmatprep.mubr.msk.bf16.mxu0 %vm109_vm0, %v2057_v17 }
 0xab4   :  { %3264 = vmatmul.mubr.msk.bf16.gmra.mrb[48].mxu0 %vm109_vm0, %v2058_v28  ;;  %v1922_v61 = vpop.permute.xlu1 %1921 }
 0xab5   :  { %v1924_v19 = vpop.permute.xlu0 %1923 }
 0xab6   :  { %v2020_v58 = vsel %vm808_vm8, %v2004_v53, %v1924_v19  ;;  %v2216_v19 = vpack.c.bf16 %v4345_v30, %v4340_v57 }
 0xab8   :  { %v1870_v27 = vpop.permute.xlu1 %1869 }
 0xab9   :  { %v1872_v41 = vpop.permute.xlu0 %1871  ;;  %v2001_v6 = vsel %vm268_vm5, %v4794_v21, %v1870_v27  ;;  %v2003_v21 = vsel %vm268_vm5, %v4792_v13, %v1874_v63  ;;  %v3665_v13 = vld [vmem:[%s5240_s16 + $0x70] sm:$0xff]  ;;  %v2959_v27 = vld [vmem:[%s5230_s6] ss:$0 sm:$0xff] }
 0xaba   :  { %v2002_v14 = vsel %vm268_vm5, %v4800_v31, %v1872_v41  ;;  %v3664_v31 = vld [vmem:[%s5240_s16 + $0x68] sm:$0xff]  ;;  %v2019_v45 = vsel %vm808_vm8, %v2003_v21, %v1922_v61  ;;  %v2215_v61 = vpack.c.bf16 %v4337_v55, %v4330_v24  ;;  %v3667_v55 = vld [vmem:[%s5246_s0] sm:$0xff] }
 0xabc   :  { %v1918_v38 = vpop.permute.xlu1 %1917 }
 0xabd   :  { %v1920_v51 = vpop.permute.xlu0 %1919  ;;  %v2017_v40 = vsel %vm808_vm8, %v2001_v6, %v1918_v38 }
 0xabe   :  { %v2018_v62 = vsel %vm808_vm8, %v2002_v14, %v1920_v51 }
 0xac0   :  { %v1966_v20 = vpop.permute.xlu1 %1965 }
 0xac1   :  { %v2033_v4 = vsel %vm817_vm9, %v2017_v40, %v1966_v20  ;;  %v1968_v7 = vpop.permute.xlu0 %1967 }
 0xac2   :  { %v2049_v9 = vmul.f32 %v3663_v10, %v2033_v4  ;;  %v2034_v26 = vsel %vm817_vm9, %v2018_v62, %v1968_v7  ;;  %v3670_v4 = vld [vmem:[%s5246_s0 + $0x10] sm:$0xff] }
 0xac3   :  { %v2050_v56 = vmul.f32 %v3664_v31, %v2034_v26 }
 0xac4   :  { %v1970_v60 = vpop.permute.xlu1 %1969 }
 0xac5   :  { %v2059_v25 = vpack.c.bf16 %v2050_v56, %v2049_v9  ;;  %v2035_v50 = vsel %vm817_vm9, %v2019_v45, %v1970_v60  ;;  %v1972_v3 = vpop.permute.xlu0 %1971 }
 0xac6   :  { %v2051_v48 = vmul.f32 %v3665_v13, %v2035_v50  ;;  %v2036_v46 = vsel %vm817_vm9, %v2020_v58, %v1972_v3  ;;  %v3671_v58 = vld [vmem:[%s5246_s0 + $0x20] sm:$0xff]  ;;  %v3672_v13 = vld [vmem:[%s5246_s0 + $0x28] sm:$0xff] }
 0xac7   :  { %v2052_v18 = vmul.f32 %v3666_v42, %v2036_v46  ;;  %3267 = vmatprep.mubr.msk.bf16.mxu0 %vm109_vm0, %v2059_v25  ;;  %v3673_v46 = vld [vmem:[%s5246_s0 + $0x30] sm:$0xff] }
 0xac9   :  { %v2060_v33 = vpack.c.bf16 %v2052_v18, %v2051_v48  ;;  %v3674_v18 = vld [vmem:[%s5246_s0 + $0x38] sm:$0xff] }
 0xacb   :  { %3268 = vmatmul.mubr.msk.bf16.gmra.mrb[52].mxu0 %vm109_vm0, %v2060_v33 }
 0xacc   :  { %2549 = vmatprep.mubr.bf16.mxu0 %v3703_v39 }
 0xb58   :  { %v3257_v43 = vpop.f32.mrb[40].mxu0 }
 0xb59   :  { %v2151_v15 = vpop.f32.mrb[41].mxu0 }
 0xb5a   :  { %v3258_v37 = vpop.f32.mrb[42].mxu0 }
 0xb5b   :  { %v2219_v35 = vpack.c.bf16 %v3258_v37, %v3257_v43  ;;  %v2154_v54 = vpop.f32.mrb[43].mxu0 }
 0xb5c   :  { %v2218_v28 = vpack.c.bf16 %v2154_v54, %v2151_v15  ;;  %v3384_v54 = vld [vmem:[%s5235_s11] ss:$8 sps:$4 sm:$0xff]  }
 0xb5e   :  { %3271 = vmatprep.subr.bf16.mxu1 %v2218_v28 }
 0xb5f   :  { %3272 = vmatpush3.bf16.msra.mxu1 %v2218_v28  ;;  %v3386_v28 = vld [vmem:[%s5235_s11 + $0x4] ss:$8 sps:$4 sm:$0xff]  }
 0xb60   :  { %3273 = vmatprep.subr.bf16.mxu1 %v2219_v35  ;;  %2517 = vmatprep.subr.bf16.mxu0 %v3386_v28 }
 0xb61   :  { %2518 = vmatpush1.bf16.msra.mxu0 %v3384_v54 }
 0xb63   :  { %3274 = vmatpush3.bf16.msra.mxu1 %v2219_v35 }
 0xb6f   :  { %v3261_v49 = vpop.f32.mrb[44].mxu0 }
 0xb70   :  { %v2167_v29 = vpop.f32.mrb[45].mxu0 }
 0xb71   :  { %v3262_v11 = vpop.f32.mrb[46].mxu0 }
 0xb72   :  { %v2221_v32 = vpack.c.bf16 %v3262_v11, %v3261_v49  ;;  %v2170_v47 = vpop.f32.mrb[47].mxu0 }
 0xb73   :  { %v2220_v44 = vpack.c.bf16 %v2170_v47, %v2167_v29 }
 0xb75   :  { %3275 = vmatprep.subr.bf16.mxu1 %v2220_v44 }
 0xb76   :  { %3276 = vmatpush3.bf16.msra.mxu1 %v2220_v44 }
 0xb77   :  { %3277 = vmatprep.subr.bf16.mxu1 %v2221_v32 }
 0xb7a   :  { %3278 = vmatpush3.bf16.msra.mxu1 %v2221_v32 }
 0xb87   :  { %v3265_v52 = vpop.f32.mrb[48].mxu0 }
 0xb88   :  { %v2183_v59 = vpop.f32.mrb[49].mxu0 }
 0xb89   :  { %v3266_v1 = vpop.f32.mrb[50].mxu0 }
 0xb8a   :  { %v2223_v34 = vpack.c.bf16 %v3266_v1, %v3265_v52  ;;  %v2186_v0 = vpop.f32.mrb[51].mxu0 }
 0xb8b   :  { %v2222_v8 = vpack.c.bf16 %v2186_v0, %v2183_v59 }
 0xb8d   :  { %3279 = vmatprep.subr.bf16.mxu1 %v2222_v8 }
 0xb8e   :  { %3280 = vmatpush3.bf16.msra.mxu1 %v2222_v8 }
 0xb8f   :  { %3281 = vmatprep.subr.bf16.mxu1 %v2223_v34 }
 0xb92   :  { %3282 = vmatpush3.bf16.msra.mxu1 %v2223_v34 }
 0xb9e   :  { %v3269_v2 = vpop.f32.mrb[52].mxu0 }
 0xb9f   :  { %v2199_v12 = vpop.f32.mrb[53].mxu0 }
 0xba0   :  { %v3270_v36 = vpop.f32.mrb[54].mxu0 }
 0xba1   :  { %v2225_v63 = vpack.c.bf16 %v3270_v36, %v3269_v2  ;;  %v2202_v17 = vpop.f32.mrb[55].mxu0 }
 0xba2   :  { %v2224_v23 = vpack.c.bf16 %v2202_v17, %v2199_v12 }
 0xba4   :  { %3283 = vmatprep.subr.bf16.mxu1 %v2224_v23 }
 0xba5   :  { %3284 = vmatpush3.bf16.msra.mxu1 %v2224_v23 }
 0xba6   :  { %3285 = vmatprep.subr.bf16.mxu1 %v2225_v63 }
 0xba9   :  { %3286 = vmatpush3.bf16.msra.mxu1 %v2225_v63 }
 0xbac   :  { %3288 = vmatmul.mubr.bf16.vlgmr.msra.gmra.mrb[32].mxu1 %v2215_v61 }
 0xbad   :  { %3291 = vmatprep.mubr.bf16.mxu1 %v2216_v19 }
 0xbb4   :  { %3292 = vmatmul.mubr.bf16.gmra.mrb[36].mxu1 %v2217_v22  ;;  %v3669_v22 = vld [vmem:[%s5246_s0 + $0x8] sm:$0xff] }
 0xc7f   :  { %v3289_v41 = vpop.f32.mrb[32].mxu1 }
 0xc80   :  { %v2267_v38 = vpop.f32.mrb[33].mxu1  ;;  %v2276_v14 = vadd.f32 %v3289_v41, %v2959_v27 }
 0xc81   :  { %v2268_v51 = vadd.f32 %v2959_v27, %v2267_v38  ;;  %v3290_v6 = vpop.f32.mrb[34].mxu1 }
 0xc82   :  { %v2279_v40 = vadd.f32 %v3290_v6, %v2959_v27  ;;  %v2270_v24 = vpop.f32.mrb[35].mxu1  ;;  %v4981_v7 = vadd.f32 %v3670_v4, %v2276_v14 }
 0xc83   :  { %v4964_v57 = vadd.f32 %v3667_v55, %v2268_v51  ;;  %v2271_v30 = vadd.f32 %v2959_v27, %v2270_v24 }
 0xc84   :  { %v4969_v16 = vadd.f32 %v3668_v5, %v2279_v40  ;;  %v2314_v45 = vsel %vm109_vm0, %v4981_v7, 0.0 }
 0xc85   :  { %v4974_v20 = vadd.f32 %v3669_v22, %v2271_v30  ;;  %v2308_v62 = vsel %vm109_vm0, %v4964_v57, 0.0 }
 0xc86   :  { %2309 = vadd.xlane.f32.xlu1 %v2308_v62  ;;  %v2317_v56 = vsel %vm109_vm0, %v4969_v16, 0.0 }
 0xc87   :  { %v3293_v10 = vpop.f32.mrb[36].mxu1  ;;  %v2311_v9 = vsel %vm109_vm0, %v4974_v20, 0.0 }
 0xc88   :  { %v2283_v26 = vpop.f32.mrb[37].mxu1  ;;  %2312 = vadd.xlane.f32.xlu0 %v2311_v9  ;;  %v2292_v60 = vadd.f32 %v3293_v10, %v2959_v27 }
 0xc89   :  { %v2284_v21 = vadd.f32 %v2959_v27, %v2283_v26  ;;  %v3294_v31 = vpop.f32.mrb[38].mxu1 }
 0xc8a   :  { %v2286_v53 = vpop.f32.mrb[39].mxu1  ;;  %2318 = vadd.xlane.f32.xlu1 %v2317_v56  ;;  %v2295_v50 = vadd.f32 %v3294_v31, %v2959_v27  ;;  %v5002_v42 = vadd.f32 %v3673_v46, %v2292_v60  ;;  %v3392_v60 = vld [vmem:[%s5235_s11 + $0x24] ss:$8 sps:$4 sm:$0xff]  }
 0xc8b   :  { %v4992_v25 = vadd.f32 %v3671_v58, %v2284_v21  ;;  %v2287_v3 = vadd.f32 %v2959_v27, %v2286_v53  ;;  %v3389_v53 = vld [vmem:[%s5235_s11 + $0x14] ss:$8 sps:$4 sm:$0xff]   ;;  %v3390_v58 = vld [vmem:[%s5235_s11 + $0x20] ss:$8 sps:$4 sm:$0xff]  }
 0xc8c   :  { %2315 = vadd.xlane.f32.xlu0 %v2314_v45  ;;  %v5007_v33 = vadd.f32 %v3674_v18, %v2295_v50  ;;  %v2326_v37 = vsel %vm109_vm0, %v5002_v42, 0.0  ;;  %v3387_v45 = vld [vmem:[%s5235_s11 + $0x10] ss:$8 sps:$4 sm:$0xff]   ;;  %2519 = vmatprep.subr.bf16.mxu0 %v3389_v53  ;;  %v3395_v50 = vld [vmem:[%s5235_s11 + $0x34] ss:$8 sps:$4 sm:$0xff]   ;;  %v3397_v46 = vld [vmem:[%s5237_s13] sm:$0xff]  }
 0xc8d   :  { %v4997_v48 = vadd.f32 %v3672_v13, %v2287_v3  ;;  %v2320_v43 = vsel %vm109_vm0, %v4992_v25, 0.0  ;;  %2520 = vmatpush1.bf16.msra.mxu0 %v3387_v45  ;;  %v3393_v3 = vld [vmem:[%s5235_s11 + $0x30] ss:$8 sps:$4 sm:$0xff]   ;;  %v3396_v13 = vld [vmem:[%s5237_s13 + $0x40] sm:$0xff]   ;;  %v5098_v18 = vld [vmem:[%s5237_s13 + $0x48] sm:$0xff]  }
 0xc8e   :  { %v2329_v35 = vsel %vm109_vm0, %v5007_v33, 0.0  ;;  %2521 = vmatprep.subr.bf16.mxu0 %v3392_v60  ;;  %3295 = vmatprep.subr.bf16.mxu1 %v3396_v13 }
 0xc8f   :  { %v2323_v15 = vsel %vm109_vm0, %v4997_v48, 0.0  ;;  %3303 = vmatpush3.bf16.msra.mxu1 %v3397_v46 }
 0xc90   :  { %2321 = vadd.xlane.f32.xlu0 %v2320_v43  ;;  %2324 = vadd.xlane.f32.xlu1 %v2323_v15  ;;  %v3399_v43 = vld [vmem:[%s5237_s13 + $0x8] sm:$0xff]  }
 0xc91   :  { %2522 = vmatpush1.bf16.msra.mxu0 %v3390_v58  ;;  %3296 = vmatprep.subr.bf16.mxu1 %v5098_v18 }
 0xc92   :  { %2523 = vmatprep.subr.bf16.mxu0 %v3395_v50 }
 0xc93   :  { %3304 = vmatpush3.bf16.msra.mxu1 %v3399_v43 }
 0xc94   :  { %2327 = vadd.xlane.f32.xlu0 %v2326_v37  ;;  %2330 = vadd.xlane.f32.xlu1 %v2329_v35 }
 0xc95   :  { %2524 = vmatpush1.bf16.msra.mxu0 %v3393_v3 }
 0xc96   :  { %3079 = vmatprep.subr.bf16.mxu0 %v3396_v13 }
 0xd13   :  { %v2310_v49 = vpop.xlane.xlu1 %2309 }
 0xd14   :  { %v2333_v29 = vmul.f32 0.015625, %v2310_v49 }
 0xd15   :  { %v2313_v11 = vpop.xlane.xlu0 %2312 }
 0xd16   :  { %v5024_v32 = vsub.f32 %v4964_v57, %v2333_v29  ;;  %v2334_v47 = vmul.f32 0.015625, %v2313_v11 }
 0xd17   :  { %v2319_v44 = vpop.xlane.xlu1 %2318 }
 0xd18   :  { %v5027_v52 = vsub.f32 %v4974_v20, %v2334_v47  ;;  %v2336_v59 = vmul.f32 0.015625, %v2319_v44  ;;  %v2349_v1 = vmul.f32 %v5024_v32, %v5024_v32 }
 0xd19   :  { %v2316_v34 = vpop.xlane.xlu0 %2315 }
 0xd1a   :  { %v5032_v0 = vsub.f32 %v4969_v16, %v2336_v59  ;;  %v2335_v8 = vmul.f32 0.015625, %v2316_v34  ;;  %v2357_v2 = vsel %vm109_vm0, %v2349_v1, 0.0  ;;  %v2350_v12 = vmul.f32 %v5027_v52, %v5027_v52 }
 0xd1b   :  { %2358 = vadd.xlane.f32.xlu0 %v2357_v2 }
 0xd1c   :  { %v5038_v36 = vsub.f32 %v4981_v7, %v2335_v8  ;;  %v2360_v63 = vsel %vm109_vm0, %v2350_v12, 0.0  ;;  %v2352_v17 = vmul.f32 %v5032_v0, %v5032_v0 }
 0xd1d   :  { %v2322_v23 = vpop.xlane.xlu0 %2321  ;;  %2361 = vadd.xlane.f32.xlu1 %v2360_v63  ;;  %v2325_v61 = vpop.xlane.xlu1 %2324 }
 0xd1e   :  { %v2337_v19 = vmul.f32 0.015625, %v2322_v23  ;;  %v2338_v27 = vmul.f32 0.015625, %v2325_v61  ;;  %v2351_v41 = vmul.f32 %v5038_v36, %v5038_v36  ;;  %v2366_v14 = vsel %vm109_vm0, %v2352_v17, 0.0 }
 0xd20   :  { %v5046_v38 = vsub.f32 %v4992_v25, %v2337_v19  ;;  %v5049_v51 = vsub.f32 %v4997_v48, %v2338_v27  ;;  %v2363_v6 = vsel %vm109_vm0, %v2351_v41, 0.0  ;;  %v2960_v27 = vld [vmem:[%s5233_s9] ss:$0 sm:$0xff] }
 0xd21   :  { %v2328_v40 = vpop.xlane.xlu0 %2327  ;;  %2364 = vadd.xlane.f32.xlu0 %v2363_v6  ;;  %2367 = vadd.xlane.f32.xlu1 %v2366_v14  ;;  %v2331_v24 = vpop.xlane.xlu1 %2330 }
 0xd22   :  { %v2339_v55 = vmul.f32 0.015625, %v2328_v40  ;;  %v2340_v30 = vmul.f32 0.015625, %v2331_v24  ;;  %v2353_v5 = vmul.f32 %v5046_v38, %v5046_v38  ;;  %v2354_v22 = vmul.f32 %v5049_v51, %v5049_v51 }
 0xd24   :  { %v5058_v62 = vsub.f32 %v5002_v42, %v2339_v55  ;;  %v5061_v4 = vsub.f32 %v5007_v33, %v2340_v30  ;;  %v2369_v10 = vsel %vm109_vm0, %v2353_v5, 0.0  ;;  %v2372_v9 = vsel %vm109_vm0, %v2354_v22, 0.0  ;;  %v2961_v5 = vld [vmem:[%s5234_s10] ss:$0 sm:$0xff] }
 0xd25   :  { %2370 = vadd.xlane.f32.xlu0 %v2369_v10  ;;  %2373 = vadd.xlane.f32.xlu1 %v2372_v9 }
 0xd26   :  { %v2355_v26 = vmul.f32 %v5058_v62, %v5058_v62  ;;  %v2356_v21 = vmul.f32 %v5061_v4, %v5061_v4 }
 0xd28   :  { %v2375_v31 = vsel %vm109_vm0, %v2355_v26, 0.0  ;;  %v2378_v56 = vsel %vm109_vm0, %v2356_v21, 0.0 }
 0xd29   :  { %2376 = vadd.xlane.f32.xlu0 %v2375_v31  ;;  %2379 = vadd.xlane.f32.xlu1 %v2378_v56 }
 0xda8   :  { %v2359_v15 = vpop.xlane.xlu0 %2358 }
 0xda9   :  { %v2381_v37 = vmul.f32 0.015625, %v2359_v15 }
 0xdaa   :  { %v2362_v35 = vpop.xlane.xlu1 %2361 }
 0xdab   :  { %v2389_v54 = vadd.f32 1e-05, %v2381_v37  ;;  %v2382_v28 = vmul.f32 0.015625, %v2362_v35 }
 0xdad   :  { %3606 = vrsqrt.f32 %v2389_v54  ;;  %v2390_v49 = vadd.f32 1e-05, %v2382_v28 }
 0xdae   :  { %v2365_v29 = vpop.xlane.xlu0 %2364  ;;  %v2368_v11 = vpop.xlane.xlu1 %2367 }
 0xdaf   :  { %3608 = vrsqrt.f32 %v2390_v49  ;;  %v2383_v47 = vmul.f32 0.015625, %v2365_v29  ;;  %v2384_v44 = vmul.f32 0.015625, %v2368_v11 }
 0xdb1   :  { %v2391_v59 = vadd.f32 1e-05, %v2383_v47  ;;  %v2392_v1 = vadd.f32 1e-05, %v2384_v44  ;;  %v3403_v44 = vld [vmem:[%s5237_s13 + $0x18] sm:$0xff]  }
 0xdb2   :  { %v2371_v34 = vpop.xlane.xlu0 %2370  ;;  %v2374_v8 = vpop.xlane.xlu1 %2373 }
 0xdb3   :  { %3610 = vrsqrt.f32 %v2391_v59  ;;  %v2385_v2 = vmul.f32 0.015625, %v2371_v34  ;;  %v2386_v12 = vmul.f32 0.015625, %v2374_v8  ;;  %v3404_v59 = vld [vmem:[%s5237_s13 + $0x60] sm:$0xff]   ;;  %v3406_v34 = vld [vmem:[%s5237_s13 + $0x68] sm:$0xff]  }
 0xdb4   :  { %3612 = vrsqrt.f32 %v2392_v1  ;;  %v3405_v1 = vld [vmem:[%s5237_s13 + $0x20] sm:$0xff]   ;;  %v3407_v8 = vld [vmem:[%s5237_s13 + $0x28] sm:$0xff]  }
 0xdb5   :  { %v2393_v63 = vadd.f32 1e-05, %v2385_v2  ;;  %v2394_v17 = vadd.f32 1e-05, %v2386_v12  ;;  %v3408_v2 = vld [vmem:[%s5237_s13 + $0x70] sm:$0xff]  }
 0xdb6   :  { %v2377_v23 = vpop.xlane.xlu0 %2376  ;;  %v2380_v61 = vpop.xlane.xlu1 %2379  ;;  %v3409_v12 = vld [vmem:[%s5237_s13 + $0x30] sm:$0xff]  }
 0xdb7   :  { %v3607_v19 = vpop.eup %3606  ;;  %3614 = vrsqrt.f32 %v2393_v63  ;;  %v2387_v41 = vmul.f32 0.015625, %v2377_v23  ;;  %v2388_v6 = vmul.f32 0.015625, %v2380_v61  ;;  %v3410_v63 = vld [vmem:[%s5237_s13 + $0x78] sm:$0xff]   ;;  %v2455_v23 = vlaneseq }
 0xdb8   :  { %v2405_v14 = vmul.f32 %v3607_v19, %v5024_v32  ;;  %3616 = vrsqrt.f32 %v2394_v17  ;;  %v3411_v17 = vld [vmem:[%s5237_s13 + $0x38] sm:$0xff]  }
 0xdb9   :  { %v3609_v40 = vpop.eup %3608  ;;  %v2395_v30 = vadd.f32 1e-05, %v2387_v41  ;;  %v2396_v22 = vadd.f32 1e-05, %v2388_v6  ;;  %v2456_v61 = vshrl.u32 %v2455_v23, 7 }
 0xdba   :  { %v2419_v24 = vmul.f32 %v2960_v27, %v2405_v14  ;;  %v2406_v55 = vmul.f32 %v3609_v40, %v5027_v52 }
 0xdbb   :  { %3618 = vrsqrt.f32 %v2395_v30  ;;  %v2457_v19 = vsub.s32 0, %v2456_v61  ;;  %v2461_v41 = vsub.s32 1, %v2456_v61 }
 0xdbc   :  { %v2420_v10 = vmul.f32 %v2960_v27, %v2406_v55  ;;  %v2433_v21 = vadd.f32 %v2961_v5, %v2419_v24  ;;  %3620 = vrsqrt.f32 %v2396_v22 }
 0xdbd   :  { %v3611_v9 = vpop.eup %3610 }
 0xdbe   :  { %v3613_v26 = vpop.eup %3612  ;;  %v2434_v31 = vadd.f32 %v2961_v5, %v2420_v10  ;;  %v2407_v56 = vmul.f32 %v3611_v9, %v5038_v36 }
 0xdbf   :  { %v2408_v32 = vmul.f32 %v3613_v26, %v5032_v0 }
 0xdc0   :  { %v2441_v53 = vpack.c.bf16 %v2434_v31, %v2433_v21  ;;  %v2421_v45 = vmul.f32 %v2960_v27, %v2407_v56 }
 0xdc1   :  { %v3615_v52 = vpop.eup %3614  ;;  %v2422_v60 = vmul.f32 %v2960_v27, %v2408_v32 }
 0xdc2   :  { %v3617_v58 = vpop.eup %3616  ;;  %2970 = vmatmul.mubr.msk.bf16.vlgmr.msra.gmra.mrb[56].mxu0 %vm109_vm0, %v2441_v53  ;;  %v2409_v50 = vmul.f32 %v3615_v52, %v5046_v38  ;;  %v2435_v13 = vadd.f32 %v2961_v5, %v2421_v45 }
 0xdc3   :  { %2559 = vmatprep.mubr.bf16.mxu0 %v3703_v39  ;;  %3080 = vmatpush3.bf16.msra.mxu0 %v3397_v46  ;;  %v2410_v3 = vmul.f32 %v3617_v58, %v5049_v51  ;;  %v2436_v36 = vadd.f32 %v2961_v5, %v2422_v60 }
 0xdc4   :  { %3081 = vmatprep.subr.bf16.mxu0 %v5098_v18  ;;  %v2423_v37 = vmul.f32 %v2960_v27, %v2409_v50 }
 0xdc5   :  { %v3619_v0 = vpop.eup %3618  ;;  %v2442_v15 = vpack.c.bf16 %v2436_v36, %v2435_v13  ;;  %v2424_v35 = vmul.f32 %v2960_v27, %v2410_v3 }
 0xdc6   :  { %v3621_v54 = vpop.eup %3620  ;;  %v2411_v46 = vmul.f32 %v3619_v0, %v5058_v62  ;;  %v2437_v28 = vadd.f32 %v2961_v5, %v2423_v37  ;;  %v3400_v62 = vld [vmem:[%s5237_s13 + $0x50] sm:$0xff]  }
 0xdc7   :  { %3082 = vmatpush3.bf16.msra.mxu0 %v3399_v43  ;;  %v2412_v38 = vmul.f32 %v3621_v54, %v5061_v4  ;;  %v2438_v51 = vadd.f32 %v2961_v5, %v2424_v35  ;;  %v3401_v4 = vld [vmem:[%s5237_s13 + $0x10] sm:$0xff]   ;;  %3297 = vmatprep.subr.bf16.mxu1 %v3400_v62 }
 0xdc8   :  { %v2425_v29 = vmul.f32 %v2960_v27, %v2411_v46  ;;  %3083 = vmatprep.subr.bf16.mxu0 %v3400_v62  ;;  %3305 = vmatpush3.bf16.msra.mxu1 %v3401_v4 }
 0xdc9   :  { %v2443_v49 = vpack.c.bf16 %v2438_v51, %v2437_v28  ;;  %v2426_v11 = vmul.f32 %v2960_v27, %v2412_v38  ;;  %v2453_v27 = vld [vmem:[%s5236_s12] sm:$0x3] }
 0xdca   :  { %2971 = vmatmul.mubr.msk.bf16.gmra.mrb[60].mxu0 %vm109_vm0, %v2442_v15  ;;  %v2439_v18 = vadd.f32 %v2961_v5, %v2425_v29  ;;  %v5165_v6 = vrot.slane %v2453_v27, %v2457_v19  ;;  %v5167_v14 = vrot.slane %v2453_v27, %v2461_v41 }
 0xdcb   :  { %2569 = vmatprep.mubr.bf16.mxu0 %v3703_v39  ;;  %v2440_v43 = vadd.f32 %v2961_v5, %v2426_v11  ;;  %3084 = vmatpush3.bf16.msra.mxu0 %v3401_v4 }
 0xdcd   :  { %v2444_v47 = vpack.c.bf16 %v2440_v43, %v2439_v18 }
 0xdd2   :  { %2972 = vmatmul.mubr.msk.bf16.gmra.mrb[64].mxu0 %vm109_vm0, %v2443_v49 }
 0xdd3   :  { %2579 = vmatprep.mubr.bf16.mxu0 %v3703_v39  ;;  %v3402_v39 = vld [vmem:[%s5237_s13 + $0x58] sm:$0xff]  }
 0xdd4   :  { %3085 = vmatprep.subr.bf16.mxu0 %v3402_v39  ;;  %3298 = vmatprep.subr.bf16.mxu1 %v3402_v39 }
 0xdd5   :  { %3086 = vmatpush3.bf16.msra.mxu0 %v3403_v44  ;;  %3306 = vmatpush3.bf16.msra.mxu1 %v3403_v44 }
 0xdd6   :  { %3087 = vmatprep.subr.bf16.mxu0 %v3404_v59  ;;  %3299 = vmatprep.subr.bf16.mxu1 %v3404_v59 }
 0xdd9   :  { %3088 = vmatpush3.bf16.msra.mxu0 %v3405_v1  ;;  %3307 = vmatpush3.bf16.msra.mxu1 %v3405_v1 }
 0xdda   :  { %2973 = vmatmul.mubr.msk.bf16.gmra.mrb[68].mxu0 %vm109_vm0, %v2444_v47  ;;  %3089 = vmatprep.subr.bf16.mxu0 %v3406_v34 }
 0xddb   :  { %3300 = vmatprep.subr.bf16.mxu1 %v3406_v34 }
 0xddd   :  { %3090 = vmatpush3.bf16.msra.mxu0 %v3407_v8  ;;  %3308 = vmatpush3.bf16.msra.mxu1 %v3407_v8 }
 0xdde   :  { %3091 = vmatprep.subr.bf16.mxu0 %v3408_v2  ;;  %3301 = vmatprep.subr.bf16.mxu1 %v3408_v2 }
 0xde1   :  { %3092 = vmatpush3.bf16.msra.mxu0 %v3409_v12  ;;  %3309 = vmatpush3.bf16.msra.mxu1 %v3409_v12 }
 0xde2   :  { %3093 = vmatprep.subr.bf16.mxu0 %v3410_v63  ;;  %3302 = vmatprep.subr.bf16.mxu1 %v3410_v63 }
 0xde5   :  { %3094 = vmatpush3.bf16.msra.mxu0 %v3411_v17  ;;  %3310 = vmatpush3.bf16.msra.mxu1 %v3411_v17 }
 0xe95   :  { %v2551_v40 = vpop.f32.mrb[56].mxu0 }
 0xe96   :  { %v2552_v24 = vadd.f32 %v2551_v40, %v5165_v6  ;;  %v2553_v55 = vpop.f32.mrb[57].mxu0 }
 0xe97   :  { %v2554_v30 = vadd.f32 %v2553_v55, %v5167_v14  ;;  %v2555_v5 = vpop.f32.mrb[58].mxu0 }
 0xe98   :  { %v2606_v22 = vmul.f32 0.70710677, %v2552_v24  ;;  %v2556_v10 = vadd.f32 %v2555_v5, %v5165_v6  ;;  %v2557_v9 = vpop.f32.mrb[59].mxu0  ;;  %v2590_v11 = vmul.f32 0.5, %v2552_v24 }
 0xe99   :  { %v2607_v26 = vmul.f32 0.70710677, %v2554_v30  ;;  %v2558_v21 = vadd.f32 %v2557_v9, %v5167_v14  ;;  %v2591_v4 = vmul.f32 0.5, %v2554_v30 }
 0xe9a   :  { %3622 = verf.f32 %v2606_v22  ;;  %v2608_v31 = vmul.f32 0.70710677, %v2556_v10  ;;  %v2592_v18 = vmul.f32 0.5, %v2556_v10 }
 0xe9b   :  { %3624 = verf.f32 %v2607_v26  ;;  %v2609_v56 = vmul.f32 0.70710677, %v2558_v21  ;;  %v2593_v39 = vmul.f32 0.5, %v2558_v21 }
 0xe9c   :  { %3626 = verf.f32 %v2608_v31 }
 0xe9d   :  { %3628 = verf.f32 %v2609_v56  ;;  %v2561_v32 = vpop.f32.mrb[60].mxu0 }
 0xe9e   :  { %v2562_v53 = vadd.f32 %v2561_v32, %v5165_v6  ;;  %v2563_v45 = vpop.f32.mrb[61].mxu0 }
 0xe9f   :  { %v2564_v52 = vadd.f32 %v2563_v45, %v5167_v14  ;;  %v2565_v60 = vpop.f32.mrb[62].mxu0 }
 0xea0   :  { %v2610_v58 = vmul.f32 0.70710677, %v2562_v53  ;;  %v2566_v50 = vadd.f32 %v2565_v60, %v5165_v6  ;;  %v2567_v3 = vpop.f32.mrb[63].mxu0  ;;  %v2594_v21 = vmul.f32 0.5, %v2562_v53 }
 0xea1   :  { %v2611_v13 = vmul.f32 0.70710677, %v2564_v52  ;;  %v2568_v36 = vadd.f32 %v2567_v3, %v5167_v14  ;;  %v2595_v60 = vmul.f32 0.5, %v2564_v52 }
 0xea2   :  { %3630 = verf.f32 %v2610_v58  ;;  %v2612_v0 = vmul.f32 0.70710677, %v2566_v50  ;;  %v2596_v31 = vmul.f32 0.5, %v2566_v50 }
 0xea3   :  { %3632 = verf.f32 %v2611_v13  ;;  %v2613_v15 = vmul.f32 0.70710677, %v2568_v36  ;;  %v2597_v58 = vmul.f32 0.5, %v2568_v36 }
 0xea4   :  { %v3623_v37 = vpop.eup %3622  ;;  %3634 = verf.f32 %v2612_v0 }
 0xea5   :  { %v3625_v35 = vpop.eup %3624  ;;  %v2638_v54 = vadd.f32 1.0, %v3623_v37  ;;  %3636 = verf.f32 %v2613_v15  ;;  %v2571_v46 = vpop.f32.mrb[64].mxu0 }
 0xea6   :  { %v3627_v38 = vpop.eup %3626  ;;  %v2639_v28 = vadd.f32 1.0, %v3625_v35  ;;  %v5178_v51 = vadd.f32 %v2571_v46, %v5165_v6  ;;  %v2573_v49 = vpop.f32.mrb[65].mxu0 }
 0xea7   :  { %v3629_v29 = vpop.eup %3628  ;;  %v2640_v43 = vadd.f32 1.0, %v3627_v38  ;;  %v5181_v47 = vadd.f32 %v2573_v49, %v5167_v14  ;;  %v2575_v62 = vpop.f32.mrb[66].mxu0  ;;  %v2654_v34 = vmul.f32 %v2638_v54, %v2590_v11 }
 0xea8   :  { %v2641_v44 = vadd.f32 1.0, %v3629_v29  ;;  %v2614_v59 = vmul.f32 0.70710677, %v5178_v51  ;;  %v2577_v1 = vpop.f32.mrb[67].mxu0  ;;  %v2576_v12 = vadd.f32 %v2575_v62, %v5165_v6  ;;  %v2655_v63 = vmul.f32 %v2639_v28, %v2591_v4 }
 0xea9   :  { %v2656_v8 = vmul.f32 %v2640_v43, %v2592_v18  ;;  %v2615_v2 = vmul.f32 0.70710677, %v5181_v47  ;;  %v2578_v23 = vadd.f32 %v2577_v1, %v5167_v14  ;;  %v2598_v62 = vmul.f32 0.5, %v5178_v51 }
 0xeaa   :  { %v2657_v17 = vmul.f32 %v2641_v44, %v2593_v39  ;;  %3638 = verf.f32 %v2614_v59  ;;  %v2616_v19 = vmul.f32 0.70710677, %v2576_v12  ;;  %v2600_v4 = vmul.f32 0.5, %v2576_v12 }
 0xeab   :  { %v2670_v61 = vpack.c.bf16 %v2656_v8, %v2654_v34  ;;  %3640 = verf.f32 %v2615_v2  ;;  %v2617_v41 = vmul.f32 0.70710677, %v2578_v23  ;;  %v2601_v44 = vmul.f32 0.5, %v2578_v23 }
 0xeac   :  { %v3631_v27 = vpop.eup %3630  ;;  %v2671_v40 = vpack.c.bf16 %v2657_v17, %v2655_v63  ;;  %3642 = verf.f32 %v2616_v19 }
 0xead   :  { %v3633_v24 = vpop.eup %3632  ;;  %v2642_v55 = vadd.f32 1.0, %v3631_v27  ;;  %v2581_v30 = vpop.f32.mrb[68].mxu0  ;;  %3644 = verf.f32 %v2617_v41 }
 0xeae   :  { %v3635_v5 = vpop.eup %3634  ;;  %v2643_v22 = vadd.f32 1.0, %v3633_v24  ;;  %v2582_v10 = vadd.f32 %v2581_v30, %v5165_v6  ;;  %v2583_v9 = vpop.f32.mrb[69].mxu0  ;;  %2845 = vmatprep.mubr.bf16.mxu0 %v2671_v40 }
 0xeaf   :  { %v3637_v26 = vpop.eup %3636  ;;  %v2644_v56 = vadd.f32 1.0, %v3635_v5  ;;  %v2584_v32 = vadd.f32 %v2583_v9, %v5167_v14  ;;  %v2585_v45 = vpop.f32.mrb[70].mxu0  ;;  %2846 = vmatmul.mubr.bf16.vlgmr.msra.gmra.mrb[72].mxu0 %v2670_v61  ;;  %v2658_v15 = vmul.f32 %v2642_v55, %v2594_v21 }
 0xeb0   :  { %v2645_v3 = vadd.f32 1.0, %v3637_v26  ;;  %v2618_v13 = vmul.f32 0.70710677, %v2582_v10  ;;  %v2587_v0 = vpop.f32.mrb[71].mxu0  ;;  %v2586_v54 = vadd.f32 %v2585_v45, %v5165_v6  ;;  %v2659_v46 = vmul.f32 %v2643_v22, %v2595_v60  ;;  %v2974_v45 = vld [vmem:[%s5238_s14] ss:$0 sm:$0xff] }
 0xeb1   :  { %v2660_v37 = vmul.f32 %v2644_v56, %v2596_v31  ;;  %v2619_v35 = vmul.f32 0.70710677, %v2584_v32  ;;  %v2588_v53 = vadd.f32 %v2587_v0, %v5167_v14  ;;  %v2599_v14 = vmul.f32 0.5, %v5181_v47  ;;  %s3707_s14 = smov [#allocation2]  }
 0xeb2   :  { %v2661_v38 = vmul.f32 %v2645_v3, %v2597_v58  ;;  %3646 = verf.f32 %v2618_v13  ;;  %v2620_v28 = vmul.f32 0.70710677, %v2586_v54  ;;  %v2602_v51 = vmul.f32 0.5, %v2582_v10  ;;  %s2899_s3 = sshll.u32 %s3707_s14, 4  ;;  %s2900_s3 = int_to_ptr.vmem [resolvable:$true] %s2899_s3 }
 0xeb3   :  { %v2672_v50 = vpack.c.bf16 %v2660_v37, %v2658_v15  ;;  %3648 = verf.f32 %v2619_v35  ;;  %v2621_v29 = vmul.f32 0.70710677, %v2588_v53  ;;  %v2604_v12 = vmul.f32 0.5, %v2586_v54  ;;  %s3675_s9 = scalar_lea.vmem %s2900_s3, 1024  ;;  %p3680_p1 = scmp.lt.s32.totalorder %s2900_s3, %s2900_s3 }
 0xeb4   :  { %v3639_v49 = vpop.eup %3638  ;;  %v2673_v52 = vpack.c.bf16 %v2661_v38, %v2659_v46  ;;  %3650 = verf.f32 %v2620_v28  ;;  %v2603_v47 = vmul.f32 0.5, %v2584_v32  ;;  %v2605_v23 = vmul.f32 0.5, %v2588_v53  ;;  %p3676_p0 = scmp.ne.s32.totalorder %s2900_s3, %s3675_s9  ;;  %p3681_p2 = scmp.lt.s32.totalorder %s3675_s9, %s3675_s9 }
 0xeb5   :  { %v3641_v36 = vpop.eup %3640  ;;  %v2646_v11 = vadd.f32 1.0, %v3639_v49  ;;  %3652 = verf.f32 %v2621_v29 }
 0xeb6   :  { %2853 = vmatprep.mubr.bf16.mxu1 %v2673_v52  ;;  %v3643_v18 = vpop.eup %3642  ;;  %v2647_v43 = vadd.f32 1.0, %v3641_v36  ;;  %p3682_p3 = por %p3681_p2, %p3680_p1 }
 0xeb7   :  { %2854 = vmatmul.mubr.bf16.vlgmr.msra.gmra.mrb[40].mxu1 %v2672_v50  ;;  %v3645_v6 = vpop.eup %3644  ;;  %v2648_v39 = vadd.f32 1.0, %v3643_v18  ;;  %v2662_v1 = vmul.f32 %v2646_v11, %v2598_v62 }
 0xeb8   :  { %v2649_v59 = vadd.f32 1.0, %v3645_v6  ;;  %v2663_v8 = vmul.f32 %v2647_v43, %v2599_v14  ;;  %p3683_p4 = pnand %p3682_p3, %p3676_p0 }
 0xeb9   :  { %v2664_v34 = vmul.f32 %v2648_v39, %v2600_v4 }
 0xeba   :  { %v2665_v2 = vmul.f32 %v2649_v59, %v2601_v44 }
 0xebb   :  { %v2674_v17 = vpack.c.bf16 %v2664_v34, %v2662_v1 }
 0xebc   :  { %v3647_v63 = vpop.eup %3646  ;;  %v2675_v19 = vpack.c.bf16 %v2665_v2, %v2663_v8 }
 0xebd   :  { %v3649_v61 = vpop.eup %3648  ;;  %v2650_v27 = vadd.f32 1.0, %v3647_v63 }
 0xebe   :  { %v3651_v41 = vpop.eup %3650  ;;  %v2651_v40 = vadd.f32 1.0, %v3649_v61  ;;  %2861 = vmatprep.mubr.bf16.mxu1 %v2675_v19 }
 0xebf   :  { %v3653_v24 = vpop.eup %3652  ;;  %v2652_v55 = vadd.f32 1.0, %v3651_v41  ;;  %2862 = vmatmul.mubr.bf16.gmra.mrb[44].mxu1 %v2674_v17  ;;  %v2666_v5 = vmul.f32 %v2650_v27, %v2602_v51 }
 0xec0   :  { %v2653_v30 = vadd.f32 1.0, %v3653_v24  ;;  %v2667_v9 = vmul.f32 %v2651_v40, %v2603_v47 }
 0xec1   :  { %v2668_v22 = vmul.f32 %v2652_v55, %v2604_v12 }
 0xec2   :  { %v2669_v26 = vmul.f32 %v2653_v30, %v2605_v23 }
 0xec3   :  { %v2676_v21 = vpack.c.bf16 %v2668_v22, %v2666_v5 }
 0xec4   :  { %v2677_v31 = vpack.c.bf16 %v2669_v26, %v2667_v9 }
 0xec6   :  { %2869 = vmatprep.mubr.bf16.mxu1 %v2677_v31 }
 0xec7   :  { %2870 = vmatmul.mubr.bf16.gmra.mrb[48].mxu1 %v2676_v21 }
 0xf82   :  { %v3095_v56 = vpop.f32.mrb[72].mxu0 }
 0xf83   :  { %v3096_v10 = vpop.f32.mrb[73].mxu0 }
 0xf84   :  { %v3097_v60 = vadd.f32 %v3096_v10, %v3095_v56  ;;  %v3098_v58 = vpop.f32.mrb[74].mxu0 }
 0xf85   :  { %v3099_v3 = vpop.f32.mrb[75].mxu0 }
 0xf86   :  { %v2848_v32 = vadd.f32 %v3097_v60, %v2974_v45  ;;  %v3100_v13 = vadd.f32 %v3099_v3, %v3098_v58 }
 0xf88   :  { %v2878_v0 = vadd.f32 %v2848_v32, %v4964_v57  ;;  %v2851_v15 = vadd.f32 %v3100_v13, %v2974_v45 }
 0xf8a   :  { %2886 = vst.msk [vmem:[#allocation2] sm:$0xff] %vm109_vm0, %v2878_v0  ;;  %v2879_v37 = vadd.f32 %v2851_v15, %v4974_v20  ;;  %v3101_v35 = vpop.f32.mrb[40].mxu1 }
 0xf8b   :  { %v3102_v54 = vpop.f32.mrb[41].mxu1 }
 0xf8c   :  { %2887 = vst.msk [vmem:[#allocation2 + $0x8] sm:$0xff] %vm109_vm0, %v2879_v37  ;;  %v3103_v46 = vadd.f32 %v3102_v54, %v3101_v35  ;;  %v3104_v38 = vpop.f32.mrb[42].mxu1 }
 0xf8d   :  { %v3105_v53 = vpop.f32.mrb[43].mxu1 }
 0xf8e   :  { %v2856_v50 = vadd.f32 %v3103_v46, %v2974_v45  ;;  %v3106_v28 = vadd.f32 %v3105_v53, %v3104_v38 }
 0xf90   :  { %v2880_v49 = vadd.f32 %v2856_v50, %v4981_v7  ;;  %v2859_v29 = vadd.f32 %v3106_v28, %v2974_v45 }
 0xf92   :  { %2888 = vst.msk [vmem:[#allocation2 + $0x10] sm:$0xff] %vm109_vm0, %v2880_v49  ;;  %v2881_v57 = vadd.f32 %v2859_v29, %v4969_v16  ;;  %v3107_v52 = vpop.f32.mrb[44].mxu1 }
 0xf93   :  { %v3108_v20 = vpop.f32.mrb[45].mxu1 }
 0xf94   :  { %2889 = vst.msk [vmem:[#allocation2 + $0x18] sm:$0xff] %vm109_vm0, %v2881_v57  ;;  %v3109_v36 = vadd.f32 %v3108_v20, %v3107_v52  ;;  %v3110_v11 = vpop.f32.mrb[46].mxu1 }
 0xf95   :  { %v3111_v18 = vpop.f32.mrb[47].mxu1 }
 0xf96   :  { %v2864_v43 = vadd.f32 %v3109_v36, %v2974_v45  ;;  %v3112_v6 = vadd.f32 %v3111_v18, %v3110_v11 }
 0xf98   :  { %v2882_v62 = vadd.f32 %v2864_v43, %v4992_v25  ;;  %v2867_v4 = vadd.f32 %v3112_v6, %v2974_v45 }
 0xf9a   :  { %2890 = vst.msk [vmem:[#allocation2 + $0x20] sm:$0xff] %vm109_vm0, %v2882_v62  ;;  %v2883_v7 = vadd.f32 %v2867_v4, %v4997_v48  ;;  %v3113_v39 = vpop.f32.mrb[48].mxu1 }
 0xf9b   :  { %v3114_v14 = vpop.f32.mrb[49].mxu1 }
 0xf9c   :  { %2891 = vst.msk [vmem:[#allocation2 + $0x28] sm:$0xff] %vm109_vm0, %v2883_v7  ;;  %v3115_v16 = vadd.f32 %v3114_v14, %v3113_v39  ;;  %v3116_v44 = vpop.f32.mrb[50].mxu1 }
 0xf9d   :  { %v3117_v59 = vpop.f32.mrb[51].mxu1 }
 0xf9e   :  { %v2872_v1 = vadd.f32 %v3115_v16, %v2974_v45  ;;  %v3118_v34 = vadd.f32 %v3117_v59, %v3116_v44 }
 0xfa0   :  { %v2884_v8 = vadd.f32 %v2872_v1, %v5002_v42  ;;  %v2875_v2 = vadd.f32 %v3118_v34, %v2974_v45 }
 0xfa2   :  { %2892 = vst.msk [vmem:[#allocation2 + $0x30] sm:$0xff] %vm109_vm0, %v2884_v8  ;;  %v2885_v25 = vadd.f32 %v2875_v2, %v5007_v33 }
 0xfa4   :  { %2893 = vst.msk [vmem:[#allocation2 + $0x38] sm:$0xff] %vm109_vm0, %v2885_v25 }
 0xfa5   :  { %3686 = shalt.err (!%p3683_p4)
}
 0xfa6   :  { %s3687_s1 = scalar_lea.hbm %s5241_s17, 1024 }
 0xfa7   :  { %p3688_p5 = scmp.ne.s32.totalorder %s5241_s17, %s3687_s1  ;;  %p3691_p6 = scmp.lt.u32.totalorder %s3687_s1, %s5241_s17 }
 0xfa9   :  { %p3693_p7 = pnand %p3691_p6, %p3688_p5 }
 0xfab   :  { %3696 = shalt.err (!%p3693_p7)
}
 0xfac   :  { %s3708_s25 = smov 128   ;;  %s3709_s2 = smov 8  }
 0xfad   :  { %2905 = dma.vmem_to_hbm [thread:$0]  %s2900_s3, 1024, %s5241_s17, [#allocation3], %s3708_s25, %s3708_s25, %s3709_s2  }
 0xfae   :  { %3697 = dma.done.wait [#allocation3], 1024  }
 0xfaf   :  { %3698 = vsyncadd [#allocation3], 4294966272 }
 0xfb0   :  { %2909 = vsyncpa [#allocation3], 1 }

</bundles_post_ra>
